<compile_context>
chip_gen: v7x
topology: tpu7x:2x2x1
jax: 0.10.0
libtpu: 0.0.40
codegen_flags: <defaults>
</compile_context>

<pallas_src>
import numpy as np
import jax
import jax.numpy as jnp
from jax.experimental import pallas as pl
from jax.experimental.pallas import tpu as pltpu

LANE = 128


def _round_up(x, m):
    return (x + m - 1) // m * m


def _sublane_align(dtype):
    # Native sublane tile is 8 rows of 32-bit; packed dtypes pack 4/itemsize.
    return 8 * (4 // jnp.dtype(dtype).itemsize)


def _pick_row_tile(H, Wp, co_tile, k_fold, compute_itemsize, max_rows=16,
                   acc_budget=2 << 20, lhs_budget=2 << 20):
    """Row tile of 8-16 rows, bounded by the VMEM accumulator / folded LHS."""
    per_row_acc = Wp * co_tile * 4
    cand = [max_rows, H, max(1, acc_budget // per_row_acc)]
    if k_fold:
        cand.append(max(1, lhs_budget // (Wp * k_fold * compute_itemsize)))
    return int(max(1, min(cand)))


def _make_kernel(fold):
    """Grid = (N, H_row_tiles, Cout_tiles).

    x_ref:     (1, Hp, Wp, Cin_p)   whole zero-padded image of batch element n
    w_ref:     (9*Cin_p, CO_T)      taps flattened as (kh, kw, ci) rows
    scale_ref: (1, CO_T)            folded BN scale (gamma / sqrt(var+eps))
    shift_ref: (1, CO_T)            folded BN shift (beta - mean*scale + b*scale)
    o_ref:     (1, TH, Wp, CO_T)    padded output row tile (full-tile store)
    acc_ref:   VMEM (TH*Wp, CO_T)   f32 accumulator
    lhs_ref:   VMEM (TH*Wp, 9*Cin_p) folded LHS (only when fold=True)
    """

    def kernel(x_ref, w_ref, scale_ref, shift_ref, o_ref, acc_ref, *scratch):
        _, TH, Wp, CO = o_ref.shape
        CI = x_ref.shape[3]
        rows = TH + 2                       # halo'd window height
        M = TH * Wp

        h = pl.program_id(1)
        c = pl.program_id(2)
        row0 = h * TH

        def rolled_windows():
            # Halo'd row window with W flattened onto the sublane axis; Wp is
            # a multiple of the sublane tile so the reshape is layout-trivial.
            xw = x_ref[0, pl.ds(row0, rows), :, :].astype(jnp.float32)
            xw = xw.reshape(rows * Wp, CI)
            # kw (column) shift via XLU rolls of the flat window.  Wrapped
            # elements only ever land in the >=2 zero-padded tail columns of
            # each row, which are never kept by the wrapper.
            return [xw,
                    pltpu.roll(xw, rows * Wp - 1, 0),
                    pltpu.roll(xw, rows * Wp - 2, 0)]

        if fold:
            (lhs_ref,) = scratch

            # The folded LHS depends only on (n, h): build it once per row
            # tile and reuse it across Cout tiles (c is the innermost,
            # sequential "arbitrary" grid axis).
            @pl.when(c == 0)
            def _build_lhs():
                xs = rolled_windows()
                blocks = [xs[kw][kh * Wp:kh * Wp + M]      # 8/16-aligned slabs
                          for kh in range(3) for kw in range(3)]
                lhs_ref[...] = jnp.concatenate(blocks, axis=1).astype(lhs_ref.dtype)

            # Single MXU contraction with K = 9 * Cin_p.
            acc_ref[...] = jnp.dot(lhs_ref[...], w_ref[...],
                                   preferred_element_type=jnp.float32)
        else:
            # Large-Cin fallback: 9 dots with K = Cin_p.
            # TODO(synk): cache the rolled windows across Cout tiles too.
            xs = rolled_windows()
            acc = jnp.zeros((M, CO), dtype=jnp.float32)
            for kh in range(3):
                for kw in range(3):
                    t = kh * 3 + kw
                    acc = acc + jnp.dot(
                        xs[kw][kh * Wp:kh * Wp + M].astype(w_ref.dtype),
                        w_ref[t * CI:(t + 1) * CI, :],
                        preferred_element_type=jnp.float32)
            acc_ref[...] = acc

        # Folded BatchNorm (eval) + ReLU epilogue in f32 on the VPU.  The
        # store is a full (TH, Wp, CO) lane-dense tile (unmasked vst); padded
        # rows / columns / channels are sliced off in the wrapper.
        y = jnp.maximum(acc_ref[...] * scale_ref[...] + shift_ref[...], 0.0)
        o_ref[0] = y.reshape(TH, Wp, CO).astype(o_ref.dtype)

    return kernel


def conv_bn_relu_nhwc(x_nhwc, weight, bias, gamma, beta, running_mean,
                      running_var, eps=1e-5, compute_dtype=jnp.bfloat16,
                      co_tile=None):
    """Fused Conv2d(3x3, s1, p1) + BatchNorm2d(eval) + ReLU, NHWC activations.

    x_nhwc: (N, H, W, Cin); weight: (Cout, Cin, 3, 3) (PyTorch OIHW layout).
    compute_dtype feeds the MXU (bf16 by default); accumulation and the
    BN/ReLU epilogue are always f32.  Returns (N, H, W, Cout) in x_nhwc.dtype.
    """
    N, H, W, Cin = x_nhwc.shape
    Cout = weight.shape[0]
    out_dtype = x_nhwc.dtype
    compute_dtype = jnp.dtype(compute_dtype)
    ce = compute_dtype.itemsize
    sub = _sublane_align(compute_dtype)

    if co_tile is None:
        co_tile = 256 if _round_up(Cout, LANE) >= 256 else LANE
    Cin_p = _round_up(Cin, sub)
    Cout_p = _round_up(Cout, co_tile)
    Wp = _round_up(W + 2, sub)                    # >= W+2, sublane aligned

    # Fold all 9 taps into K when Cin is small; for big Cin (>= 128 lanes of
    # contraction already) folding is moot and the LHS scratch would be 9x.
    fold = Cin_p <= 64
    k_dim = 9 * Cin_p

    TH = _pick_row_tile(H, Wp, co_tile, k_dim if fold else 0, ce)
    H_t = _round_up(H, TH)                        # pad H so TH tiles cover it
    Hp = H_t + 2
    grid = (N, H_t // TH, Cout_p // co_tile)

    # ---- glue (plain JAX): halo / alignment padding, BN folding ----
    x_pad = jnp.pad(x_nhwc, ((0, 0), (1, 1 + H_t - H), (1, Wp - W - 1),
                             (0, Cin_p - Cin))).astype(compute_dtype)

    # (Cout, Cin, 3, 3) -> (kh, kw, Cin_p, Cout_p) -> (9*Cin_p, Cout_p); row
    # index (kh*3 + kw)*Cin_p + ci matches the folded-LHS lane-block order.
    w_taps = jnp.transpose(weight, (2, 3, 1, 0))
    w_taps = jnp.pad(w_taps, ((0, 0), (0, 0), (0, Cin_p - Cin),
                              (0, Cout_p - Cout)))
    w_taps = w_taps.reshape(k_dim, Cout_p).astype(compute_dtype)

    scale = (gamma / jnp.sqrt(running_var + eps)).astype(jnp.float32)
    shift = (beta - running_mean * scale + bias * scale).astype(jnp.float32)
    scale2d = jnp.pad(scale, (0, Cout_p - Cout)).reshape(1, Cout_p)
    shift2d = jnp.pad(shift, (0, Cout_p - Cout)).reshape(1, Cout_p)

    scratch = [pltpu.VMEM((TH * Wp, co_tile), jnp.float32)]          # acc
    if fold:
        scratch.append(pltpu.VMEM((TH * Wp, k_dim), compute_dtype))  # folded LHS

    oe = jnp.dtype(out_dtype).itemsize
    cost = pl.CostEstimate(
        flops=2 * 9 * N * H_t * Wp * Cin_p * Cout_p,
        transcendentals=0,
        bytes_accessed=int(x_pad.size * ce + w_taps.size * ce
                           + (scale2d.size + shift2d.size) * 4
                           + N * H_t * Wp * Cout_p * oe))

    # Double-buffered blocks + scratch; raise the scoped-VMEM limit (v5e
    # defaults to 16 MiB) but cap at 64 MiB so the request is valid on v7x.
    vmem_est = (2 * Hp * Wp * Cin_p * ce
                + 2 * k_dim * co_tile * ce
                + 2 * TH * Wp * co_tile * oe
                + TH * Wp * co_tile * 4
                + (TH * Wp * k_dim * ce if fold else 0)
                + 4 * co_tile * 4
                + (2 << 20))
    vmem_limit = int(min(max(vmem_est, 32 << 20), 64 << 20))

    out = pl.pallas_call(
        _make_kernel(fold),
        out_shape=jax.ShapeDtypeStruct((N, H_t, Wp, Cout_p), out_dtype),
        grid_spec=pltpu.PrefetchScalarGridSpec(
            num_scalar_prefetch=0,
            grid=grid,
            in_specs=[
                pl.BlockSpec((1, Hp, Wp, Cin_p), lambda n, h, c: (n, 0, 0, 0)),
                pl.BlockSpec((k_dim, co_tile), lambda n, h, c: (0, c)),
                pl.BlockSpec((1, co_tile), lambda n, h, c: (0, c)),
                pl.BlockSpec((1, co_tile), lambda n, h, c: (0, c)),
            ],
            out_specs=pl.BlockSpec((1, TH, Wp, co_tile),
                                   lambda n, h, c: (n, h, 0, c)),
            scratch_shapes=scratch),
        compiler_params=pltpu.CompilerParams(
            dimension_semantics=("parallel", "parallel", "arbitrary"),
            vmem_limit_bytes=vmem_limit),
        cost_estimate=cost,
    )(x_pad, w_taps, scale2d, shift2d)

    return out[:, :H, :W, :Cout]


def conv_bn_relu(x_nchw, weight, bias, gamma, beta, running_mean, running_var,
                 eps=1e-5, compute_dtype=jnp.bfloat16, co_tile=None):
    """NCHW wrapper for parity with the PyTorch module.  Real pipelines should
    call conv_bn_relu_nhwc directly and stay NHWC end-to-end: these transposes
    are full-tensor HBM passes outside the kernel."""
    x_nhwc = jnp.transpose(x_nchw, (0, 2, 3, 1))
    y = conv_bn_relu_nhwc(x_nhwc, weight, bias, gamma, beta, running_mean,
                          running_var, eps=eps, compute_dtype=compute_dtype,
                          co_tile=co_tile)
    return jnp.transpose(y, (0, 3, 1, 2))


def _reference(x_nchw, weight, bias, gamma, beta, running_mean, running_var,
               eps=1e-5):
    """Pure-JAX reference replicating PyTorch Conv2d + BatchNorm2d(eval) + ReLU."""
    y = jax.lax.conv_general_dilated(
        x_nchw, weight, window_strides=(1, 1), padding=((1, 1), (1, 1)),
        dimension_numbers=("NCHW", "OIHW", "NCHW"))
    y = y + bias[None, :, None, None]
    y = (y - running_mean[None, :, None, None]) / jnp.sqrt(
        running_var[None, :, None, None] + eps)
    y = y * gamma[None, :, None, None] + beta[None, :, None, None]
    return jnp.maximum(y, 0.0)


if __name__ == "__main__":
    key = jax.random.PRNGKey(0)
    k_x, k_w, k_b, k_g, k_be, k_m, k_v = jax.random.split(key, 7)

    N, Cin, Cout, H, W = 2, 4, 8, 16, 16

    x = jax.random.normal(k_x, (N, Cin, H, W), dtype=jnp.float32)
    weight = 0.1 * jax.random.normal(k_w, (Cout, Cin, 3, 3), dtype=jnp.float32)
    bias = 0.1 * jax.random.normal(k_b, (Cout,), dtype=jnp.float32)
    gamma = 1.0 + 0.1 * jax.random.normal(k_g, (Cout,), dtype=jnp.float32)
    beta = 0.1 * jax.random.normal(k_be, (Cout,), dtype=jnp.float32)
    running_mean = 0.1 * jax.random.normal(k_m, (Cout,), dtype=jnp.float32)
    running_var = 0.5 + jnp.abs(jax.random.normal(k_v, (Cout,), dtype=jnp.float32))

    ref = _reference(x, weight, bias, gamma, beta, running_mean, running_var)

    # Default path: bf16 MXU operands, f32 accumulation + epilogue.
    out_bf16 = jax.block_until_ready(
        conv_bn_relu(x, weight, bias, gamma, beta, running_mean, running_var))
    np.testing.assert_allclose(np.asarray(out_bf16), np.asarray(ref),
                               rtol=5e-2, atol=8e-2)

    # f32 MXU operands: tight check of the kernel structure / tap indexing.
    out_f32 = jax.block_until_ready(
        conv_bn_relu(x, weight, bias, gamma, beta, running_mean, running_var,
                     compute_dtype=jnp.float32))
    np.testing.assert_allclose(np.asarray(out_f32), np.asarray(ref),
                               rtol=1e-4, atol=1e-4)

    print("KERNEL_OK")
</pallas_src>

<mosaic_0001>
module attributes {stable_mosaic.version = 11 : i64} {
  func.func @kernel(%arg0: i32, %arg1: i32, %arg2: i32, %arg3: memref<1x18x32x16xbf16, #tpu.memory_space<vmem>>, %arg4: memref<144x128xbf16, #tpu.memory_space<vmem>>, %arg5: memref<1x128xf32, #tpu.memory_space<vmem>>, %arg6: memref<1x128xf32, #tpu.memory_space<vmem>>, %arg7: memref<1x16x32x128xf32, #tpu.memory_space<vmem>>, %arg8: memref<512x128xf32, #tpu.memory_space<vmem>>, %arg9: memref<512x144xbf16, #tpu.memory_space<vmem>>) attributes {dimension_semantics = [#tpu.dimension_semantics<parallel>, #tpu.dimension_semantics<parallel>, #tpu.dimension_semantics<arbitrary>], iteration_bounds = array<i64: 2, 1, 1>, scalar_prefetch = 0 : i64, scratch_operands = 2 : i64, tpu.core_type = #tpu.core_type<tc>, window_params = [{transform_indices = @transform_0, window_bounds = array<i64: 1, 18, 32, 16>}, {transform_indices = @transform_1, window_bounds = array<i64: 144, 128>}, {transform_indices = @transform_2, window_bounds = array<i64: 1, 128>}, {transform_indices = @transform_3, window_bounds = array<i64: 1, 128>}, {transform_indices = @transform_4, window_bounds = array<i64: 1, 16, 32, 128>}]} {
    %c16_i32 = arith.constant 16 : i32
    %0 = arith.muli %arg1, %c16_i32 : i32
    %c0_i32 = arith.constant 0 : i32
    %1 = arith.cmpi eq, %arg2, %c0_i32 : i32
    %2 = arith.extui %1 : i1 to i32
    %c0_i32_0 = arith.constant 0 : i32
    %3 = arith.cmpi ne, %2, %c0_i32_0 : i32
    scf.if %3 {
      %c0_17 = arith.constant 0 : index
      %21 = arith.index_cast %0 : i32 to index
      %c0_18 = arith.constant 0 : index
      %c0_19 = arith.constant 0 : index
      %22 = vector.load %arg3[%c0_17, %21, %c0_18, %c0_19] : memref<1x18x32x16xbf16, #tpu.memory_space<vmem>>, vector<1x18x32x16xbf16>
      %23 = vector.shape_cast %22 : vector<1x18x32x16xbf16> to vector<18x32x16xbf16>
      %24 = arith.extf %23 : vector<18x32x16xbf16> to vector<18x32x16xf32>
      %25 = vector.shape_cast %24 : vector<18x32x16xf32> to vector<576x16xf32>
      %c575_i32 = arith.constant 575 : i32
      %26 = tpu.dynamic_rotate %25 by %c575_i32 dim 0 : vector<576x16xf32>, i32 -> vector<576x16xf32>
      %c574_i32 = arith.constant 574 : i32
      %27 = tpu.dynamic_rotate %25 by %c574_i32 dim 0 : vector<576x16xf32>, i32 -> vector<576x16xf32>
      %28 = vector.extract_strided_slice %25 {offsets = [0, 0], sizes = [512, 16], strides = [1, 1]} : vector<576x16xf32> to vector<512x16xf32>
      %29 = vector.extract_strided_slice %26 {offsets = [0, 0], sizes = [512, 16], strides = [1, 1]} : vector<576x16xf32> to vector<512x16xf32>
      %30 = vector.extract_strided_slice %27 {offsets = [0, 0], sizes = [512, 16], strides = [1, 1]} : vector<576x16xf32> to vector<512x16xf32>
      %31 = vector.extract_strided_slice %25 {offsets = [32, 0], sizes = [512, 16], strides = [1, 1]} : vector<576x16xf32> to vector<512x16xf32>
      %32 = vector.extract_strided_slice %26 {offsets = [32, 0], sizes = [512, 16], strides = [1, 1]} : vector<576x16xf32> to vector<512x16xf32>
      %33 = vector.extract_strided_slice %27 {offsets = [32, 0], sizes = [512, 16], strides = [1, 1]} : vector<576x16xf32> to vector<512x16xf32>
      %34 = vector.extract_strided_slice %25 {offsets = [64, 0], sizes = [512, 16], strides = [1, 1]} : vector<576x16xf32> to vector<512x16xf32>
      %35 = vector.extract_strided_slice %26 {offsets = [64, 0], sizes = [512, 16], strides = [1, 1]} : vector<576x16xf32> to vector<512x16xf32>
      %36 = vector.extract_strided_slice %27 {offsets = [64, 0], sizes = [512, 16], strides = [1, 1]} : vector<576x16xf32> to vector<512x16xf32>
      %37 = tpu.concatenate %28, %29, %30, %31, %32, %33, %34, %35, %36 in 1 : vector<512x16xf32>, vector<512x16xf32>, vector<512x16xf32>, vector<512x16xf32>, vector<512x16xf32>, vector<512x16xf32>, vector<512x16xf32>, vector<512x16xf32>, vector<512x16xf32> -> vector<512x144xf32>
      %38 = arith.truncf %37 : vector<512x144xf32> to vector<512x144xbf16>
      %c0_20 = arith.constant 0 : index
      %c0_21 = arith.constant 0 : index
      %39 = vector.load %arg9[%c0_20, %c0_21] : memref<512x144xbf16, #tpu.memory_space<vmem>>, vector<512x144xbf16>
      tpu.vector_store %arg9[%c0_20, %c0_21], %38 {strides = array<i32>} : memref<512x144xbf16, #tpu.memory_space<vmem>>, vector<512x144xbf16>,
    } else {
    }
    %c0 = arith.constant 0 : index
    %c0_1 = arith.constant 0 : index
    %4 = vector.load %arg9[%c0, %c0_1] : memref<512x144xbf16, #tpu.memory_space<vmem>>, vector<512x144xbf16>
    %c0_2 = arith.constant 0 : index
    %c0_3 = arith.constant 0 : index
    %5 = vector.load %arg4[%c0_2, %c0_3] : memref<144x128xbf16, #tpu.memory_space<vmem>>, vector<144x128xbf16>
    %cst = arith.constant dense<0.000000e+00> : vector<512x128xf32>
    %6 = tpu.matmul %4, %5, %cst {dimension_numbers = #tpu.dot_dimension_numbers<[1], [0], [0], [1], [0, 0, 1, 1], [], []>} : vector<512x144xbf16>, vector<144x128xbf16>, vector<512x128xf32> -> vector<512x128xf32>
    %c0_4 = arith.constant 0 : index
    %c0_5 = arith.constant 0 : index
    %7 = vector.load %arg8[%c0_4, %c0_5] : memref<512x128xf32, #tpu.memory_space<vmem>>, vector<512x128xf32>
    tpu.vector_store %arg8[%c0_4, %c0_5], %6 {strides = array<i32>} : memref<512x128xf32, #tpu.memory_space<vmem>>, vector<512x128xf32>,
    %c0_6 = arith.constant 0 : index
    %c0_7 = arith.constant 0 : index
    %8 = vector.load %arg8[%c0_6, %c0_7] : memref<512x128xf32, #tpu.memory_space<vmem>>, vector<512x128xf32>
    %c0_8 = arith.constant 0 : index
    %c0_9 = arith.constant 0 : index
    %9 = vector.load %arg5[%c0_8, %c0_9] : memref<1x128xf32, #tpu.memory_space<vmem>>, vector<1x128xf32>
    %10 = vector.broadcast %9 : vector<1x128xf32> to vector<512x128xf32>
    %11 = arith.mulf %8, %10 : vector<512x128xf32>
    %c0_10 = arith.constant 0 : index
    %c0_11 = arith.constant 0 : index
    %12 = vector.load %arg6[%c0_10, %c0_11] : memref<1x128xf32, #tpu.memory_space<vmem>>, vector<1x128xf32>
    %13 = vector.broadcast %12 : vector<1x128xf32> to vector<512x128xf32>
    %14 = arith.addf %11, %13 : vector<512x128xf32>
    %cst_12 = arith.constant 0.000000e+00 : f32
    %15 = vector.broadcast %cst_12 : f32 to vector<512x128xf32>
    %16 = arith.maximumf %14, %15 : vector<512x128xf32>
    %17 = vector.shape_cast %16 : vector<512x128xf32> to vector<16x32x128xf32>
    %c0_13 = arith.constant 0 : index
    %c0_14 = arith.constant 0 : index
    %c0_15 = arith.constant 0 : index
    %c0_16 = arith.constant 0 : index
    %18 = vector.load %arg7[%c0_13, %c0_14, %c0_15, %c0_16] : memref<1x16x32x128xf32, #tpu.memory_space<vmem>>, vector<1x16x32x128xf32>
    %19 = vector.shape_cast %18 : vector<1x16x32x128xf32> to vector<16x32x128xf32>
    %20 = vector.shape_cast %17 : vector<16x32x128xf32> to vector<1x16x32x128xf32>
    tpu.vector_store %arg7[%c0_13, %c0_14, %c0_15, %c0_16], %20 {strides = array<i32>} : memref<1x16x32x128xf32, #tpu.memory_space<vmem>>, vector<1x16x32x128xf32>,
    return
  }
  func.func @transform_0(%arg0: i32, %arg1: i32, %arg2: i32) -> (i32, i32, i32, i32) {
    %c0_i32 = arith.constant 0 : i32
    %c0_i32_0 = arith.constant 0 : i32
    %c0_i32_1 = arith.constant 0 : i32
    %c0_i32_2 = arith.constant 0 : i32
    return %arg0, %c0_i32, %c0_i32_0, %c0_i32_1 : i32, i32, i32, i32
  }
  func.func @transform_1(%arg0: i32, %arg1: i32, %arg2: i32) -> (i32, i32) {
    %c0_i32 = arith.constant 0 : i32
    %c0_i32_0 = arith.constant 0 : i32
    return %c0_i32, %arg2 : i32, i32
  }
  func.func @transform_2(%arg0: i32, %arg1: i32, %arg2: i32) -> (i32, i32) {
    %c0_i32 = arith.constant 0 : i32
    %c0_i32_0 = arith.constant 0 : i32
    return %c0_i32, %arg2 : i32, i32
  }
  func.func @transform_3(%arg0: i32, %arg1: i32, %arg2: i32) -> (i32, i32) {
    %c0_i32 = arith.constant 0 : i32
    %c0_i32_0 = arith.constant 0 : i32
    return %c0_i32, %arg2 : i32, i32
  }
  func.func @transform_4(%arg0: i32, %arg1: i32, %arg2: i32) -> (i32, i32, i32, i32) {
    %c0_i32 = arith.constant 0 : i32
    %c0_i32_0 = arith.constant 0 : i32
    return %arg0, %arg1, %c0_i32, %arg2 : i32, i32, i32, i32
  }
}

</mosaic_0001>

<bundles_post_ra>
// kernel: tpu_custom_call.1
= control target key start
LH: loop header
LB: loop body
LE: loop exit
PB: predicated region body
PF: predicated region fallthrough
CT: control target
= control target key end

     0   :  { %9 = vsyncpa [#allocation5], 0  ;;  %s8650_s0 = inlined_call_operand.vmem [shape: bf16[2,18,32,16], index: 0, kind: input, shape index: {}]   ;;  %s8651_s1 = inlined_call_operand.vmem [shape: bf16[144,128], index: 1, kind: input, shape index: {}]   ;;  %s8652_s2 = inlined_call_operand.vmem [shape: f32[1,128], index: 2, kind: input, shape index: {}]   ;;  %s8653_s3 = inlined_call_operand.vmem [shape: f32[1,128], index: 3, kind: input, shape index: {}]   ;;  %s8654_s4 = inlined_call_operand.hbm [shape: f32[2,16,32,128], index: 4, kind: output, shape index: {}]  }
   0x1   :  { %11 = vsyncpa [#allocation5 + $0x1], 0  ;;  %s5468_s15 = smov 0   ;;  %s5470_s16 = smov 0  }
   0x2   :  { %s5472_s17 = smov 0   ;;  %s5474_s18 = smov 0  }
   0x3   :  { %s5476_s19 = smov 0   ;;  %s5478_s20 = smov 0  }
   0x4 LB: > { %s3901_s21 = sadd.s32 4294967295, %s5430_s20   ;;  %s3902_s22 = sadd.s32 4294967294, %s5430_s20   ;;  %s5430_s20 = sphi %s5478_s20, %s17_s20   ;;  %s5426_s19 = sphi %s5476_s19, %s9562_s19   ;;  %s5422_s18 = sphi %s5474_s18, %s9561_s18   ;;  %s5418_s17 = sphi %s5472_s17, %s9560_s17   ;;  %s5414_s16 = sphi %s5470_s16, %s9559_s16   ;;  %s5410_s15 = sphi %s5468_s15, %s9558_s15  }
   0x5   : > { %s36_s23 = sadd.s32 1, %s5426_s19  ;;  %s151_s24 = sadd.s32 1, %s5418_s17 }
   0x6   : > { %p38_p0 = scmp.ge.s32.totalorder %s36_s23, 2  ;;  %p161_p1 = scmp.ne.s32.totalorder %s5418_s17, %s5414_s16 }
   0x7   : > { %p162_p2 = scmp.eq.s32.totalorder %s3901_s21, 1  ;;  %p167_p3 = scmp.ne.s32.totalorder %s5414_s16, %s5410_s15 }
   0x8   : > { %s9564_s23 = smov (%p38_p0, %s36_s23), 0  ;;  %p168_p5 = scmp.eq.s32.totalorder %s3902_s22, 1 }
   0x9   : > { %p5508_p4 = por %p162_p2, %p161_p1  ;;  %s144_s26 = ssub.s32 %s5426_s19, %s9564_s23 }
   0xa   : > { %p3908_p6 = scmp.ge.s32.totalorder %s5430_s20, 1  ;;  %p149_p7 = scmp.eq.s32.totalorder %s144_s26, 0 }
   0xb   : > { %p5515_p8 = por %p168_p5, %p167_p3  ;;  %p213_p9 = scmp.lt.s32.totalorder %s5430_s20, 3 }
   0xc   : > { %s5521_s28 = scalar_select %p149_p7, %s5418_s17, %s151_s24  }
   0xd   : > { %p214_p10 = pnand %p3908_p6, %p213_p9 }
   0xf   : > { %217 = sbr.rel (%p214_p10) target bundleno = 837 (0x345), region = 36 }
  0x16   : > { %p249_p11 = scmp.lt.s32.totalorder %s5422_s18, 1  ;;  %v490_v0 = vlaneseq  ;;  %s5432_s8 = smov 16   ;;  %vm2262_vm2 = vcmask 130048   ;;  %vm2327_vm3 = vcmask 261120   ;;  %vm2392_vm4 = vcmask 392192  }
  0x17   : > { %s5433_s9 = smov 32   ;;  %s5434_s10 = smov 48   ;;  %vm2457_vm5 = vcmask 523264   ;;  %vm2522_vm6 = vcmask 654336   ;;  %vm2587_vm7 = vcmask 785408   ;;  %vm2652_vm8 = vcmask 916480  }
  0x18   : > { %s250_s29 = scalar_select %p249_p11, %s5422_s18, 1  ;;  %v5525_v1 = vshrl.u32 %v490_v0, 7 }
  0x19   : > { %s5435_s11 = smov 64   ;;  %s5437_s22 = smov 80  }
  0x1a   : > { %8953 = vst [vmem:[#allocation7_spill] sm:$0xff] %v5525_v1  ;;  %s4157_s30 = smul.u32 288, %s250_s29  ;;  %vm492_vm0 = vcmp.lt.s32.totalorder %v5525_v1, 7  ;;  %vm637_vm1 = vcmp.lt.s32.totalorder %v5525_v1, 6  ;;  %s5438_s24 = smov 96  }
  0x1b   : > { %s5439_s26 = smov 112  }
  0x1c   : > { %s5530_s7 = scalar_lea.vmem %s8650_s0, %s4157_s30 }
  0x1d   : > { %v4105_v2 = vld [vmem:[%s5530_s7 + $0x10] sm:$0xff]   ;;  %v4106_v3 = vld [vmem:[%s5530_s7 + $0x18] sm:$0xff]   ;;  %v3961_v4 = vld [vmem:[%s5530_s7] sm:$0xff]  }
  0x1e   : > { %v5536_v5 = vunpack.c.l.bf16 %v4105_v2  ;;  %v5538_v6 = vunpack.c.h.bf16 %v4105_v2  ;;  %v5540_v7 = vunpack.c.l.bf16 %v4106_v3  ;;  %v5542_v8 = vunpack.c.h.bf16 %v4106_v3  ;;  %v4104_v9 = vld [vmem:[%s5530_s7 + $0x8] sm:$0xff]   ;;  %v4107_v10 = vld [vmem:[%s5530_s7 + $0x20] sm:$0xff]   ;;  %v4109_v31 = vld [vmem:[%s5530_s7 + $0x30] sm:$0xff]  }
  0x1f   : > { %v5546_v11 = vunpack.c.l.bf16 %v3961_v4  ;;  %v5548_v12 = vunpack.c.h.bf16 %v3961_v4  ;;  %v5550_v13 = vunpack.c.l.bf16 %v4104_v9  ;;  %v5552_v14 = vunpack.c.h.bf16 %v4104_v9  ;;  %v4108_v27 = vld [vmem:[%s5530_s7 + $0x28] sm:$0xff]   ;;  %v4110_v32 = vld [vmem:[%s5530_s7 + $0x38] sm:$0xff]   ;;  %v4111_v37 = vld [vmem:[%s5530_s7 + $0x40] sm:$0xff]  }
  0x20   : > { %8954 = vst [vmem:[#allocation8_spill] sm:$0xff] %v5536_v5  ;;  %8955 = vst [vmem:[#allocation9_spill] sm:$0xff] %v5538_v6  ;;  %v422_v15 = vrot.slane %v5536_v5, 1  ;;  %v423_v16 = vrot.slane %v5538_v6, 1  ;;  %v424_v17 = vrot.slane %v5540_v7, 1  ;;  %v5557_v18 = vunpack.c.l.bf16 %v4107_v10  ;;  %v4112_v46 = vld [vmem:[%s5530_s7 + $0x48] sm:$0xff]  }
  0x21   : > { %8956 = vst [vmem:[#allocation10_spill] sm:$0xff] %v5540_v7  ;;  %8957 = vst [vmem:[#allocation11_spill] sm:$0xff] %v5542_v8  ;;  %v8655_v19 = vrot.slane %v5546_v11, 1  ;;  %v419_v20 = vrot.slane %v5548_v12, 1  ;;  %v420_v21 = vrot.slane %v5550_v13, 1  ;;  %v425_v22 = vrot.slane %v5542_v8, 1 }
  0x22   : > { %8958 = vst [vmem:[#allocation12_spill] sm:$0xff] %v5546_v11  ;;  %8959 = vst [vmem:[#allocation13_spill] sm:$0xff] %v5548_v12  ;;  %v558_v23 = vsel %vm492_vm0, %v423_v16, %v424_v17  ;;  %v559_v24 = vsel %vm492_vm0, %v422_v15, %v423_v16  ;;  %v426_v25 = vrot.slane %v5557_v18, 1  ;;  %v421_v26 = vrot.slane %v5552_v14, 1  ;;  %v4113_v63 = vld [vmem:[%s5530_s7 + $0x50] sm:$0xff]   ;;  %v4114_v9 = vld [vmem:[%s5530_s7 + $0x58] sm:$0xff]  }
  0x23   : > { %8960 = vst [vmem:[#allocation14_spill] sm:$0xff] %v5550_v13  ;;  %8961 = vst [vmem:[#allocation15_spill] sm:$0xff] %v5552_v14  ;;  %v5570_v28 = vpack.i.bf16 %v558_v23, %v559_v24  ;;  %v562_v29 = vsel %vm492_vm0, %v419_v20, %v420_v21  ;;  %v563_v30 = vsel %vm492_vm0, %v8655_v19, %v419_v20  ;;  %v5593_v40 = vunpack.c.l.bf16 %v4108_v27  ;;  %v4122_v19 = vld [vmem:[%s5530_s7 + $0x98] sm:$0xff]  }
  0x24   : > { %8962 = vst [vmem:[#allocation16_spill] sm:$0xff] %v5557_v18  ;;  %v4223_v33 = vpack.i.bf16 %v562_v29, %v563_v30  ;;  %v556_v34 = vsel %vm492_vm0, %v425_v22, %v426_v25  ;;  %v557_v35 = vsel %vm492_vm0, %v424_v17, %v425_v22  ;;  %v560_v36 = vsel %vm492_vm0, %v421_v26, %v422_v15 }
  0x25   : > { %8963 = vst [vmem:[#allocation17_spill] sm:$0xff] %v5570_v28  ;;  %4234 = vrot.lane.b32.xlu1 %v5570_v28, %s5432_s8  ;;  %v5589_v38 = vpack.i.bf16 %v556_v34, %v557_v35  ;;  %v561_v39 = vsel %vm492_vm0, %v420_v21, %v421_v26  ;;  %8965 = vst [vmem:[#allocation19_spill] sm:$0xff] %v5593_v40  ;;  %v5595_v41 = vunpack.c.h.bf16 %v4108_v27  ;;  %v5598_v43 = vunpack.c.l.bf16 %v4109_v31  ;;  %v4116_v21 = vld [vmem:[%s5530_s7 + $0x68] sm:$0xff]  }
  0x26   : > { %4224 = vrot.lane.b32.xlu0 %v4223_v33, %s5432_s8  ;;  %v4228_v42 = vpack.i.bf16 %v560_v36, %v561_v39  ;;  %v5600_v44 = vunpack.c.h.bf16 %v4107_v10  ;;  %v5602_v45 = vunpack.c.l.bf16 %v4110_v32  ;;  %v428_v47 = vrot.slane %v5593_v40, 1  ;;  %v4115_v10 = vld [vmem:[%s5530_s7 + $0x60] sm:$0xff]  }
  0x27   : > { %8964 = vst [vmem:[#allocation18_spill] sm:$0xff] %v5589_v38  ;;  %8966 = vst [vmem:[#allocation20_spill] sm:$0xff] %v5595_v41  ;;  %v429_v48 = vrot.slane %v5595_v41, 1  ;;  %v5607_v49 = vunpack.c.h.bf16 %v4110_v32  ;;  %v5609_v50 = vunpack.c.l.bf16 %v4111_v37  ;;  %v430_v51 = vrot.slane %v5598_v43, 1 }
  0x28   : > { %8967 = vst [vmem:[#allocation21_spill] sm:$0xff] %v5598_v43  ;;  %8968 = vst [vmem:[#allocation22_spill] sm:$0xff] %v5600_v44  ;;  %v427_v52 = vrot.slane %v5600_v44, 1  ;;  %v432_v53 = vrot.slane %v5602_v45, 1  ;;  %v5614_v54 = vunpack.c.h.bf16 %v4109_v31  ;;  %v5622_v58 = vunpack.c.l.bf16 %v4112_v46 }
  0x29   : > { %8969 = vst [vmem:[#allocation23_spill] sm:$0xff] %v5609_v50  ;;  %4239 = vrot.lane.b32.xlu1 %v5589_v38, %s5432_s8  ;;  %v553_v55 = vsel %vm492_vm0, %v428_v47, %v429_v48  ;;  %v433_v56 = vrot.slane %v5607_v49, 1  ;;  %v434_v57 = vrot.slane %v5609_v50, 1  ;;  %v552_v59 = vsel %vm492_vm0, %v429_v48, %v430_v51 }
  0x2a   : > { %8970 = vst [vmem:[#allocation24_spill] sm:$0xff] %v5622_v58  ;;  %4229 = vrot.lane.b32.xlu0 %v4228_v42, %s5432_s8  ;;  %v554_v60 = vsel %vm492_vm0, %v427_v52, %v428_v47  ;;  %v555_v61 = vsel %vm492_vm0, %v426_v25, %v427_v52  ;;  %v431_v62 = vrot.slane %v5614_v54, 1  ;;  %v5633_v0 = vpack.i.bf16 %v552_v59, %v553_v55  ;;  %v4118_v59 = vld [vmem:[%s5530_s7 + $0x78] sm:$0xff]  }
  0x2b   : > { %v5635_v2 = vpack.i.bf16 %v554_v60, %v555_v61  ;;  %v548_v3 = vsel %vm492_vm0, %v433_v56, %v434_v57  ;;  %v549_v4 = vsel %vm492_vm0, %v432_v53, %v433_v56  ;;  %v5649_v20 = vunpack.c.h.bf16 %v4112_v46  ;;  %v4119_v60 = vld [vmem:[%s5530_s7 + $0x80] sm:$0xff]  }
  0x2c   : > { %8971 = vst [vmem:[#allocation25_spill] sm:$0xff] %v5633_v0  ;;  %v5643_v15 = vpack.i.bf16 %v548_v3, %v549_v4  ;;  %v550_v16 = vsel %vm492_vm0, %v431_v62, %v432_v53  ;;  %v551_v17 = vsel %vm492_vm0, %v430_v51, %v431_v62  ;;  %v5656_v23 = vunpack.c.l.bf16 %v4113_v63  ;;  %v4117_v51 = vld [vmem:[%s5530_s7 + $0x70] sm:$0xff]   ;;  %v4120_v3 = vld [vmem:[%s5530_s7 + $0x88] sm:$0xff]  }
  0x2d   : > { %8972 = vst [vmem:[#allocation26_spill] sm:$0xff] %v5635_v2  ;;  %4249 = vrot.lane.b32.xlu1 %v5633_v0, %s5432_s8  ;;  %v5654_v22 = vpack.i.bf16 %v550_v16, %v551_v17  ;;  %v436_v24 = vrot.slane %v5622_v58, 1  ;;  %v5659_v25 = vunpack.c.h.bf16 %v4111_v37  ;;  %v437_v26 = vrot.slane %v5649_v20, 1 }
  0x2e   : > { %8973 = vst [vmem:[#allocation27_spill] sm:$0xff] %v5643_v15  ;;  %4244 = vrot.lane.b32.xlu0 %v5635_v2, %s5432_s8  ;;  %v5664_v27 = vunpack.c.l.bf16 %v4114_v9  ;;  %v5666_v29 = vunpack.c.h.bf16 %v4114_v9  ;;  %v5668_v30 = vunpack.c.l.bf16 %v4115_v10  ;;  %v438_v31 = vrot.slane %v5656_v23, 1  ;;  %v4125_v2 = vld [vmem:[%s5530_s7 + $0xb0] sm:$0xff]  }
  0x2f   : > { %8974 = vst [vmem:[#allocation28_spill] sm:$0xff] %v5654_v22  ;;  %v435_v32 = vrot.slane %v5659_v25, 1  ;;  %v5672_v33 = vunpack.c.h.bf16 %v4113_v63  ;;  %v5674_v34 = vunpack.c.l.bf16 %v4116_v21  ;;  %v545_v35 = vsel %vm492_vm0, %v436_v24, %v437_v26 }
  0x30   : > { %8975 = vst [vmem:[#allocation29_spill] sm:$0xff] %v5668_v30  ;;  %v440_v36 = vrot.slane %v5664_v27, 1  ;;  %v441_v37 = vrot.slane %v5666_v29, 1  ;;  %v442_v39 = vrot.slane %v5668_v30, 1  ;;  %v544_v42 = vsel %vm492_vm0, %v437_v26, %v438_v31 }
  0x31   : > { %8976 = vst [vmem:[#allocation30_spill] sm:$0xff] %v5672_v33  ;;  %4259 = vrot.lane.b32.xlu1 %v5643_v15, %s5432_s8  ;;  %v546_v46 = vsel %vm492_vm0, %v435_v32, %v436_v24  ;;  %v547_v47 = vsel %vm492_vm0, %v434_v57, %v435_v32  ;;  %v439_v48 = vrot.slane %v5672_v33, 1  ;;  %v5693_v52 = vpack.i.bf16 %v544_v42, %v545_v35 }
  0x32   : > { %4254 = vrot.lane.b32.xlu0 %v5654_v22, %s5432_s8  ;;  %v5695_v53 = vpack.i.bf16 %v546_v46, %v547_v47  ;;  %v540_v55 = vsel %vm492_vm0, %v441_v37, %v442_v39  ;;  %v541_v56 = vsel %vm492_vm0, %v440_v36, %v441_v37  ;;  %v5709_v63 = vunpack.c.h.bf16 %v4116_v21 }
  0x33   : > { %8977 = vst [vmem:[#allocation31_spill] sm:$0xff] %v5693_v52  ;;  %v5703_v61 = vpack.i.bf16 %v540_v55, %v541_v56  ;;  %v542_v57 = vsel %vm492_vm0, %v439_v48, %v440_v36  ;;  %v543_v62 = vsel %vm492_vm0, %v438_v31, %v439_v48  ;;  %v5714_v9 = vunpack.c.l.bf16 %v4117_v51 }
  0x34   : > { %8978 = vst [vmem:[#allocation32_spill] sm:$0xff] %v5695_v53  ;;  %v5712_v4 = vpack.i.bf16 %v542_v57, %v543_v62  ;;  %v444_v16 = vrot.slane %v5674_v34, 1  ;;  %v5717_v17 = vunpack.c.h.bf16 %v4115_v10  ;;  %v445_v24 = vrot.slane %v5709_v63, 1 }
  0x35   : > { %8979 = vst [vmem:[#allocation33_spill] sm:$0xff] %v5703_v61  ;;  %8981 = vst [vmem:[#allocation35_spill] sm:$0xff] %v5714_v9  ;;  %4269 = vrot.lane.b32.xlu1 %v5693_v52, %s5432_s8  ;;  %v5722_v26 = vunpack.c.l.bf16 %v4118_v59  ;;  %v5724_v31 = vunpack.c.h.bf16 %v4118_v59  ;;  %v5726_v21 = vunpack.c.l.bf16 %v4119_v60  ;;  %v446_v32 = vrot.slane %v5714_v9, 1  ;;  %v4121_v59 = vld [vmem:[%s5530_s7 + $0x90] sm:$0xff]  }
  0x36   : > { %8980 = vst [vmem:[#allocation34_spill] sm:$0xff] %v5712_v4  ;;  %8982 = vst [vmem:[#allocation36_spill] sm:$0xff] %v5717_v17  ;;  %4264 = vrot.lane.b32.xlu0 %v5695_v53, %s5432_s8  ;;  %v443_v10 = vrot.slane %v5717_v17, 1  ;;  %v5732_v35 = vunpack.c.h.bf16 %v4117_v51  ;;  %v5734_v36 = vunpack.c.l.bf16 %v4120_v3  ;;  %v537_v37 = vsel %vm492_vm0, %v444_v16, %v445_v24  ;;  %v4123_v53 = vld [vmem:[%s5530_s7 + $0xa0] sm:$0xff]  }
  0x37   : > { %8983 = vst [vmem:[#allocation37_spill] sm:$0xff] %v5722_v26  ;;  %8984 = vst [vmem:[#allocation38_spill] sm:$0xff] %v5724_v31  ;;  %v448_v42 = vrot.slane %v5722_v26, 1  ;;  %v449_v46 = vrot.slane %v5724_v31, 1  ;;  %v450_v47 = vrot.slane %v5726_v21, 1  ;;  %v536_v48 = vsel %vm492_vm0, %v445_v24, %v446_v32 }
  0x38   : > { %8985 = vst [vmem:[#allocation39_spill] sm:$0xff] %v5726_v21  ;;  %8986 = vst [vmem:[#allocation40_spill] sm:$0xff] %v5732_v35  ;;  %v538_v51 = vsel %vm492_vm0, %v443_v10, %v444_v16  ;;  %v539_v55 = vsel %vm492_vm0, %v442_v39, %v443_v10  ;;  %v447_v56 = vrot.slane %v5732_v35, 1  ;;  %v5751_v57 = vpack.i.bf16 %v536_v48, %v537_v37 }
  0x39   : > { %8987 = vst [vmem:[#allocation41_spill] sm:$0xff] %v5734_v36  ;;  %4279 = vrot.lane.b32.xlu1 %v5703_v61, %s5432_s8  ;;  %v5753_v62 = vpack.i.bf16 %v538_v51, %v539_v55  ;;  %v532_v24 = vsel %vm492_vm0, %v449_v46, %v450_v47  ;;  %v533_v16 = vsel %vm492_vm0, %v448_v42, %v449_v46  ;;  %v5769_v48 = vunpack.c.h.bf16 %v4120_v3  ;;  %v4124_v51 = vld [vmem:[%s5530_s7 + $0xa8] sm:$0xff]  }
  0x3a   : > { %8988 = vst [vmem:[#allocation42_spill] sm:$0xff] %v5751_v57  ;;  %4274 = vrot.lane.b32.xlu0 %v5712_v4, %s5432_s8  ;;  %v5763_v39 = vpack.i.bf16 %v532_v24, %v533_v16  ;;  %v534_v10 = vsel %vm492_vm0, %v447_v56, %v448_v42  ;;  %v535_v37 = vsel %vm492_vm0, %v446_v32, %v447_v56  ;;  %v5774_v61 = vunpack.c.l.bf16 %v4121_v59 }
  0x3b   : > { %8989 = vst [vmem:[#allocation43_spill] sm:$0xff] %v5753_v62  ;;  %8991 = vst [vmem:[#allocation45_spill] sm:$0xff] %v5769_v48  ;;  %v5772_v55 = vpack.i.bf16 %v534_v10, %v535_v37  ;;  %v452_v46 = vrot.slane %v5734_v36, 1  ;;  %v5777_v52 = vunpack.c.h.bf16 %v4119_v60  ;;  %v453_v24 = vrot.slane %v5769_v48, 1 }
  0x3c   : > { %8990 = vst [vmem:[#allocation44_spill] sm:$0xff] %v5763_v39  ;;  %8993 = vst [vmem:[#allocation47_spill] sm:$0xff] %v5774_v61  ;;  %v5780_v16 = vunpack.c.l.bf16 %v4122_v19  ;;  %v5782_v4 = vunpack.c.h.bf16 %v4122_v19  ;;  %v5784_v42 = vunpack.c.l.bf16 %v4123_v53  ;;  %v454_v3 = vrot.slane %v5774_v61, 1 }
  0x3d   : > { %8992 = vst [vmem:[#allocation46_spill] sm:$0xff] %v5772_v55  ;;  %8994 = vst [vmem:[#allocation48_spill] sm:$0xff] %v5777_v52  ;;  %4289 = vrot.lane.b32.xlu1 %v5751_v57, %s5432_s8  ;;  %v451_v32 = vrot.slane %v5777_v52, 1  ;;  %v5790_v56 = vunpack.c.h.bf16 %v4121_v59  ;;  %v5792_v60 = vunpack.c.l.bf16 %v4124_v51  ;;  %v529_v19 = vsel %vm492_vm0, %v452_v46, %v453_v24 }
  0x3e   : > { %8995 = vst [vmem:[#allocation49_spill] sm:$0xff] %v5780_v16  ;;  %8996 = vst [vmem:[#allocation50_spill] sm:$0xff] %v5782_v4  ;;  %4284 = vrot.lane.b32.xlu0 %v5753_v62, %s5432_s8  ;;  %v456_v10 = vrot.slane %v5780_v16, 1  ;;  %v457_v37 = vrot.slane %v5782_v4, 1  ;;  %v458_v57 = vrot.slane %v5784_v42, 1  ;;  %v528_v59 = vsel %vm492_vm0, %v453_v24, %v454_v3  ;;  %v4127_v4 = vld [vmem:[%s5530_s7 + $0xc0] sm:$0xff]  }
  0x3f   : > { %8997 = vst [vmem:[#allocation51_spill] sm:$0xff] %v5784_v42  ;;  %8998 = vst [vmem:[#allocation52_spill] sm:$0xff] %v5790_v56  ;;  %v530_v22 = vsel %vm492_vm0, %v451_v32, %v452_v46  ;;  %v531_v15 = vsel %vm492_vm0, %v450_v47, %v451_v32  ;;  %v455_v62 = vrot.slane %v5790_v56, 1  ;;  %v5809_v0 = vpack.i.bf16 %v528_v59, %v529_v19  ;;  %v4126_v42 = vld [vmem:[%s5530_s7 + $0xb8] sm:$0xff]   ;;  %v4128_v32 = vld [vmem:[%s5530_s7 + $0xc8] sm:$0xff]  }
  0x40   : > { %8999 = vst [vmem:[#allocation53_spill] sm:$0xff] %v5792_v60  ;;  %v5811_v28 = vpack.i.bf16 %v530_v22, %v531_v15  ;;  %v524_v38 = vsel %vm492_vm0, %v457_v37, %v458_v57  ;;  %v525_v24 = vsel %vm492_vm0, %v456_v10, %v457_v37  ;;  %v5827_v22 = vunpack.c.h.bf16 %v4124_v51  ;;  %v4131_v56 = vld [vmem:[%s5530_s7 + $0xe0] sm:$0xff]  }
  0x41   : > { %9000 = vst [vmem:[#allocation54_spill] sm:$0xff] %v5809_v0  ;;  %4299 = vrot.lane.b32.xlu1 %v5763_v39, %s5432_s8  ;;  %v5821_v46 = vpack.i.bf16 %v524_v38, %v525_v24  ;;  %v526_v47 = vsel %vm492_vm0, %v455_v62, %v456_v10  ;;  %v527_v15 = vsel %vm492_vm0, %v454_v3, %v455_v62  ;;  %v5834_v37 = vunpack.c.l.bf16 %v4125_v2 }
  0x42   : > { %9001 = vst [vmem:[#allocation55_spill] sm:$0xff] %v5811_v28  ;;  %9003 = vst [vmem:[#allocation57_spill] sm:$0xff] %v5827_v22  ;;  %4294 = vrot.lane.b32.xlu0 %v5772_v55, %s5432_s8  ;;  %v5832_v19 = vpack.i.bf16 %v526_v47, %v527_v15  ;;  %v460_v59 = vrot.slane %v5792_v60, 1  ;;  %v5837_v38 = vunpack.c.h.bf16 %v4123_v53  ;;  %v461_v24 = vrot.slane %v5827_v22, 1 }
  0x43   : > { %9002 = vst [vmem:[#allocation56_spill] sm:$0xff] %v5821_v46  ;;  %9005 = vst [vmem:[#allocation59_spill] sm:$0xff] %v5834_v37  ;;  %v5840_v10 = vunpack.c.l.bf16 %v4126_v42  ;;  %v5842_v39 = vunpack.c.h.bf16 %v4126_v42  ;;  %v5844_v62 = vunpack.c.l.bf16 %v4127_v4  ;;  %v462_v51 = vrot.slane %v5834_v37, 1 }
  0x44   : > { %9004 = vst [vmem:[#allocation58_spill] sm:$0xff] %v5832_v19  ;;  %9006 = vst [vmem:[#allocation60_spill] sm:$0xff] %v5837_v38  ;;  %v459_v3 = vrot.slane %v5837_v38, 1  ;;  %v5848_v47 = vunpack.c.h.bf16 %v4125_v2  ;;  %v5850_v15 = vunpack.c.l.bf16 %v4128_v32  ;;  %v521_v53 = vsel %vm492_vm0, %v460_v59, %v461_v24 }
  0x45   : > { %9007 = vst [vmem:[#allocation61_spill] sm:$0xff] %v5840_v10  ;;  %9008 = vst [vmem:[#allocation62_spill] sm:$0xff] %v5842_v39  ;;  %4309 = vrot.lane.b32.xlu1 %v5809_v0, %s5432_s8  ;;  %v464_v42 = vrot.slane %v5840_v10, 1  ;;  %v465_v55 = vrot.slane %v5842_v39, 1  ;;  %v466_v37 = vrot.slane %v5844_v62, 1  ;;  %v520_v2 = vsel %vm492_vm0, %v461_v24, %v462_v51  ;;  %v4129_v10 = vld [vmem:[%s5530_s7 + $0xd0] sm:$0xff]  }
  0x46   : > { %9009 = vst [vmem:[#allocation63_spill] sm:$0xff] %v5844_v62  ;;  %9010 = vst [vmem:[#allocation64_spill] sm:$0xff] %v5848_v47  ;;  %4304 = vrot.lane.b32.xlu0 %v5811_v28, %s5432_s8  ;;  %v522_v38 = vsel %vm492_vm0, %v459_v3, %v460_v59  ;;  %v523_v0 = vsel %vm492_vm0, %v458_v57, %v459_v3  ;;  %v463_v22 = vrot.slane %v5848_v47, 1  ;;  %v4130_v62 = vld [vmem:[%s5530_s7 + $0xd8] sm:$0xff]   ;;  %v5881_v16 = vunpack.c.h.bf16 %v4128_v32  ;;  %v4132_v57 = vld [vmem:[%s5530_s7 + $0xe8] sm:$0xff]  }
  0x47   : > { %9011 = vst [vmem:[#allocation65_spill] sm:$0xff] %v5850_v15  ;;  %v5869_v60 = vpack.i.bf16 %v520_v2, %v521_v53  ;;  %v5871_v39 = vpack.i.bf16 %v522_v38, %v523_v0  ;;  %v516_v28 = vsel %vm492_vm0, %v465_v55, %v466_v37  ;;  %v517_v24 = vsel %vm492_vm0, %v464_v42, %v465_v55  ;;  %v4133_v47 = vld [vmem:[%s5530_s7 + $0xf0] sm:$0xff]  }
  0x48   : > { %v518_v59 = vsel %vm492_vm0, %v463_v22, %v464_v42  ;;  %9014 = vst [vmem:[#allocation68_spill] sm:$0xff] %v5881_v16  ;;  %v519_v0 = vsel %vm492_vm0, %v462_v51, %v463_v22  ;;  %v5888_v38 = vunpack.c.l.bf16 %v4129_v10  ;;  %v468_v3 = vrot.slane %v5850_v15, 1 }
  0x49   : > { %9012 = vst [vmem:[#allocation66_spill] sm:$0xff] %v5869_v60  ;;  %9013 = vst [vmem:[#allocation67_spill] sm:$0xff] %v5871_v39  ;;  %4319 = vrot.lane.b32.xlu1 %v5821_v46, %s5432_s8  ;;  %v5891_v53 = vunpack.c.h.bf16 %v4127_v4  ;;  %v469_v55 = vrot.slane %v5881_v16, 1  ;;  %v5896_v32 = vunpack.c.l.bf16 %v4130_v62  ;;  %v5898_v42 = vunpack.c.h.bf16 %v4130_v62 }
  0x4a   : > { %9015 = vst [vmem:[#allocation69_spill] sm:$0xff] %v5888_v38  ;;  %4314 = vrot.lane.b32.xlu0 %v5832_v19, %s5432_s8  ;;  %v5900_v2 = vunpack.c.l.bf16 %v4131_v56  ;;  %v470_v22 = vrot.slane %v5888_v38, 1  ;;  %v5904_v46 = vunpack.c.h.bf16 %v4129_v10  ;;  %v5906_v4 = vunpack.c.l.bf16 %v4132_v57 }
  0x4b   : > { %9016 = vst [vmem:[#allocation70_spill] sm:$0xff] %v5891_v53  ;;  %9017 = vst [vmem:[#allocation71_spill] sm:$0xff] %v5896_v32  ;;  %v467_v51 = vrot.slane %v5891_v53, 1  ;;  %v513_v19 = vsel %vm492_vm0, %v468_v3, %v469_v55  ;;  %v472_v16 = vrot.slane %v5896_v32, 1  ;;  %v473_v62 = vrot.slane %v5898_v42, 1 }
  0x4c   : > { %9018 = vst [vmem:[#allocation72_spill] sm:$0xff] %v5898_v42  ;;  %9019 = vst [vmem:[#allocation73_spill] sm:$0xff] %v5900_v2  ;;  %v474_v15 = vrot.slane %v5900_v2, 1  ;;  %v5915_v38 = vpack.i.bf16 %v516_v28, %v517_v24  ;;  %v512_v10 = vsel %vm492_vm0, %v469_v55, %v470_v22  ;;  %v471_v53 = vrot.slane %v5904_v46, 1  ;;  %v4134_v24 = vld [vmem:[%s5530_s7 + $0xf8] sm:$0xff]  }
  0x4d   : > { %9020 = vst [vmem:[#allocation74_spill] sm:$0xff] %v5904_v46  ;;  %9021 = vst [vmem:[#allocation75_spill] sm:$0xff] %v5906_v4  ;;  %4329 = vrot.lane.b32.xlu1 %v5869_v60, %s5432_s8  ;;  %v5923_v52 = vpack.i.bf16 %v518_v59, %v519_v0  ;;  %v5925_v32 = vpack.i.bf16 %v512_v10, %v513_v19  ;;  %v514_v2 = vsel %vm492_vm0, %v467_v51, %v468_v3  ;;  %v5933_v60 = vld [vmem:[%s5530_s7 + $0x100] sm:$0xff]  }
  0x4e   : > { %9022 = vst [vmem:[#allocation76_spill] sm:$0xff] %v5915_v38  ;;  %4324 = vrot.lane.b32.xlu0 %v5871_v39, %s5432_s8  ;;  %v515_v28 = vsel %vm492_vm0, %v466_v37, %v467_v51  ;;  %9025 = vst [vmem:[#allocation79_spill] sm:$0xff] %v5933_v60  ;;  %v508_v55 = vsel %vm492_vm0, %v473_v62, %v474_v15  ;;  %v509_v46 = vsel %vm492_vm0, %v472_v16, %v473_v62  ;;  %v9150_v1 = vld [vmem:[#allocation65_spill] sm:$0xff] }
  0x4f   : > { %9023 = vst [vmem:[#allocation77_spill] sm:$0xff] %v5923_v52  ;;  %9024 = vst [vmem:[#allocation78_spill] sm:$0xff] %v5925_v32  ;;  %v510_v59 = vsel %vm492_vm0, %v471_v53, %v472_v16  ;;  %v5941_v19 = vunpack.c.h.bf16 %v4132_v57  ;;  %v511_v0 = vsel %vm492_vm0, %v470_v22, %v471_v53  ;;  %v5945_v3 = vunpack.c.l.bf16 %v4133_v47 }
  0x50   : > { %v476_v37 = vrot.slane %v5906_v4, 1  ;;  %v5948_v51 = vunpack.c.h.bf16 %v4131_v56  ;;  %v5953_v62 = vunpack.c.l.bf16 %v4134_v24  ;;  %v5955_v39 = vunpack.c.h.bf16 %v4134_v24 }
  0x51   : > { %9026 = vst [vmem:[#allocation80_spill] sm:$0xff] %v5941_v19  ;;  %9027 = vst [vmem:[#allocation81_spill] sm:$0xff] %v5945_v3  ;;  %4339 = vrot.lane.b32.xlu1 %v5915_v38, %s5432_s8  ;;  %v477_v10 = vrot.slane %v5941_v19, 1  ;;  %v5958_v16 = vunpack.c.l.bf16 %v5933_v60  ;;  %v5962_v57 = vpack.i.bf16 %v514_v2, %v515_v28  ;;  %v478_v56 = vrot.slane %v5945_v3, 1 }
  0x52   : > { %9028 = vst [vmem:[#allocation82_spill] sm:$0xff] %v5948_v51  ;;  %9029 = vst [vmem:[#allocation83_spill] sm:$0xff] %v5953_v62  ;;  %4334 = vrot.lane.b32.xlu0 %v5923_v52, %s5432_s8  ;;  %v475_v53 = vrot.slane %v5948_v51, 1  ;;  %v5966_v22 = vunpack.c.h.bf16 %v4133_v47  ;;  %v5968_v38 = vpack.i.bf16 %v508_v55, %v509_v46  ;;  %v480_v19 = vrot.slane %v5953_v62, 1 }
  0x53   : > { %9030 = vst [vmem:[#allocation84_spill] sm:$0xff] %v5955_v39  ;;  %9031 = vst [vmem:[#allocation85_spill] sm:$0xff] %v5958_v16  ;;  %v481_v24 = vrot.slane %v5955_v39, 1  ;;  %v8743_v60 = vrot.slane %v5958_v16, 1  ;;  %v5973_v4 = vpack.i.bf16 %v510_v59, %v511_v0  ;;  %v504_v2 = vsel %vm492_vm0, %v477_v10, %v478_v56 }
  0x54   : > { %9032 = vst [vmem:[#allocation86_spill] sm:$0xff] %v5962_v57  ;;  %9033 = vst [vmem:[#allocation87_spill] sm:$0xff] %v5966_v22  ;;  %v505_v28 = vsel %vm492_vm0, %v476_v37, %v477_v10  ;;  %v479_v52 = vrot.slane %v5966_v22, 1  ;;  %v506_v46 = vsel %vm492_vm0, %v475_v53, %v476_v37  ;;  %v507_v47 = vsel %vm492_vm0, %v474_v15, %v475_v53 }
  0x55   : > { %9034 = vst [vmem:[#allocation88_spill] sm:$0xff] %v5968_v38  ;;  %9035 = vst [vmem:[#allocation89_spill] sm:$0xff] %v5973_v4  ;;  %4349 = vrot.lane.b32.xlu1 %v5925_v32, %s5432_s8  ;;  %v500_v55 = vsel %vm492_vm0, %v481_v24, %v8743_v60  ;;  %v567_v59 = vrot.slane %v5550_v13, 2  ;;  %v501_v0 = vsel %vm492_vm0, %v480_v19, %v481_v24  ;;  %v568_v15 = vrot.slane %v5552_v14, 2 }
  0x56   : > { %4344 = vrot.lane.b32.xlu0 %v5962_v57, %s5432_s8  ;;  %v502_v10 = vsel %vm492_vm0, %v479_v52, %v480_v19  ;;  %v503_v37 = vsel %vm492_vm0, %v478_v56, %v479_v52  ;;  %v6000_v53 = vpack.i.bf16 %v504_v2, %v505_v28  ;;  %v569_v60 = vrot.slane %v5536_v5, 2 }
  0x57   : > { %v566_v13 = vrot.slane %v5548_v12, 2  ;;  %v571_v57 = vrot.slane %v5540_v7, 2  ;;  %v572_v24 = vrot.slane %v5542_v8, 2  ;;  %v573_v32 = vrot.slane %v5557_v18, 2 }
  0x58   : > { %9036 = vst [vmem:[#allocation90_spill] sm:$0xff] %v6000_v53  ;;  %v6010_v52 = vpack.i.bf16 %v506_v46, %v507_v47  ;;  %v6012_v19 = vpack.i.bf16 %v500_v55, %v501_v0  ;;  %v6014_v56 = vpack.i.bf16 %v502_v10, %v503_v37  ;;  %v570_v2 = vrot.slane %v5538_v6, 2 }
  0x59   : > { %4359 = vrot.lane.b32.xlu1 %v5968_v38, %s5432_s8  ;;  %v706_v28 = vsel %vm637_vm1, %v567_v59, %v568_v15  ;;  %v701_v38 = vsel %vm637_vm1, %v572_v24, %v573_v32  ;;  %v702_v46 = vsel %vm637_vm1, %v571_v57, %v572_v24  ;;  %v705_v47 = vsel %vm637_vm1, %v568_v15, %v569_v60 }
  0x5a   : > { %9037 = vst [vmem:[#allocation91_spill] sm:$0xff] %v6010_v52  ;;  %9038 = vst [vmem:[#allocation92_spill] sm:$0xff] %v6012_v19  ;;  %4354 = vrot.lane.b32.xlu0 %v5973_v4, %s5432_s8  ;;  %v6028_v55 = vpack.i.bf16 %v701_v38, %v702_v46  ;;  %v703_v0 = vsel %vm637_vm1, %v570_v2, %v571_v57  ;;  %v704_v10 = vsel %vm637_vm1, %v569_v60, %v570_v2 }
  0x5b   : > { %9039 = vst [vmem:[#allocation93_spill] sm:$0xff] %v6014_v56  ;;  %v707_v37 = vsel %vm637_vm1, %v566_v13, %v567_v59  ;;  %v6036_v14 = vpack.i.bf16 %v703_v0, %v704_v10  ;;  %v575_v12 = vrot.slane %v5593_v40, 2  ;;  %v576_v24 = vrot.slane %v5595_v41, 2 }
  0x5c   : > { %9040 = vst [vmem:[#allocation94_spill] sm:$0xff] %v6028_v55  ;;  %v577_v38 = vrot.slane %v5598_v43, 2  ;;  %v574_v15 = vrot.slane %v5600_v44, 2  ;;  %v579_v57 = vrot.slane %v5602_v45, 2  ;;  %v580_v60 = vrot.slane %v5607_v49, 2 }
  0x5d   : > { %9041 = vst [vmem:[#allocation95_spill] sm:$0xff] %v6036_v14  ;;  %4369 = vrot.lane.b32.xlu1 %v6000_v53, %s5432_s8  ;;  %v4388_v59 = vpack.i.bf16 %v705_v47, %v706_v28  ;;  %v9042_v2 = vrot.slane %v5546_v11, 2  ;;  %v581_v0 = vrot.slane %v5609_v50, 2  ;;  %v578_v10 = vrot.slane %v5614_v54, 2 }
  0x5e   : > { %4364 = vrot.lane.b32.xlu0 %v6010_v52, %s5432_s8  ;;  %v697_v53 = vsel %vm637_vm1, %v576_v24, %v577_v38  ;;  %v698_v4 = vsel %vm637_vm1, %v575_v12, %v576_v24  ;;  %v699_v43 = vsel %vm637_vm1, %v574_v15, %v575_v12  ;;  %v700_v28 = vsel %vm637_vm1, %v573_v32, %v574_v15 }
  0x5f   : > { %v708_v46 = vsel %vm637_vm1, %v9042_v2, %v566_v13  ;;  %v2720_v47 = vpack.c.bf16 %v697_v53, %v698_v4  ;;  %v2718_v52 = vpack.c.bf16 %v699_v43, %v700_v28  ;;  %v694_v13 = vsel %vm637_vm1, %v579_v57, %v580_v60 }
  0x60   : > { %v583_v2 = vrot.slane %v5622_v58, 2  ;;  %v693_v11 = vsel %vm637_vm1, %v580_v60, %v581_v0  ;;  %v6071_v24 = vsel %vm637_vm1, %v578_v10, %v579_v57  ;;  %v696_v12 = vsel %vm637_vm1, %v577_v38, %v578_v10 }
  0x61   : > { %4379 = vrot.lane.b32.xlu1 %v6012_v19, %s5432_s8  ;;  %v584_v32 = vrot.slane %v5649_v20, 2  ;;  %v4383_v15 = vpack.i.bf16 %v707_v37, %v708_v46  ;;  %2784 = vst.msk [vmem:[#allocation3 + $0x18] sm:$0xff] %vm2262_vm2, %v2720_v47  ;;  %2782 = vst.msk [vmem:[#allocation3 + $0x8] sm:$0xff] %vm2262_vm2, %v2718_v52  ;;  %v2724_v19 = vpack.c.bf16 %v693_v11, %v694_v13  ;;  %v585_v50 = vrot.slane %v5656_v23, 2 }
  0x62   : > { %4374 = vrot.lane.b32.xlu0 %v6014_v56, %s5432_s8  ;;  %v2722_v60 = vpack.c.bf16 %v6071_v24, %v696_v12  ;;  %v582_v57 = vrot.slane %v5659_v25, 2  ;;  %v587_v58 = vrot.slane %v5664_v27, 2  ;;  %v588_v38 = vrot.slane %v5666_v29, 2 }
  0x63   : > { %2788 = vst.msk [vmem:[#allocation3 + $0x38] sm:$0xff] %vm2262_vm2, %v2724_v19  ;;  %v589_v37 = vrot.slane %v5668_v30, 2  ;;  %v586_v46 = vrot.slane %v5672_v33, 2  ;;  %v689_v52 = vsel %vm637_vm1, %v584_v32, %v585_v50  ;;  %v690_v10 = vsel %vm637_vm1, %v583_v2, %v584_v32 }
  0x64   : > { %2786 = vst.msk [vmem:[#allocation3 + $0x28] sm:$0xff] %vm2262_vm2, %v2722_v60  ;;  %v691_v19 = vsel %vm637_vm1, %v582_v57, %v583_v2  ;;  %v692_v47 = vsel %vm637_vm1, %v581_v0, %v582_v57  ;;  %v2728_v60 = vpack.c.bf16 %v689_v52, %v690_v10  ;;  %v591_v30 = vrot.slane %v5674_v34, 2 }
  0x65   : > { %4389 = vrot.lane.b32.xlu1 %v4388_v59, %s5433_s9  ;;  %v2726_v56 = vpack.c.bf16 %v691_v19, %v692_v47  ;;  %v592_v59 = vrot.slane %v5709_v63, 2  ;;  %v6103_v33 = vsel %vm637_vm1, %v588_v38, %v589_v37  ;;  %v6107_v32 = vsel %vm637_vm1, %v587_v58, %v588_v38 }
  0x66   : > { %4384 = vrot.lane.b32.xlu0 %v4383_v15, %s5433_s9  ;;  %v6111_v2 = vsel %vm637_vm1, %v586_v46, %v587_v58  ;;  %v6115_v0 = vsel %vm637_vm1, %v585_v50, %v586_v46  ;;  %v6117_v15 = vpack.i.bf16 %v697_v53, %v698_v4  ;;  %2792 = vst.msk [vmem:[#allocation3 + $0x58] sm:$0xff] %vm2262_vm2, %v2728_v60  ;;  %v593_v50 = vrot.slane %v5714_v9, 2 }
  0x67   : > { %2790 = vst.msk [vmem:[#allocation3 + $0x48] sm:$0xff] %vm2262_vm2, %v2726_v56  ;;  %v2732_v57 = vpack.c.bf16 %v6103_v33, %v6107_v32  ;;  %v2730_v38 = vpack.c.bf16 %v6111_v2, %v6115_v0  ;;  %v6127_v58 = vpack.i.bf16 %v699_v43, %v700_v28  ;;  %v590_v4 = vrot.slane %v5717_v17, 2 }
  0x68   : > { %9043 = vst [vmem:[#allocation96_spill] sm:$0xff] %v6117_v15  ;;  %v595_v53 = vrot.slane %v5722_v26, 2  ;;  %v6134_v56 = vpack.i.bf16 %v693_v11, %v694_v13  ;;  %v596_v46 = vrot.slane %v5724_v31, 2  ;;  %v597_v43 = vrot.slane %v5726_v21, 2  ;;  %v9053_v31 = vld [vmem:[#allocation52_spill] sm:$0xff] }
  0x69   : > { %4399 = vrot.lane.b32.xlu1 %v6028_v55, %s5433_s9  ;;  %9044 = vst [vmem:[#allocation97_spill] sm:$0xff] %v6127_v58  ;;  %2796 = vst.msk [vmem:[#allocation3 + $0x78] sm:$0xff] %vm2262_vm2, %v2732_v57  ;;  %v594_v28 = vrot.slane %v5732_v35, 2  ;;  %v681_v60 = vsel %vm637_vm1, %v592_v59, %v593_v50  ;;  %v682_v55 = vsel %vm637_vm1, %v591_v30, %v592_v59  ;;  %v600_v21 = vrot.slane %v5769_v48, 2 }
  0x6a   : > { %4394 = vrot.lane.b32.xlu0 %v6036_v14, %s5433_s9  ;;  %9045 = vst [vmem:[#allocation98_spill] sm:$0xff] %v6134_v56  ;;  %2794 = vst.msk [vmem:[#allocation3 + $0x68] sm:$0xff] %vm2262_vm2, %v2730_v38  ;;  %v6147_v11 = vsel %vm637_vm1, %v590_v4, %v591_v30  ;;  %v6151_v13 = vsel %vm637_vm1, %v589_v37, %v590_v4  ;;  %v2736_v57 = vpack.c.bf16 %v681_v60, %v682_v55 }
  0x6b   : > { %v2734_v38 = vpack.c.bf16 %v6147_v11, %v6151_v13  ;;  %v599_v14 = vrot.slane %v5734_v36, 2  ;;  %v6161_v59 = vsel %vm637_vm1, %v596_v46, %v597_v43  ;;  %v6165_v30 = vsel %vm637_vm1, %v595_v53, %v596_v46 }
  0x6c   : > { %v6169_v37 = vsel %vm637_vm1, %v594_v28, %v595_v53  ;;  %v6173_v4 = vsel %vm637_vm1, %v593_v50, %v594_v28  ;;  %2800 = vst.msk [vmem:[#allocation3 + $0x98] sm:$0xff] %vm2262_vm2, %v2736_v57  ;;  %v2740_v46 = vpack.c.bf16 %v6161_v59, %v6165_v30  ;;  %v6186_v48 = vpack.i.bf16 %v689_v52, %v690_v10  ;;  %v9048_v28 = vld [vmem:[#allocation48_spill] sm:$0xff] }
  0x6d   : > { %4409 = vrot.lane.b32.xlu1 %v6117_v15, %s5433_s9  ;;  %v6178_v15 = vpack.i.bf16 %v6071_v24, %v696_v12  ;;  %2798 = vst.msk [vmem:[#allocation3 + $0x88] sm:$0xff] %vm2262_vm2, %v2734_v38  ;;  %v2738_v53 = vpack.c.bf16 %v6169_v37, %v6173_v4  ;;  %v601_v50 = vrot.slane %v5774_v61, 2  ;;  %v598_v36 = vrot.slane %v9048_v28, 2  ;;  %v9051_v12 = vld [vmem:[#allocation50_spill] sm:$0xff]  ;;  %v9052_v38 = vld [vmem:[#allocation51_spill] sm:$0xff] }
  0x6e   : > { %4404 = vrot.lane.b32.xlu0 %v6127_v58, %s5433_s9  ;;  %9047 = vst [vmem:[#allocation100_spill] sm:$0xff] %v6186_v48  ;;  %v9049_v58 = vld [vmem:[#allocation49_spill] sm:$0xff]  ;;  %v6191_v24 = vpack.i.bf16 %v691_v19, %v692_v47  ;;  %2804 = vst.msk [vmem:[#allocation3 + $0xb8] sm:$0xff] %vm2262_vm2, %v2740_v46  ;;  %v604_v57 = vrot.slane %v9051_v12, 2  ;;  %v605_v9 = vrot.slane %v9052_v38, 2  ;;  %v602_v26 = vrot.slane %v9053_v31, 2 }
  0x6f   : > { %9046 = vst [vmem:[#allocation99_spill] sm:$0xff] %v6178_v15  ;;  %v603_v35 = vrot.slane %v9049_v58, 2  ;;  %2802 = vst.msk [vmem:[#allocation3 + $0xa8] sm:$0xff] %vm2262_vm2, %v2738_v53  ;;  %v6202_v52 = vsel %vm637_vm1, %v600_v21, %v601_v50  ;;  %v6206_v10 = vsel %vm637_vm1, %v599_v14, %v600_v21  ;;  %v6210_v19 = vsel %vm637_vm1, %v598_v36, %v599_v14  ;;  %v9055_v38 = vld [vmem:[#allocation57_spill] sm:$0xff]  ;;  %v9063_v58 = vld [vmem:[#allocation63_spill] sm:$0xff] }
  0x70   : > { %9050 = vst [vmem:[#allocation101_spill] sm:$0xff] %v6191_v24  ;;  %v6214_v47 = vsel %vm637_vm1, %v597_v43, %v598_v36  ;;  %v2744_v46 = vpack.c.bf16 %v6202_v52, %v6206_v10  ;;  %v608_v31 = vrot.slane %v9055_v38, 2  ;;  %v6226_v14 = vsel %vm637_vm1, %v604_v57, %v605_v9 }
  0x71   : > { %4419 = vrot.lane.b32.xlu1 %v6134_v56, %s5433_s9  ;;  %v2742_v53 = vpack.c.bf16 %v6210_v19, %v6214_v47  ;;  %v9054_v56 = vld [vmem:[#allocation53_spill] sm:$0xff]  ;;  %v6230_v36 = vsel %vm637_vm1, %v603_v35, %v604_v57  ;;  %v6234_v43 = vsel %vm637_vm1, %v602_v26, %v603_v35  ;;  %v9058_v35 = vld [vmem:[#allocation59_spill] sm:$0xff] }
  0x72   : > { %4414 = vrot.lane.b32.xlu0 %v6178_v15, %s5433_s9  ;;  %v607_v21 = vrot.slane %v9054_v56, 2  ;;  %v6238_v15 = vsel %vm637_vm1, %v601_v50, %v602_v26  ;;  %v6242_v56 = vpack.i.bf16 %v6103_v33, %v6107_v32  ;;  %2808 = vst.msk [vmem:[#allocation3 + $0xd8] sm:$0xff] %vm2262_vm2, %v2744_v46  ;;  %v2748_v57 = vpack.c.bf16 %v6226_v14, %v6230_v36  ;;  %v9059_v32 = vld [vmem:[#allocation60_spill] sm:$0xff]  ;;  %v9060_v46 = vld [vmem:[#allocation61_spill] sm:$0xff] }
  0x73   : > { %2806 = vst.msk [vmem:[#allocation3 + $0xc8] sm:$0xff] %vm2262_vm2, %v2742_v53  ;;  %v2746_v38 = vpack.c.bf16 %v6234_v43, %v6238_v15  ;;  %v6254_v26 = vpack.i.bf16 %v6111_v2, %v6115_v0  ;;  %v609_v33 = vrot.slane %v9058_v35, 2  ;;  %v606_v50 = vrot.slane %v9059_v32, 2  ;;  %v9064_v0 = vld [vmem:[#allocation64_spill] sm:$0xff]  ;;  %v9073_v32 = vld [vmem:[#allocation73_spill] sm:$0xff] }
  0x74   : > { %9056 = vst [vmem:[#allocation102_spill] sm:$0xff] %v6242_v56  ;;  %v611_v61 = vrot.slane %v9060_v46, 2  ;;  %v6261_v53 = vpack.i.bf16 %v681_v60, %v682_v55  ;;  %2812 = vst.msk [vmem:[#allocation3 + $0xf8] sm:$0xff] %vm2262_vm2, %v2748_v57  ;;  %v613_v2 = vrot.slane %v9063_v58, 2  ;;  %v610_v28 = vrot.slane %v9064_v0, 2  ;;  %v9066_v0 = vld [vmem:[#allocation68_spill] sm:$0xff] }
  0x75   : > { %4429 = vrot.lane.b32.xlu1 %v6186_v48, %s5433_s9  ;;  %9057 = vst [vmem:[#allocation103_spill] sm:$0xff] %v6254_v26  ;;  %2810 = vst.msk [vmem:[#allocation3 + $0xe8] sm:$0xff] %vm2262_vm2, %v2746_v38  ;;  %v9062_v48 = vld [vmem:[#allocation62_spill] sm:$0xff]  ;;  %v6270_v35 = vsel %vm637_vm1, %v608_v31, %v609_v33  ;;  %v6274_v46 = vsel %vm637_vm1, %v607_v21, %v608_v31  ;;  %v6278_v55 = vsel %vm637_vm1, %v606_v50, %v607_v21 }
  0x76   : > { %4424 = vrot.lane.b32.xlu0 %v6191_v24, %s5433_s9  ;;  %9061 = vst [vmem:[#allocation104_spill] sm:$0xff] %v6261_v53  ;;  %v612_v12 = vrot.slane %v9062_v48, 2  ;;  %v6282_v60 = vsel %vm637_vm1, %v605_v9, %v606_v50  ;;  %v2752_v38 = vpack.c.bf16 %v6270_v35, %v6274_v46  ;;  %v9065_v24 = vld [vmem:[#allocation65_spill] sm:$0xff]  ;;  %v616_v48 = vrot.slane %v9066_v0, 2  ;;  %v9070_v0 = vld [vmem:[#allocation70_spill] sm:$0xff] }
  0x77   : > { %v2750_v57 = vpack.c.bf16 %v6278_v55, %v6282_v60  ;;  %v615_v58 = vrot.slane %v9065_v24, 2  ;;  %v6302_v21 = vsel %vm637_vm1, %v610_v28, %v611_v61  ;;  %v6306_v50 = vsel %vm637_vm1, %v609_v33, %v610_v28  ;;  %v9069_v33 = vld [vmem:[#allocation69_spill] sm:$0xff] }
  0x78   : > { %v6294_v31 = vsel %vm637_vm1, %v612_v12, %v613_v2  ;;  %v6298_v9 = vsel %vm637_vm1, %v611_v61, %v612_v12  ;;  %2816 = vst.msk [vmem:[#allocation3 + $0x118] sm:$0xff] %vm2262_vm2, %v2752_v38  ;;  %v2754_v61 = vpack.c.bf16 %v6302_v21, %v6306_v50  ;;  %v6322_v28 = vpack.i.bf16 %v6161_v59, %v6165_v30  ;;  %v9074_v59 = vld [vmem:[#allocation74_spill] sm:$0xff] }
  0x79   : > { %4439 = vrot.lane.b32.xlu1 %v6242_v56, %s5433_s9  ;;  %v6312_v56 = vpack.i.bf16 %v6147_v11, %v6151_v13  ;;  %2814 = vst.msk [vmem:[#allocation3 + $0x108] sm:$0xff] %vm2262_vm2, %v2750_v57  ;;  %v2756_v12 = vpack.c.bf16 %v6294_v31, %v6298_v9  ;;  %v614_v24 = vrot.slane %v9070_v0, 2  ;;  %v9071_v11 = vld [vmem:[#allocation71_spill] sm:$0xff]  ;;  %v6329_v38 = vpack.i.bf16 %v6169_v37, %v6173_v4 }
  0x7a   : > { %4434 = vrot.lane.b32.xlu0 %v6254_v26, %s5433_s9  ;;  %9068 = vst [vmem:[#allocation106_spill] sm:$0xff] %v6322_v28  ;;  %v617_v26 = vrot.slane %v9069_v33, 2  ;;  %v619_v13 = vrot.slane %v9071_v11, 2  ;;  %2818 = vst.msk [vmem:[#allocation3 + $0x128] sm:$0xff] %vm2262_vm2, %v2754_v61  ;;  %v620_v57 = vrot.slane %v5898_v42, 2  ;;  %v621_v17 = vrot.slane %v9073_v32, 2 }
  0x7b   : > { %9067 = vst [vmem:[#allocation105_spill] sm:$0xff] %v6312_v56  ;;  %9072 = vst [vmem:[#allocation107_spill] sm:$0xff] %v6329_v38  ;;  %v618_v30 = vrot.slane %v9074_v59, 2  ;;  %v658_v37 = vsel %vm637_vm1, %v615_v58, %v616_v48  ;;  %v659_v4 = vsel %vm637_vm1, %v614_v24, %v615_v58  ;;  %v9075_v59 = vld [vmem:[#allocation75_spill] sm:$0xff] }
  0x7c   : > { %2820 = vst.msk [vmem:[#allocation3 + $0x138] sm:$0xff] %vm2262_vm2, %v2756_v12  ;;  %v657_v33 = vsel %vm637_vm1, %v616_v48, %v617_v26  ;;  %v660_v12 = vsel %vm637_vm1, %v613_v2, %v614_v24  ;;  %v623_v42 = vrot.slane %v9075_v59, 2  ;;  %v653_v0 = vsel %vm637_vm1, %v620_v57, %v621_v17 }
  0x7d   : > { %4449 = vrot.lane.b32.xlu1 %v6261_v53, %s5433_s9  ;;  %v2760_v61 = vpack.c.bf16 %v657_v33, %v658_v37  ;;  %v2758_v32 = vpack.c.bf16 %v659_v4, %v660_v12  ;;  %v9076_v53 = vld [vmem:[#allocation80_spill] sm:$0xff]  ;;  %v654_v48 = vsel %vm637_vm1, %v619_v13, %v620_v57  ;;  %v655_v58 = vsel %vm637_vm1, %v618_v30, %v619_v13 }
  0x7e   : > { %4444 = vrot.lane.b32.xlu0 %v6312_v56, %s5433_s9  ;;  %v624_v11 = vrot.slane %v9076_v53, 2  ;;  %v656_v24 = vsel %vm637_vm1, %v617_v26, %v618_v30  ;;  %v2764_v2 = vpack.c.bf16 %v653_v0, %v654_v48  ;;  %v6364_v53 = vpack.i.bf16 %v6202_v52, %v6206_v10 }
  0x7f   : > { %2824 = vst.msk [vmem:[#allocation3 + $0x158] sm:$0xff] %vm2262_vm2, %v2760_v61  ;;  %2822 = vst.msk [vmem:[#allocation3 + $0x148] sm:$0xff] %vm2262_vm2, %v2758_v32  ;;  %v2762_v56 = vpack.c.bf16 %v655_v58, %v656_v24  ;;  %v625_v57 = vrot.slane %v5945_v3, 2  ;;  %v622_v13 = vrot.slane %v5948_v51, 2  ;;  %v627_v59 = vrot.slane %v5953_v62, 2 }
  0x80   : > { %9077 = vst [vmem:[#allocation108_spill] sm:$0xff] %v6364_v53  ;;  %v6373_v26 = vpack.i.bf16 %v6210_v19, %v6214_v47  ;;  %2828 = vst.msk [vmem:[#allocation3 + $0x178] sm:$0xff] %vm2262_vm2, %v2764_v2  ;;  %v628_v52 = vrot.slane %v5955_v39, 2  ;;  %v626_v32 = vrot.slane %v5966_v22, 2  ;;  %v650_v61 = vsel %vm637_vm1, %v623_v42, %v624_v11 }
  0x81   : > { %4459 = vrot.lane.b32.xlu1 %v6322_v28, %s5433_s9  ;;  %2826 = vst.msk [vmem:[#allocation3 + $0x168] sm:$0xff] %vm2262_vm2, %v2762_v56  ;;  %v649_v30 = vsel %vm637_vm1, %v624_v11, %v625_v57  ;;  %v651_v19 = vsel %vm637_vm1, %v622_v13, %v623_v42  ;;  %v652_v47 = vsel %vm637_vm1, %v621_v17, %v622_v13  ;;  %v9080_v28 = vrot.slane %v5958_v16, 2 }
  0x82   : > { %4454 = vrot.lane.b32.xlu0 %v6329_v38, %s5433_s9  ;;  %9078 = vst [vmem:[#allocation109_spill] sm:$0xff] %v6373_v26  ;;  %v6390_v56 = vpack.i.bf16 %v6226_v14, %v6230_v36  ;;  %v2768_v2 = vpack.c.bf16 %v649_v30, %v650_v61  ;;  %v2766_v10 = vpack.c.bf16 %v651_v19, %v652_v47 }
  0x83   : > { %v645_v11 = vsel %vm637_vm1, %v628_v52, %v9080_v28  ;;  %v646_v42 = vsel %vm637_vm1, %v627_v59, %v628_v52  ;;  %v647_v17 = vsel %vm637_vm1, %v626_v32, %v627_v59  ;;  %v648_v14 = vsel %vm637_vm1, %v625_v57, %v626_v32 }
  0x84   : > { %9079 = vst [vmem:[#allocation110_spill] sm:$0xff] %v6390_v56  ;;  %v6408_v36 = vpack.i.bf16 %v6234_v43, %v6238_v15  ;;  %2832 = vst.msk [vmem:[#allocation3 + $0x198] sm:$0xff] %vm2262_vm2, %v2768_v2  ;;  %v2772_v28 = vpack.c.bf16 %v645_v11, %v646_v42  ;;  %v2770_v13 = vpack.c.bf16 %v647_v17, %v648_v14  ;;  %v9101_v2 = vld [vmem:[#allocation21_spill] sm:$0xff] }
  0x85   : > { %4469 = vrot.lane.b32.xlu1 %v6364_v53, %s5433_s9  ;;  %2830 = vst.msk [vmem:[#allocation3 + $0x188] sm:$0xff] %vm2262_vm2, %v2766_v10  ;;  %v6418_v59 = vpack.i.bf16 %v6270_v35, %v6274_v46  ;;  %v6424_v15 = vpack.i.bf16 %v6278_v55, %v6282_v60  ;;  %v6430_v43 = vpack.i.bf16 %v6294_v31, %v6298_v9 }
  0x86   : > { %4464 = vrot.lane.b32.xlu0 %v6373_v26, %s5433_s9  ;;  %2836 = vst.msk [vmem:[#allocation3 + $0x1b8] sm:$0xff] %vm2262_vm2, %v2772_v28  ;;  %2834 = vst.msk [vmem:[#allocation3 + $0x1a8] sm:$0xff] %vm2262_vm2, %v2770_v13  ;;  %v6436_v35 = vpack.i.bf16 %v6302_v21, %v6306_v50  ;;  %v6440_v46 = vpack.i.bf16 %v657_v33, %v658_v37  ;;  %v6444_v55 = vpack.i.bf16 %v659_v4, %v660_v12  ;;  %v9105_v13 = vld [vmem:[#allocation23_spill] sm:$0xff] }
  0x87   : > { %9081 = vst [vmem:[#allocation111_spill] sm:$0xff] %v6418_v59  ;;  %9082 = vst [vmem:[#allocation112_spill] sm:$0xff] %v6424_v15  ;;  %v6448_v60 = vpack.i.bf16 %v653_v0, %v654_v48  ;;  %v6452_v31 = vpack.i.bf16 %v655_v58, %v656_v24  ;;  %v6460_v50 = vpack.i.bf16 %v649_v30, %v650_v61 }
  0x88   : > { %9083 = vst [vmem:[#allocation113_spill] sm:$0xff] %v6430_v43  ;;  %9084 = vst [vmem:[#allocation114_spill] sm:$0xff] %v6436_v35  ;;  %v6464_v33 = vpack.i.bf16 %v651_v19, %v652_v47  ;;  %v6472_v4 = vpack.i.bf16 %v645_v11, %v646_v42  ;;  %v6476_v12 = vpack.i.bf16 %v647_v17, %v648_v14  ;;  %v9103_v14 = vld [vmem:[#allocation24_spill] sm:$0xff] }
  0x89   : > { %4479 = vrot.lane.b32.xlu1 %v6390_v56, %s5433_s9  ;;  %9085 = vst [vmem:[#allocation115_spill] sm:$0xff] %v6440_v46  ;;  %9086 = vst [vmem:[#allocation116_spill] sm:$0xff] %v6444_v55  ;;  %v4548_v24 = vpack.i.bf16 %v5542_v8, %v5540_v7  ;;  %v4543_v57 = vpack.i.bf16 %v5538_v6, %v5536_v5  ;;  %v6497_v32 = vpack.i.bf16 %v5595_v41, %v5593_v40  ;;  %v9116_v41 = vld [vmem:[#allocation37_spill] sm:$0xff]  ;;  %v9117_v7 = vld [vmem:[#allocation38_spill] sm:$0xff] }
  0x8a   : > { %4474 = vrot.lane.b32.xlu0 %v6408_v36, %s5433_s9  ;;  %9087 = vst [vmem:[#allocation117_spill] sm:$0xff] %v6448_v60  ;;  %9088 = vst [vmem:[#allocation118_spill] sm:$0xff] %v6452_v31  ;;  %v6502_v30 = vpack.i.bf16 %v5600_v44, %v5557_v18  ;;  %v6512_v47 = vpack.i.bf16 %v5607_v49, %v5602_v45  ;;  %v6518_v11 = vpack.i.bf16 %v5614_v54, %v9101_v2  ;;  %v9119_v5 = vld [vmem:[#allocation35_spill] sm:$0xff]  ;;  %v9159_v56 = vld [vmem:[#allocation72_spill] sm:$0xff] }
  0x8b   : > { %9091 = vst [vmem:[#allocation121_spill] sm:$0xff] %v6460_v50  ;;  %9092 = vst [vmem:[#allocation122_spill] sm:$0xff] %v6464_v33  ;;  %v6528_v28 = vpack.i.bf16 %v5649_v20, %v9103_v14  ;;  %v6544_v26 = vpack.i.bf16 %v5666_v29, %v5664_v27  ;;  %v6576_v8 = vpack.i.bf16 %v9117_v7, %v9116_v41 }
  0x8c   : > { %9095 = vst [vmem:[#allocation125_spill] sm:$0xff] %v6472_v4  ;;  %9096 = vst [vmem:[#allocation126_spill] sm:$0xff] %v6476_v12 }
  0x8d   : > { %4489 = vrot.lane.b32.xlu1 %v6418_v59, %s5433_s9  ;;  %9099 = vst [vmem:[#allocation129_spill] sm:$0xff] %v6497_v32  ;;  %9100 = vst [vmem:[#allocation130_spill] sm:$0xff] %v6512_v47  ;;  %v9153_v59 = vld [vmem:[#allocation63_spill] sm:$0xff] }
  0x8e   : > { %4484 = vrot.lane.b32.xlu0 %v6424_v15, %s5433_s9  ;;  %9102 = vst [vmem:[#allocation21_spill] sm:$0xff] %v6518_v11  ;;  %9104 = vst [vmem:[#allocation24_spill] sm:$0xff] %v6528_v28 }
  0x8f   : > { %9107 = vst [vmem:[#allocation131_spill] sm:$0xff] %v6544_v26  ;;  %9118 = vst [vmem:[#allocation37_spill] sm:$0xff] %v6576_v8 }
  0x91   : > { %4499 = vrot.lane.b32.xlu1 %v6430_v43, %s5433_s9  ;;  %v9145_v43 = vld [vmem:[#allocation59_spill] sm:$0xff] }
  0x92   : > { %4494 = vrot.lane.b32.xlu0 %v6436_v35, %s5433_s9  ;;  %v9151_v35 = vld [vmem:[#allocation68_spill] sm:$0xff] }
  0x95   : > { %4509 = vrot.lane.b32.xlu1 %v6440_v46, %s5433_s9 }
  0x96   : > { %4504 = vrot.lane.b32.xlu0 %v6444_v55, %s5433_s9  ;;  %v9142_v55 = vld [vmem:[#allocation61_spill] sm:$0xff] }
  0x97   : > { %v6454_v9 = vpop.permute.xlu1 %4234 }
  0x98   : > { %9089 = vst [vmem:[#allocation119_spill] sm:$0xff] %v6454_v9  ;;  %v6456_v21 = vpop.permute.xlu0 %4224 }
  0x99   : > { %9090 = vst [vmem:[#allocation120_spill] sm:$0xff] %v6456_v21  ;;  %4519 = vrot.lane.b32.xlu1 %v6448_v60, %s5433_s9  ;;  %v9111_v60 = vld [vmem:[#allocation29_spill] sm:$0xff] }
  0x9a   : > { %4514 = vrot.lane.b32.xlu0 %v6452_v31, %s5433_s9  ;;  %v9112_v31 = vld [vmem:[#allocation36_spill] sm:$0xff] }
  0x9b   : > { %v6466_v0 = vpop.permute.xlu1 %4239  ;;  %v6566_v18 = vpack.i.bf16 %v9112_v31, %v9111_v60 }
  0x9c   : > { %9093 = vst [vmem:[#allocation123_spill] sm:$0xff] %v6466_v0  ;;  %v6468_v37 = vpop.permute.xlu0 %4229  ;;  %v9127_v0 = vld [vmem:[#allocation39_spill] sm:$0xff] }
  0x9d   : > { %9094 = vst [vmem:[#allocation124_spill] sm:$0xff] %v6468_v37  ;;  %4529 = vrot.lane.b32.xlu1 %v6460_v50, %s5433_s9  ;;  %9113 = vst [vmem:[#allocation29_spill] sm:$0xff] %v6566_v18 }
  0x9e   : > { %4524 = vrot.lane.b32.xlu0 %v6464_v33, %s5433_s9  ;;  %v6560_v33 = vpack.i.bf16 %v5709_v63, %v5674_v34 }
  0x9f   : > { %v6478_v48 = vpop.permute.xlu1 %4249 }
  0xa0   : > { %9097 = vst [vmem:[#allocation127_spill] sm:$0xff] %v6478_v48  ;;  %v6480_v58 = vpop.permute.xlu0 %4244  ;;  %9110 = vst [vmem:[#allocation132_spill] sm:$0xff] %v6560_v33 }
  0xa1   : > { %9098 = vst [vmem:[#allocation128_spill] sm:$0xff] %v6480_v58  ;;  %4539 = vrot.lane.b32.xlu1 %v6472_v4, %s5433_s9  ;;  %v9108_v4 = vld [vmem:[#allocation30_spill] sm:$0xff]  ;;  %v9120_v58 = vld [vmem:[#allocation40_spill] sm:$0xff] }
  0xa2   : > { %4534 = vrot.lane.b32.xlu0 %v6476_v12, %s5433_s9  ;;  %v6550_v12 = vpack.i.bf16 %v9108_v4, %v5656_v23  ;;  %v6582_v6 = vpack.i.bf16 %v9120_v58, %v9119_v5  ;;  %s3959_s9 = sshll.u32 %s5422_s18, 13 }
  0xa3   : > { %v6490_v52 = vpop.permute.xlu1 %4259  ;;  %s8595_s14 = scalar_lea.hbm %s8654_s4, %s3959_s9 }
  0xa4   : > { %v6492_v10 = vpop.permute.xlu0 %4254  ;;  %9109 = vst [vmem:[#allocation30_spill] sm:$0xff] %v6550_v12  ;;  %9121 = vst [vmem:[#allocation38_spill] sm:$0xff] %v6582_v6 }
  0xa5   : > { %4549 = vrot.lane.b32.xlu1 %v4548_v24, %s5434_s10  ;;  %v6534_v24 = vpack.i.bf16 %v5659_v25, %v9105_v13 }
  0xa6   : > { %4544 = vrot.lane.b32.xlu0 %v4543_v57, %s5434_s10 }
  0xa7   : > { %v6504_v61 = vpop.permute.xlu1 %4269  ;;  %9106 = vst [vmem:[#allocation23_spill] sm:$0xff] %v6534_v24 }
  0xa8   : > { %v6506_v19 = vpop.permute.xlu0 %4264 }
  0xa9   : > { %4559 = vrot.lane.b32.xlu1 %v6497_v32, %s5434_s10 }
  0xaa   : > { %4554 = vrot.lane.b32.xlu0 %v6502_v30, %s5434_s10 }
  0xab   : > { %v6520_v42 = vpop.permute.xlu1 %4279 }
  0xac   : > { %v6522_v17 = vpop.permute.xlu0 %4274 }
  0xad   : > { %4569 = vrot.lane.b32.xlu1 %v6512_v47, %s5434_s10  ;;  %v9154_v47 = vld [vmem:[#allocation70_spill] sm:$0xff] }
  0xae   : > { %4564 = vrot.lane.b32.xlu0 %v6518_v11, %s5434_s10  ;;  %v6662_v15 = vpack.i.bf16 %v9154_v47, %v9153_v59 }
  0xaf   : > { %v6536_v57 = vpop.permute.xlu1 %4289 }
  0xb0   : > { %v6538_v53 = vpop.permute.xlu0 %4284  ;;  %9155 = vst [vmem:[#allocation65_spill] sm:$0xff] %v6662_v15 }
  0xb1   : > { %4579 = vrot.lane.b32.xlu1 %v6528_v28, %s5434_s10 }
  0xb2   : > { %4574 = vrot.lane.b32.xlu0 %v6534_v24, %s5434_s10  ;;  %v6656_v24 = vpack.i.bf16 %v9151_v35, %v9150_v1 }
  0xb3   : > { %v6552_v38 = vpop.permute.xlu1 %4299 }
  0xb4   : > { %v6554_v50 = vpop.permute.xlu0 %4294 }
  0xb5   : > { %4589 = vrot.lane.b32.xlu1 %v6544_v26, %s5434_s10 }
  0xb6   : > { %4584 = vrot.lane.b32.xlu0 %v6550_v12, %s5434_s10 }
  0xb7   : > { %v6568_v44 = vpop.permute.xlu1 %4309 }
  0xb8   : > { %9114 = vst [vmem:[#allocation36_spill] sm:$0xff] %v6568_v44  ;;  %v6570_v40 = vpop.permute.xlu0 %4304 }
  0xb9   : > { %9115 = vst [vmem:[#allocation133_spill] sm:$0xff] %v6570_v40  ;;  %4599 = vrot.lane.b32.xlu1 %v6560_v33, %s5434_s10  ;;  %v9124_v40 = vld [vmem:[#allocation41_spill] sm:$0xff] }
  0xba   : > { %4594 = vrot.lane.b32.xlu0 %v6566_v18, %s5434_s10  ;;  %v9125_v33 = vld [vmem:[#allocation45_spill] sm:$0xff]  ;;  %v9128_v18 = vld [vmem:[#allocation48_spill] sm:$0xff] }
  0xbb   : > { %v6584_v48 = vpop.permute.xlu1 %4319  ;;  %v6592_v44 = vpack.i.bf16 %v9125_v33, %v9124_v40  ;;  %v6598_v21 = vpack.i.bf16 %v9128_v18, %v9127_v0  ;;  %v9134_v40 = vld [vmem:[#allocation47_spill] sm:$0xff] }
  0xbc   : > { %9122 = vst [vmem:[#allocation35_spill] sm:$0xff] %v6584_v48  ;;  %v6586_v37 = vpop.permute.xlu0 %4314 }
  0xbd   : > { %9123 = vst [vmem:[#allocation40_spill] sm:$0xff] %v6586_v37  ;;  %4609 = vrot.lane.b32.xlu1 %v6576_v8, %s5434_s10  ;;  %9126 = vst [vmem:[#allocation134_spill] sm:$0xff] %v6592_v44  ;;  %v9131_v37 = vld [vmem:[#allocation49_spill] sm:$0xff]  ;;  %v9132_v8 = vld [vmem:[#allocation50_spill] sm:$0xff] }
  0xbe   : > { %4604 = vrot.lane.b32.xlu0 %v6582_v6, %s5434_s10  ;;  %9129 = vst [vmem:[#allocation135_spill] sm:$0xff] %v6598_v21  ;;  %v6608_v48 = vpack.i.bf16 %v9132_v8, %v9131_v37  ;;  %v9135_v6 = vld [vmem:[#allocation52_spill] sm:$0xff]  ;;  %v9140_v37 = vld [vmem:[#allocation51_spill] sm:$0xff] }
  0xbf   : > { %v6600_v46 = vpop.permute.xlu1 %4329  ;;  %v6614_v33 = vpack.i.bf16 %v9135_v6, %v9134_v40 }
  0xc0   : > { %v6602_v9 = vpop.permute.xlu0 %4324  ;;  %9133 = vst [vmem:[#allocation137_spill] sm:$0xff] %v6608_v48 }
  0xc1   : > { %9130 = vst [vmem:[#allocation136_spill] sm:$0xff] %v6602_v9  ;;  %4619 = vrot.lane.b32.xlu1 %v6592_v44, %s5434_s10  ;;  %9136 = vst [vmem:[#allocation138_spill] sm:$0xff] %v6614_v33  ;;  %v9137_v9 = vld [vmem:[#allocation53_spill] sm:$0xff] }
  0xc2   : > { %4614 = vrot.lane.b32.xlu0 %v6598_v21, %s5434_s10  ;;  %v9138_v44 = vld [vmem:[#allocation57_spill] sm:$0xff]  ;;  %v9141_v21 = vld [vmem:[#allocation60_spill] sm:$0xff] }
  0xc3   : > { %v6616_v0 = vpop.permute.xlu1 %4339  ;;  %v6624_v26 = vpack.i.bf16 %v9138_v44, %v9137_v9  ;;  %v6630_v8 = vpack.i.bf16 %v9141_v21, %v9140_v37 }
  0xc4   : > { %v6618_v18 = vpop.permute.xlu0 %4334 }
  0xc5   : > { %4629 = vrot.lane.b32.xlu1 %v6608_v48, %s5434_s10  ;;  %9139 = vst [vmem:[#allocation53_spill] sm:$0xff] %v6624_v26  ;;  %v9143_v48 = vld [vmem:[#allocation62_spill] sm:$0xff] }
  0xc6   : > { %4624 = vrot.lane.b32.xlu0 %v6614_v33, %s5434_s10  ;;  %v6640_v12 = vpack.i.bf16 %v9143_v48, %v9142_v55  ;;  %v9146_v33 = vld [vmem:[#allocation64_spill] sm:$0xff] }
  0xc7   : > { %v6632_v40 = vpop.permute.xlu1 %4349  ;;  %v6646_v28 = vpack.i.bf16 %v9146_v33, %v9145_v43  ;;  %9152 = vst [vmem:[#allocation64_spill] sm:$0xff] %v6656_v24 }
  0xc8   : > { %v6634_v6 = vpop.permute.xlu0 %4344  ;;  %9144 = vst [vmem:[#allocation57_spill] sm:$0xff] %v6640_v12 }
  0xc9   : > { %4639 = vrot.lane.b32.xlu1 %v6624_v26, %s5434_s10  ;;  %9147 = vst [vmem:[#allocation61_spill] sm:$0xff] %v6646_v28 }
  0xca   : > { %4634 = vrot.lane.b32.xlu0 %v6630_v8, %s5434_s10 }
  0xcb   : > { %v6648_v37 = vpop.permute.xlu1 %4359 }
  0xcc   : > { %9148 = vst [vmem:[#allocation62_spill] sm:$0xff] %v6648_v37  ;;  %v6650_v21 = vpop.permute.xlu0 %4354 }
  0xcd   : > { %9149 = vst [vmem:[#allocation59_spill] sm:$0xff] %v6650_v21  ;;  %4649 = vrot.lane.b32.xlu1 %v6640_v12, %s5434_s10  ;;  %v9158_v12 = vld [vmem:[#allocation71_spill] sm:$0xff]  ;;  %v9161_v21 = vld [vmem:[#allocation69_spill] sm:$0xff] }
  0xce   : > { %4644 = vrot.lane.b32.xlu0 %v6646_v28, %s5434_s10  ;;  %v6672_v32 = vpack.i.bf16 %v9159_v56, %v9158_v12  ;;  %v9162_v28 = vld [vmem:[#allocation74_spill] sm:$0xff]  ;;  %v9169_v12 = vld [vmem:[#allocation73_spill] sm:$0xff] }
  0xcf   : > { %v6664_v11 = vpop.permute.xlu1 %4369  ;;  %v6678_v37 = vpack.i.bf16 %v9162_v28, %v9161_v21  ;;  %v4136_v21 = vld [vmem:[%s5530_s7 + $0x108] sm:$0xff]   ;;  %v9200_v56 = vld [vmem:[#allocation34_spill] sm:$0xff] }
  0xd0   : > { %9156 = vst [vmem:[#allocation68_spill] sm:$0xff] %v6664_v11  ;;  %v6666_v26 = vpop.permute.xlu0 %4364  ;;  %9160 = vst [vmem:[#allocation140_spill] sm:$0xff] %v6672_v32 }
  0xd1   : > { %9157 = vst [vmem:[#allocation139_spill] sm:$0xff] %v6666_v26  ;;  %4659 = vrot.lane.b32.xlu1 %v6656_v24, %s5434_s10  ;;  %9163 = vst [vmem:[#allocation141_spill] sm:$0xff] %v6678_v37  ;;  %v9166_v26 = vld [vmem:[#allocation75_spill] sm:$0xff]  ;;  %v9167_v24 = vld [vmem:[#allocation80_spill] sm:$0xff] }
  0xd2   : > { %4654 = vrot.lane.b32.xlu0 %v6662_v15, %s5434_s10  ;;  %v6688_v11 = vpack.i.bf16 %v9167_v24, %v9166_v26  ;;  %v6694_v15 = vpack.i.bf16 %v5948_v51, %v9169_v12  ;;  %v6707_v26 = vunpack.c.l.bf16 %v4136_v21  ;;  %v6709_v24 = vunpack.c.h.bf16 %v4136_v21 }
  0xd3   : > { %v6680_v59 = vpop.permute.xlu1 %4379  ;;  %v8915_v51 = vmov 0  }
  0xd4   : > { %9164 = vst [vmem:[#allocation142_spill] sm:$0xff] %v6680_v59  ;;  %v6682_v47 = vpop.permute.xlu0 %4374  ;;  %9168 = vst [vmem:[#allocation144_spill] sm:$0xff] %v6688_v11  ;;  %v6728_v21 = vpack.i.bf16 %v6709_v24, %v6707_v26  ;;  %3078 = vmatprep.subr.bf16.mxu0 %v8915_v51  ;;  %4139 = vmatprep.subr.bf16.mxu1 %v8915_v51 }
  0xd5   : > { %9165 = vst [vmem:[#allocation143_spill] sm:$0xff] %v6682_v47  ;;  %4669 = vrot.lane.b32.xlu1 %v6672_v32, %s5434_s10  ;;  %9170 = vst [vmem:[#allocation145_spill] sm:$0xff] %v6694_v15  ;;  %v6705_v32 = vpack.i.bf16 %v5955_v39, %v5953_v62  ;;  %v5343_v62 = vld [vmem:[%s8651_s1] sm:$0xff]   ;;  %v9196_v39 = vld [vmem:[#allocation32_spill] sm:$0xff] }
  0xd6   : > { %4664 = vrot.lane.b32.xlu0 %v6678_v37, %s5434_s10  ;;  %9174 = vst [vmem:[#allocation149_spill] sm:$0xff] %v6707_v26  ;;  %9175 = vst [vmem:[#allocation150_spill] sm:$0xff] %v6709_v24  ;;  %v6715_v37 = vpack.i.bf16 %v5966_v22, %v5945_v3  ;;  %v9191_v26 = vld [vmem:[#allocation27_spill] sm:$0xff]  ;;  %3079 = vmatpush1.bf16.msra.mxu0 %v5343_v62 }
  0xd7   : > { %v6697_v28 = vpop.permute.xlu1 %4389  ;;  %9173 = vst [vmem:[#allocation148_spill] sm:$0xff] %v6705_v32  ;;  %9181 = vst [vmem:[#allocation154_spill] sm:$0xff] %v6728_v21  ;;  %v9195_v22 = vld [vmem:[#allocation31_spill] sm:$0xff]  ;;  %3080 = vmatprep.subr.bf16.mxu0 %v8915_v51  ;;  %4148 = vmatpush1.bf16.msra.mxu1 %v5343_v62  ;;  %v9203_v62 = vld [vmem:[#allocation42_spill] sm:$0xff] }
  0xd8   : > { %9171 = vst [vmem:[#allocation146_spill] sm:$0xff] %v6697_v28  ;;  %v6699_v59 = vpop.permute.xlu0 %4384  ;;  %9176 = vst [vmem:[#allocation151_spill] sm:$0xff] %v6715_v37  ;;  %v9177_v28 = vld [vmem:[#allocation79_spill] sm:$0xff]  ;;  %4140 = vmatprep.subr.bf16.mxu1 %v8915_v51 }
  0xd9   : > { %9172 = vst [vmem:[#allocation147_spill] sm:$0xff] %v6699_v59  ;;  %4679 = vrot.lane.b32.xlu1 %v6688_v11, %s5434_s10  ;;  %v6718_v59 = vunpack.c.h.bf16 %v9177_v28 }
  0xda   : > { %4674 = vrot.lane.b32.xlu0 %v6694_v15, %s5434_s10 }
  0xdb   : > { %9178 = vst [vmem:[#allocation79_spill] sm:$0xff] %v6718_v59  ;;  %v6720_v12 = vpop.permute.xlu1 %4399  ;;  %v6734_v15 = vpack.i.bf16 %v6718_v59, %v5958_v16 }
  0xdc   : > { %9179 = vst [vmem:[#allocation152_spill] sm:$0xff] %v6720_v12  ;;  %v6722_v11 = vpop.permute.xlu0 %4394  ;;  %v9186_v12 = vld [vmem:[#allocation17_spill] sm:$0xff] }
  0xdd   : > { %9180 = vst [vmem:[#allocation153_spill] sm:$0xff] %v6722_v11  ;;  %4689 = vrot.lane.b32.xlu1 %v6705_v32, %s5434_s10  ;;  %9182 = vst [vmem:[#allocation155_spill] sm:$0xff] %v6734_v15 }
  0xde   : > { %4684 = vrot.lane.b32.xlu0 %v6715_v37, %s5434_s10  ;;  %v9185_v37 = vld [vmem:[#allocation18_spill] sm:$0xff] }
  0xdf   : > { %v6736_v28 = vpop.permute.xlu1 %4409 }
  0xe0   : > { %9183 = vst [vmem:[#allocation156_spill] sm:$0xff] %v6736_v28  ;;  %v6738_v3 = vpop.permute.xlu0 %4404 }
  0xe1   : > { %9184 = vst [vmem:[#allocation157_spill] sm:$0xff] %v6738_v3  ;;  %4699 = vrot.lane.b32.xlu1 %v6728_v21, %s5434_s10  ;;  %v9187_v21 = vld [vmem:[#allocation25_spill] sm:$0xff] }
  0xe2   : > { %4694 = vrot.lane.b32.xlu0 %v6734_v15, %s5434_s10  ;;  %v9188_v15 = vld [vmem:[#allocation26_spill] sm:$0xff] }
  0xe3   : > { %v6744_v32 = vpop.permute.xlu1 %4419 }
  0xe4   : > { %v6746_v11 = vpop.permute.xlu0 %4414 }
  0xe5   : > { %4709 = vrot.lane.b32.xlu1 %v9185_v37, %s5435_s11  ;;  %v9192_v37 = vld [vmem:[#allocation28_spill] sm:$0xff] }
  0xe6   : > { %4704 = vrot.lane.b32.xlu0 %v9186_v12, %s5435_s11 }
  0xe7   : > { %v6752_v28 = vpop.permute.xlu1 %4429 }
  0xe8   : > { %v6754_v3 = vpop.permute.xlu0 %4424 }
  0xe9   : > { %4719 = vrot.lane.b32.xlu1 %v9187_v21, %s5435_s11  ;;  %v9223_v21 = vld [vmem:[#allocation76_spill] sm:$0xff] }
  0xea   : > { %4714 = vrot.lane.b32.xlu0 %v9188_v15, %s5435_s11 }
  0xeb   : > { %v6760_v24 = vpop.permute.xlu1 %4439 }
  0xec   : > { %9189 = vst [vmem:[#allocation18_spill] sm:$0xff] %v6760_v24  ;;  %v6762_v16 = vpop.permute.xlu0 %4434 }
  0xed   : > { %9190 = vst [vmem:[#allocation17_spill] sm:$0xff] %v6762_v16  ;;  %4729 = vrot.lane.b32.xlu1 %v9191_v26, %s5435_s11  ;;  %v4271_v16 = vunpack.i.l.bf16 %v6504_v61 }
  0xee   : > { %4724 = vrot.lane.b32.xlu0 %v9192_v37, %s5435_s11 }
  0xef   : > { %v6768_v12 = vpop.permute.xlu1 %4449 }
  0xf0   : > { %9193 = vst [vmem:[#allocation26_spill] sm:$0xff] %v6768_v12  ;;  %v6770_v59 = vpop.permute.xlu0 %4444  ;;  %v4272_v12 = vunpack.i.h.bf16 %v6504_v61 }
  0xf1   : > { %9194 = vst [vmem:[#allocation158_spill] sm:$0xff] %v6770_v59  ;;  %4739 = vrot.lane.b32.xlu1 %v9195_v22, %s5435_s11  ;;  %v9199_v22 = vld [vmem:[#allocation33_spill] sm:$0xff] }
  0xf2   : > { %4734 = vrot.lane.b32.xlu0 %v9196_v39, %s5435_s11  ;;  %v5344_v39 = vld [vmem:[%s8651_s1 + $0x8] sm:$0xff]  }
  0xf3   : > { %v6780_v26 = vpop.permute.xlu1 %4459  ;;  %3081 = vmatpush1.bf16.msra.mxu0 %v5344_v39  ;;  %4149 = vmatpush1.bf16.msra.mxu1 %v5344_v39  ;;  %v9207_v39 = vld [vmem:[#allocation44_spill] sm:$0xff] }
  0xf4   : > { %9197 = vst [vmem:[#allocation159_spill] sm:$0xff] %v6780_v26  ;;  %v6783_v47 = vpop.permute.xlu0 %4454  ;;  %3082 = vmatprep.subr.bf16.mxu0 %v8915_v51  ;;  %4141 = vmatprep.subr.bf16.mxu1 %v8915_v51 }
  0xf5   : > { %9198 = vst [vmem:[#allocation160_spill] sm:$0xff] %v6783_v47  ;;  %4749 = vrot.lane.b32.xlu1 %v9199_v22, %s5435_s11  ;;  %v5345_v22 = vld [vmem:[%s8651_s1 + $0x10] sm:$0xff]   ;;  %v9204_v47 = vld [vmem:[#allocation43_spill] sm:$0xff] }
  0xf6   : > { %4744 = vrot.lane.b32.xlu0 %v9200_v56, %s5435_s11 }
  0xf7   : > { %v6794_v37 = vpop.permute.xlu1 %4469  ;;  %3083 = vmatpush1.bf16.msra.mxu0 %v5345_v22  ;;  %4150 = vmatpush1.bf16.msra.mxu1 %v5345_v22  ;;  %v9211_v22 = vld [vmem:[#allocation54_spill] sm:$0xff] }
  0xf8   : > { %9201 = vst [vmem:[#allocation161_spill] sm:$0xff] %v6794_v37  ;;  %v6796_v26 = vpop.permute.xlu0 %4464  ;;  %3084 = vmatprep.subr.bf16.mxu0 %v8915_v51  ;;  %4142 = vmatprep.subr.bf16.mxu1 %v8915_v51 }
  0xf9   : > { %9202 = vst [vmem:[#allocation162_spill] sm:$0xff] %v6796_v26  ;;  %4759 = vrot.lane.b32.xlu1 %v9203_v62, %s5435_s11  ;;  %v5346_v62 = vld [vmem:[%s8651_s1 + $0x18] sm:$0xff]  }
  0xfa   : > { %4754 = vrot.lane.b32.xlu0 %v9204_v47, %s5435_s11  ;;  %v9208_v26 = vld [vmem:[#allocation46_spill] sm:$0xff] }
  0xfb   : > { %v6807_v56 = vpop.permute.xlu1 %4479  ;;  %3085 = vmatpush1.bf16.msra.mxu0 %v5346_v62  ;;  %4151 = vmatpush1.bf16.msra.mxu1 %v5346_v62  ;;  %v9215_v62 = vld [vmem:[#allocation56_spill] sm:$0xff] }
  0xfc   : > { %9205 = vst [vmem:[#allocation163_spill] sm:$0xff] %v6807_v56  ;;  %v6809_v37 = vpop.permute.xlu0 %4474  ;;  %3086 = vmatprep.subr.bf16.mxu0 %v8915_v51  ;;  %4143 = vmatprep.subr.bf16.mxu1 %v8915_v51 }
  0xfd   : > { %9206 = vst [vmem:[#allocation164_spill] sm:$0xff] %v6809_v37  ;;  %4769 = vrot.lane.b32.xlu1 %v9207_v39, %s5435_s11  ;;  %v5347_v39 = vld [vmem:[%s8651_s1 + $0x20] sm:$0xff]  }
  0xfe   : > { %4764 = vrot.lane.b32.xlu0 %v9208_v26, %s5435_s11  ;;  %v9212_v37 = vld [vmem:[#allocation55_spill] sm:$0xff] }
  0xff   : > { %v6820_v47 = vpop.permute.xlu1 %4489  ;;  %3087 = vmatpush1.bf16.msra.mxu0 %v5347_v39  ;;  %4152 = vmatpush1.bf16.msra.mxu1 %v5347_v39  ;;  %v9219_v39 = vld [vmem:[#allocation66_spill] sm:$0xff] }
 0x100   : > { %9209 = vst [vmem:[#allocation165_spill] sm:$0xff] %v6820_v47  ;;  %v6822_v56 = vpop.permute.xlu0 %4484  ;;  %3088 = vmatprep.subr.bf16.mxu0 %v8915_v51  ;;  %4144 = vmatprep.subr.bf16.mxu1 %v8915_v51 }
 0x101   : > { %9210 = vst [vmem:[#allocation166_spill] sm:$0xff] %v6822_v56  ;;  %4779 = vrot.lane.b32.xlu1 %v9211_v22, %s5435_s11  ;;  %v5348_v22 = vld [vmem:[%s8651_s1 + $0x28] sm:$0xff]   ;;  %v9216_v56 = vld [vmem:[#allocation58_spill] sm:$0xff] }
 0x102   : > { %4774 = vrot.lane.b32.xlu0 %v9212_v37, %s5435_s11 }
 0x103   : > { %v6833_v26 = vpop.permute.xlu1 %4499  ;;  %3089 = vmatpush1.bf16.msra.mxu0 %v5348_v22  ;;  %4153 = vmatpush1.bf16.msra.mxu1 %v5348_v22  ;;  %v4257_v22 = vunpack.i.h.bf16 %v6492_v10 }
 0x104   : > { %9213 = vst [vmem:[#allocation167_spill] sm:$0xff] %v6833_v26  ;;  %v6835_v47 = vpop.permute.xlu0 %4494  ;;  %3090 = vmatprep.subr.bf16.mxu0 %v8915_v51  ;;  %4145 = vmatprep.subr.bf16.mxu1 %v8915_v51 }
 0x105   : > { %9214 = vst [vmem:[#allocation168_spill] sm:$0xff] %v6835_v47  ;;  %4789 = vrot.lane.b32.xlu1 %v9215_v62, %s5435_s11  ;;  %v5349_v62 = vld [vmem:[%s8651_s1 + $0x30] sm:$0xff]   ;;  %v9220_v47 = vld [vmem:[#allocation67_spill] sm:$0xff] }
 0x106   : > { %4784 = vrot.lane.b32.xlu0 %v9216_v56, %s5435_s11  ;;  %v4262_v56 = vunpack.i.h.bf16 %v6490_v52 }
 0x107   : > { %v6846_v37 = vpop.permute.xlu1 %4509  ;;  %3091 = vmatpush1.bf16.msra.mxu0 %v5349_v62  ;;  %4154 = vmatpush1.bf16.msra.mxu1 %v5349_v62 }
 0x108   : > { %9217 = vst [vmem:[#allocation169_spill] sm:$0xff] %v6846_v37  ;;  %v6848_v26 = vpop.permute.xlu0 %4504  ;;  %v4261_v37 = vunpack.i.l.bf16 %v6490_v52  ;;  %3092 = vmatprep.subr.bf16.mxu0 %v8915_v51  ;;  %v5350_v52 = vld [vmem:[%s8651_s1 + $0x38] sm:$0xff]   ;;  %4146 = vmatprep.subr.bf16.mxu1 %v8915_v51  ;;  %v6881_v62 = vsel %vm2262_vm2, %v5607_v49, %v4262_v56  ;;  %v9225_v49 = vmov 0   ;;  %v6907_v56 = vsel %vm2262_vm2, %v9103_v14, %v4271_v16 }
 0x109   : > { %9218 = vst [vmem:[#allocation170_spill] sm:$0xff] %v6848_v26  ;;  %4799 = vrot.lane.b32.xlu1 %v9219_v39, %s5435_s11  ;;  %v4256_v39 = vunpack.i.l.bf16 %v6492_v10  ;;  %v4267_v10 = vunpack.i.h.bf16 %v6506_v19  ;;  %v4277_v16 = vunpack.i.h.bf16 %v6522_v17  ;;  %v4276_v14 = vunpack.i.l.bf16 %v6522_v17 }
 0x10a   : > { %4794 = vrot.lane.b32.xlu0 %v9220_v47, %s5435_s11  ;;  %v6885_v61 = vsel %vm2262_vm2, %v5602_v45, %v4261_v37  ;;  %v6903_v45 = vsel %vm2262_vm2, %v5649_v20, %v4272_v12  ;;  %v4281_v20 = vunpack.i.l.bf16 %v6520_v42  ;;  %v9227_v12 = vld [vmem:[#allocation86_spill] sm:$0xff]  ;;  %v4301_v17 = vunpack.i.l.bf16 %v6552_v38 }
 0x10b   : > { %v6861_v26 = vpop.permute.xlu1 %4519  ;;  %3093 = vmatpush1.bf16.msra.mxu0 %v5350_v52  ;;  %v6895_v51 = vsel %vm2262_vm2, %v9101_v2, %v4256_v39  ;;  %4155 = vmatpush1.bf16.msra.mxu1 %v5350_v52  ;;  %v9226_v2 = vld [vmem:[#allocation78_spill] sm:$0xff]  ;;  %v6918_v37 = vsel %vm2262_vm2, %v5659_v25, %v4267_v10  ;;  %v4292_v39 = vunpack.i.h.bf16 %v6536_v57  ;;  %v4287_v52 = vunpack.i.h.bf16 %v6538_v53 }
 0x10c   : > { %9221 = vst [vmem:[#allocation67_spill] sm:$0xff] %v6861_v26  ;;  %v6865_v59 = vpop.permute.xlu0 %4514  ;;  %v6891_v26 = vsel %vm2262_vm2, %v5614_v54, %v4257_v22  ;;  %3094 = vmatprep.subr.bf16.mxu0 %v9225_v49  ;;  %v4282_v54 = vunpack.i.h.bf16 %v6520_v42  ;;  %4147 = vmatprep.subr.bf16.mxu1 %v9225_v49  ;;  %v4291_v22 = vunpack.i.l.bf16 %v6536_v57  ;;  %v4286_v49 = vunpack.i.l.bf16 %v6538_v53 }
 0x10d   : > { %9222 = vst [vmem:[#allocation171_spill] sm:$0xff] %v6865_v59  ;;  %4809 = vrot.lane.b32.xlu1 %v9223_v21, %s5435_s11  ;;  %v9224_v59 = vld [vmem:[#allocation77_spill] sm:$0xff]  ;;  %v4302_v42 = vunpack.i.h.bf16 %v6552_v38  ;;  %v4297_v53 = vunpack.i.h.bf16 %v6554_v50  ;;  %v6950_v38 = vsel %vm2262_vm2, %v5664_v27, %v4281_v20  ;;  %v6972_v27 = vsel %vm2262_vm2, %v9112_v31, %v4287_v52 }
 0x10e   : > { %4804 = vrot.lane.b32.xlu0 %v9224_v59, %s5435_s11  ;;  %v4266_v59 = vunpack.i.l.bf16 %v6506_v19  ;;  %v5351_v19 = vld [vmem:[%s8651_s1 + $0x40] sm:$0xff]   ;;  %v6941_v57 = vsel %vm2262_vm2, %v5666_v29, %v4282_v54  ;;  %v6958_v29 = vsel %vm2262_vm2, %v5656_v23, %v4276_v14  ;;  %v6964_v54 = vsel %vm2262_vm2, %v5709_v63, %v4292_v39 }
 0x10f   : > { %v6887_v21 = vpop.permute.xlu1 %4529  ;;  %3095 = vmatpush1.bf16.msra.mxu0 %v5351_v19  ;;  %4156 = vmatpush1.bf16.msra.mxu1 %v5351_v19  ;;  %v6968_v19 = vsel %vm2262_vm2, %v5674_v34, %v4291_v22  ;;  %v6982_v20 = vsel %vm2262_vm2, %v9117_v7, %v4302_v42  ;;  %v6986_v63 = vsel %vm2262_vm2, %v9116_v41, %v4301_v17  ;;  %v4332_v14 = vunpack.i.h.bf16 %v6600_v46  ;;  %v9234_v42 = vld [vmem:[#allocation62_spill] sm:$0xff] }
 0x110   : > { %v6898_v24 = vpop.permute.xlu0 %4524  ;;  %v6933_v25 = vsel %vm2262_vm2, %v9105_v13, %v4266_v59  ;;  %v9229_v59 = vld [vmem:[#allocation95_spill] sm:$0xff]  ;;  %v6954_v13 = vsel %vm2262_vm2, %v9108_v4, %v4277_v16  ;;  %v6976_v4 = vsel %vm2262_vm2, %v9111_v60, %v4286_v49  ;;  %v2878_v16 = vld [vmem:[#allocation3 + $0x108] sm:$0xff]  ;;  %v6992_v31 = vsel %vm2262_vm2, %v9120_v58, %v4297_v53 }
 0x111   : > { %4819 = vrot.lane.b32.xlu1 %v9226_v2, %s5435_s11  ;;  %v4331_v7 = vunpack.i.l.bf16 %v6600_v46  ;;  %3936 = vmatprep.mubr.msk.bf16.mxu1 %vm2262_vm2, %v2878_v16  ;;  %v4342_v41 = vunpack.i.h.bf16 %v6616_v0  ;;  %v4336_v58 = vunpack.i.l.bf16 %v6618_v18  ;;  %v4352_v46 = vunpack.i.h.bf16 %v6632_v40 }
 0x112   : > { %4814 = vrot.lane.b32.xlu0 %v9227_v12, %s5435_s11  ;;  %v2846_v12 = vld [vmem:[#allocation3 + $0x8] sm:$0xff]  ;;  %v4351_v39 = vunpack.i.l.bf16 %v6632_v40  ;;  %v4346_v22 = vunpack.i.l.bf16 %v6634_v6  ;;  %v4362_v17 = vunpack.i.h.bf16 %v9234_v42  ;;  %v4361_v53 = vunpack.i.l.bf16 %v9234_v42 }
 0x113   : > { %v6929_v2 = vpop.permute.xlu1 %4539  ;;  %3920 = vmatprep.mubr.msk.bf16.mxu0 %vm2262_vm2, %v2846_v12  ;;  %v4341_v12 = vunpack.i.l.bf16 %v6616_v0  ;;  %v7029_v40 = vsel %vm2262_vm2, %v9143_v48, %v4342_v41  ;;  %v7049_v0 = vsel %vm2262_vm2, %v9151_v35, %v4352_v46  ;;  %v9232_v48 = vld [vmem:[#allocation70_spill] sm:$0xff]  ;;  %v4422_v35 = vunpack.i.h.bf16 %v6744_v32 }
 0x114   : > { %9228 = vst [vmem:[#allocation172_spill] sm:$0xff] %v6929_v2  ;;  %v6937_v10 = vpop.permute.xlu0 %4534  ;;  %v4296_v2 = vunpack.i.l.bf16 %v6554_v50  ;;  %v9230_v50 = vld [vmem:[#allocation89_spill] sm:$0xff]  ;;  %v4417_v16 = vunpack.i.h.bf16 %v6746_v11 }
 0x115   : > { %4829 = vrot.lane.b32.xlu1 %v9229_v59, %s5437_s22  ;;  %v4421_v59 = vunpack.i.l.bf16 %v6744_v32  ;;  %v4427_v32 = vunpack.i.h.bf16 %v6754_v3 }
 0x116   : > { %4824 = vrot.lane.b32.xlu0 %v9230_v50, %s5435_s11  ;;  %v6996_v60 = vsel %vm2262_vm2, %v9119_v5, %v4296_v2  ;;  %v4337_v5 = vunpack.i.h.bf16 %v6618_v18  ;;  %v7023_v18 = vsel %vm2262_vm2, %v9137_v9, %v4331_v7  ;;  %v7043_v9 = vsel %vm2262_vm2, %v9145_v43, %v4336_v58  ;;  %v9236_v7 = vld [vmem:[#allocation59_spill] sm:$0xff] }
 0x117   : > { %v6978_v23 = vpop.permute.xlu1 %4549  ;;  %v4431_v58 = vunpack.i.l.bf16 %v6752_v28  ;;  %v9279_v42 = vunpack.i.l.bf16 %v9236_v7 }
 0x118   : > { %v6988_v34 = vpop.permute.xlu0 %4544 }
 0x119   : > { %4839 = vrot.lane.b32.xlu1 %v6502_v30, %s5438_s24  ;;  %v4347_v30 = vunpack.i.h.bf16 %v6634_v6  ;;  %v7033_v6 = vsel %vm2262_vm2, %v9142_v55, %v4341_v12  ;;  %v7053_v55 = vsel %vm2262_vm2, %v9150_v1, %v4351_v39  ;;  %v9235_v1 = vld [vmem:[#allocation94_spill] sm:$0xff]  ;;  %v4426_v39 = vunpack.i.l.bf16 %v6754_v3  ;;  %v9237_v12 = vld [vmem:[#allocation129_spill] sm:$0xff] }
 0x11a   : > { %4834 = vrot.lane.b32.xlu0 %v6408_v36, %s5437_s22  ;;  %v7019_v36 = vsel %vm2262_vm2, %v9138_v44, %v4332_v14  ;;  %v7039_v44 = vsel %vm2262_vm2, %v9146_v33, %v4337_v5  ;;  %v9233_v33 = vld [vmem:[#allocation63_spill] sm:$0xff]  ;;  %v4416_v14 = vunpack.i.l.bf16 %v6746_v11  ;;  %v4432_v5 = vunpack.i.h.bf16 %v6752_v28 }
 0x11b   : > { %v7009_v2 = vpop.permute.xlu1 %4559  ;;  %v7061_v49 = vsel %vm2262_vm2, %v9233_v33, %v4346_v22  ;;  %v2343_v11 = vsel %vm2327_vm3, %v6881_v62, %v4422_v35  ;;  %v2341_v3 = vsel %vm2327_vm3, %v6891_v26, %v4417_v16  ;;  %v9240_v62 = vld [vmem:[#allocation110_spill] sm:$0xff]  ;;  %v2346_v35 = vsel %vm2327_vm3, %v6907_v56, %v4431_v58 }
 0x11c   : > { %v7015_v52 = vpop.permute.xlu0 %4554  ;;  %v2340_v28 = vsel %vm2327_vm3, %v6895_v51, %v4416_v14  ;;  %v2344_v16 = vsel %vm2327_vm3, %v6933_v25, %v4426_v39  ;;  %v2345_v14 = vsel %vm2327_vm3, %v6918_v37, %v4427_v32  ;;  %v9248_v32 = vld [vmem:[#allocation53_spill] sm:$0xff]  ;;  %v9249_v39 = vld [vmem:[#allocation26_spill] sm:$0xff] }
 0x11d   : > { %4849 = vrot.lane.b32.xlu1 %v9188_v15, %s5439_s26 }
 0x11e   : > { %4844 = vrot.lane.b32.xlu0 %v6630_v8, %s5438_s24  ;;  %v7057_v8 = vsel %vm2262_vm2, %v9232_v48, %v4347_v30 }
 0x11f   : > { %v7045_v15 = vpop.permute.xlu1 %4569 }
 0x120   : > { %9231 = vst [vmem:[#allocation95_spill] sm:$0xff] %v7045_v15  ;;  %v7063_v43 = vpop.permute.xlu0 %4564 }
 0x121   : > { %4859 = vrot.lane.b32.xlu1 %v9235_v1, %s5437_s22 }
 0x122   : > { %4854 = vrot.lane.b32.xlu0 %v9220_v47, %s5439_s26  ;;  %v2342_v47 = vsel %vm2327_vm3, %v6885_v61, %v4421_v59  ;;  %v2347_v61 = vsel %vm2327_vm3, %v6903_v45, %v4432_v5  ;;  %v9243_v45 = vld [vmem:[#allocation18_spill] sm:$0xff] }
 0x123   : > { %v4580_v46 = vpop.permute.xlu1 %4579  ;;  %v4442_v5 = vunpack.i.h.bf16 %v9243_v45  ;;  %v4441_v56 = vunpack.i.l.bf16 %v9243_v45  ;;  %v9252_v45 = vld [vmem:[#allocation158_spill] sm:$0xff] }
 0x124   : > { %v4582_v30 = vunpack.i.h.bf16 %v4580_v46  ;;  %v4581_v22 = vunpack.i.l.bf16 %v4580_v46  ;;  %v4575_v48 = vpop.permute.xlu0 %4574 }
 0x125   : > { %v4577_v33 = vunpack.i.h.bf16 %v4575_v48  ;;  %v4576_v1 = vunpack.i.l.bf16 %v4575_v48  ;;  %4869 = vrot.lane.b32.xlu1 %v9237_v12, %s5438_s24 }
 0x126   : > { %v7092_v46 = vsel %vm2392_vm4, %v2342_v47, %v4581_v22  ;;  %v7095_v41 = vsel %vm2392_vm4, %v2343_v11, %v4582_v30  ;;  %4864 = vrot.lane.b32.xlu0 %v9240_v62, %s5437_s22  ;;  %v9244_v11 = vld [vmem:[#allocation25_spill] sm:$0xff] }
 0x127   : > { %9238 = vst [vmem:[#allocation89_spill] sm:$0xff] %v7092_v46  ;;  %9239 = vst [vmem:[#allocation70_spill] sm:$0xff] %v7095_v41  ;;  %v7104_v51 = vsel %vm2392_vm4, %v2340_v28, %v4576_v1  ;;  %v7107_v26 = vsel %vm2392_vm4, %v2341_v3, %v4577_v33  ;;  %v4590_v59 = vpop.permute.xlu1 %4589  ;;  %v9245_v47 = vld [vmem:[#allocation17_spill] sm:$0xff]  ;;  %v4452_v28 = vunpack.i.h.bf16 %v9249_v39  ;;  %v4451_v3 = vunpack.i.l.bf16 %v9249_v39  ;;  %v9390_v41 = vld [vmem:[#allocation140_spill] sm:$0xff] }
 0x128   : > { %9241 = vst [vmem:[#allocation63_spill] sm:$0xff] %v7104_v51  ;;  %9242 = vst [vmem:[#allocation62_spill] sm:$0xff] %v7107_v26  ;;  %v4592_v12 = vunpack.i.h.bf16 %v4590_v59  ;;  %v4591_v30 = vunpack.i.l.bf16 %v4590_v59  ;;  %v4585_v22 = vpop.permute.xlu0 %4584  ;;  %v4437_v33 = vunpack.i.h.bf16 %v9245_v47  ;;  %v4436_v1 = vunpack.i.l.bf16 %v9245_v47  ;;  %v9392_v46 = vld [vmem:[#allocation13_spill] sm:$0xff]  ;;  %v9416_v51 = vld [vmem:[#allocation48_spill] sm:$0xff] }
 0x129   : > { %v4587_v58 = vunpack.i.h.bf16 %v4585_v22  ;;  %v4586_v48 = vunpack.i.l.bf16 %v4585_v22  ;;  %4879 = vrot.lane.b32.xlu1 %v9244_v11, %s5439_s26  ;;  %v2351_v47 = vsel %vm2327_vm3, %v6941_v57, %v4442_v5  ;;  %v9256_v57 = vld [vmem:[#allocation66_spill] sm:$0xff]  ;;  %v2354_v5 = vsel %vm2327_vm3, %v6968_v19, %v4451_v3 }
 0x12a   : > { %v7120_v25 = vsel %vm2392_vm4, %v2346_v35, %v4591_v30  ;;  %v7123_v37 = vsel %vm2392_vm4, %v2347_v61, %v4592_v12  ;;  %4874 = vrot.lane.b32.xlu0 %v9248_v32, %s5438_s24  ;;  %v4447_v35 = vunpack.i.h.bf16 %v9252_v45  ;;  %v4446_v30 = vunpack.i.l.bf16 %v9252_v45 }
 0x12b   : > { %9246 = vst [vmem:[#allocation94_spill] sm:$0xff] %v7120_v25  ;;  %9247 = vst [vmem:[#allocation59_spill] sm:$0xff] %v7123_v37  ;;  %v7130_v62 = vsel %vm2392_vm4, %v2344_v16, %v4586_v48  ;;  %v7133_v59 = vsel %vm2392_vm4, %v2345_v14, %v4587_v58  ;;  %v4600_v22 = vpop.permute.xlu1 %4599  ;;  %v2350_v32 = vsel %vm2327_vm3, %v6950_v38, %v4441_v56  ;;  %v9253_v48 = vld [vmem:[#allocation97_spill] sm:$0xff]  ;;  %v4138_v25 = vld [vmem:[%s5530_s7 + $0x118] sm:$0xff]  }
 0x12c   : > { %9250 = vst [vmem:[#allocation129_spill] sm:$0xff] %v7130_v62  ;;  %9251 = vst [vmem:[#allocation110_spill] sm:$0xff] %v7133_v59  ;;  %v4602_v61 = vunpack.i.h.bf16 %v4600_v22  ;;  %v4601_v12 = vunpack.i.l.bf16 %v4600_v22  ;;  %v4595_v11 = vpop.permute.xlu0 %4594  ;;  %v2348_v14 = vsel %vm2327_vm3, %v6958_v29, %v4436_v1  ;;  %v2349_v58 = vsel %vm2327_vm3, %v6954_v13, %v4437_v33  ;;  %v9331_v37 = vld [vmem:[#allocation65_spill] sm:$0xff]  ;;  %v9386_v62 = vld [vmem:[#allocation127_spill] sm:$0xff] }
 0x12d   : > { %v4597_v39 = vunpack.i.h.bf16 %v4595_v11  ;;  %v4596_v16 = vunpack.i.l.bf16 %v4595_v11  ;;  %4889 = vrot.lane.b32.xlu1 %v9253_v48, %s5437_s22  ;;  %v2355_v38 = vsel %vm2327_vm3, %v6964_v54, %v4452_v28  ;;  %v2352_v33 = vsel %vm2327_vm3, %v6976_v4, %v4446_v30  ;;  %v9259_v54 = vld [vmem:[#allocation159_spill] sm:$0xff]  ;;  %v9265_v30 = vld [vmem:[#allocation68_spill] sm:$0xff] }
 0x12e   : > { %v7148_v22 = vsel %vm2392_vm4, %v2350_v32, %v4601_v12  ;;  %v7151_v45 = vsel %vm2392_vm4, %v2351_v47, %v4602_v61  ;;  %4884 = vrot.lane.b32.xlu0 %v9256_v57, %s5439_s26  ;;  %v2353_v1 = vsel %vm2327_vm3, %v6972_v27, %v4447_v35  ;;  %v4462_v28 = vunpack.i.h.bf16 %v9259_v54  ;;  %v9260_v32 = vld [vmem:[#allocation21_spill] sm:$0xff]  ;;  %v9264_v35 = vld [vmem:[#allocation112_spill] sm:$0xff] }
 0x12f   : > { %9254 = vst [vmem:[#allocation18_spill] sm:$0xff] %v7148_v22  ;;  %9255 = vst [vmem:[#allocation25_spill] sm:$0xff] %v7151_v45  ;;  %v7160_v29 = vsel %vm2392_vm4, %v2348_v14, %v4596_v16  ;;  %v7163_v13 = vsel %vm2392_vm4, %v2349_v58, %v4597_v39  ;;  %v4610_v56 = vpop.permute.xlu1 %4609  ;;  %v4461_v19 = vunpack.i.l.bf16 %v9259_v54  ;;  %v9261_v39 = vld [vmem:[#allocation160_spill] sm:$0xff]  ;;  %v4372_v14 = vunpack.i.h.bf16 %v9265_v30  ;;  %v9268_v54 = vld [vmem:[#allocation139_spill] sm:$0xff] }
 0x130   : > { %9257 = vst [vmem:[#allocation17_spill] sm:$0xff] %v7160_v29  ;;  %9258 = vst [vmem:[#allocation53_spill] sm:$0xff] %v7163_v13  ;;  %v4612_v61 = vunpack.i.h.bf16 %v4610_v56  ;;  %v4611_v12 = vunpack.i.l.bf16 %v4610_v56  ;;  %v4605_v11 = vpop.permute.xlu0 %4604  ;;  %v4457_v16 = vunpack.i.h.bf16 %v9261_v39  ;;  %v4456_v48 = vunpack.i.l.bf16 %v9261_v39  ;;  %v9302_v29 = vld [vmem:[#allocation27_spill] sm:$0xff] }
 0x131   : > { %v4607_v3 = vunpack.i.h.bf16 %v4605_v11  ;;  %v4606_v47 = vunpack.i.l.bf16 %v4605_v11  ;;  %4899 = vrot.lane.b32.xlu1 %v9260_v32, %s5438_s24  ;;  %v4371_v58 = vunpack.i.l.bf16 %v9265_v30  ;;  %v2359_v39 = vsel %vm2327_vm3, %v6982_v20, %v4462_v28  ;;  %v9272_v20 = vld [vmem:[#allocation61_spill] sm:$0xff] }
 0x132   : > { %v7176_v4 = vsel %vm2392_vm4, %v2354_v5, %v4611_v12  ;;  %v7179_v27 = vsel %vm2392_vm4, %v2355_v38, %v4612_v61  ;;  %4894 = vrot.lane.b32.xlu0 %v9264_v35, %s5437_s22  ;;  %v4367_v5 = vunpack.i.h.bf16 %v9268_v54  ;;  %v4366_v12 = vunpack.i.l.bf16 %v9268_v54 }
 0x133   : > { %9262 = vst [vmem:[#allocation26_spill] sm:$0xff] %v7176_v4  ;;  %9263 = vst [vmem:[#allocation158_spill] sm:$0xff] %v7179_v27  ;;  %v7186_v57 = vsel %vm2392_vm4, %v2352_v33, %v4606_v47  ;;  %v7189_v56 = vsel %vm2392_vm4, %v2353_v1, %v4607_v3  ;;  %v4620_v11 = vpop.permute.xlu1 %4619  ;;  %v2358_v35 = vsel %vm2327_vm3, %v6986_v63, %v4461_v19  ;;  %v9269_v47 = vld [vmem:[#allocation28_spill] sm:$0xff] }
 0x134   : > { %9266 = vst [vmem:[#allocation97_spill] sm:$0xff] %v7186_v57  ;;  %9267 = vst [vmem:[#allocation66_spill] sm:$0xff] %v7189_v56  ;;  %v4622_v38 = vunpack.i.h.bf16 %v4620_v11  ;;  %v4621_v61 = vunpack.i.l.bf16 %v4620_v11  ;;  %v4615_v32 = vpop.permute.xlu0 %4614  ;;  %v2356_v1 = vsel %vm2327_vm3, %v6996_v60, %v4456_v48  ;;  %v2357_v3 = vsel %vm2327_vm3, %v6992_v31, %v4457_v16  ;;  %v9273_v63 = vld [vmem:[#allocation72_spill] sm:$0xff]  ;;  %v9274_v60 = vld [vmem:[#allocation71_spill] sm:$0xff] }
 0x135   : > { %v4617_v30 = vunpack.i.h.bf16 %v4615_v32  ;;  %v4616_v33 = vunpack.i.l.bf16 %v4615_v32  ;;  %4909 = vrot.lane.b32.xlu1 %v9269_v47, %s5439_s26  ;;  %v7215_v28 = vsel %vm2262_vm2, %v9273_v63, %v4362_v17  ;;  %v7221_v31 = vsel %vm2262_vm2, %v9274_v60, %v4361_v53  ;;  %v9280_v32 = vld [vmem:[#allocation69_spill] sm:$0xff]  ;;  %v9282_v47 = vld [vmem:[#allocation143_spill] sm:$0xff]  ;;  %v9284_v63 = vld [vmem:[#allocation80_spill] sm:$0xff] }
 0x136   : > { %v7204_v11 = vsel %vm2392_vm4, %v2358_v35, %v4621_v61  ;;  %v7207_v54 = vsel %vm2392_vm4, %v2359_v39, %v4622_v38  ;;  %4904 = vrot.lane.b32.xlu0 %v9272_v20, %s5438_s24  ;;  %v9277_v38 = vunpack.i.h.bf16 %v9236_v7  ;;  %v9278_v61 = vld [vmem:[#allocation74_spill] sm:$0xff]  ;;  %v7241_v53 = vsel %vm2262_vm2, %v9280_v32, %v9279_v42  ;;  %v9283_v20 = vld [vmem:[#allocation96_spill] sm:$0xff]  ;;  %v9285_v60 = vld [vmem:[#allocation75_spill] sm:$0xff] }
 0x137   : > { %9270 = vst [vmem:[#allocation159_spill] sm:$0xff] %v7204_v11  ;;  %9271 = vst [vmem:[#allocation21_spill] sm:$0xff] %v7207_v54  ;;  %v7224_v19 = vsel %vm2392_vm4, %v2356_v1, %v4616_v33  ;;  %v7227_v16 = vsel %vm2392_vm4, %v2357_v3, %v4617_v30  ;;  %v7229_v48 = vpop.permute.xlu1 %4629  ;;  %v9281_v39 = vld [vmem:[#allocation142_spill] sm:$0xff]  ;;  %v4377_v1 = vunpack.i.h.bf16 %v9282_v47  ;;  %v4376_v3 = vunpack.i.l.bf16 %v9282_v47  ;;  %v9287_v32 = vld [vmem:[#allocation73_spill] sm:$0xff] }
 0x138   : > { %9275 = vst [vmem:[#allocation160_spill] sm:$0xff] %v7224_v19  ;;  %9276 = vst [vmem:[#allocation112_spill] sm:$0xff] %v7227_v16  ;;  %v7235_v17 = vsel %vm2262_vm2, %v9278_v61, %v9277_v38  ;;  %v4382_v35 = vunpack.i.h.bf16 %v9281_v39  ;;  %v4381_v33 = vunpack.i.l.bf16 %v9281_v39  ;;  %v7245_v30 = vpop.permute.xlu0 %4624  ;;  %v7253_v7 = vsel %vm2262_vm2, %v9284_v63, %v4372_v14  ;;  %v9286_v61 = vld [vmem:[#allocation82_spill] sm:$0xff]  ;;  %v9288_v47 = vld [vmem:[#allocation77_spill] sm:$0xff] }
 0x139   : > { %4919 = vrot.lane.b32.xlu1 %v9283_v20, %s5437_s22  ;;  %v7257_v38 = vsel %vm2262_vm2, %v9285_v60, %v4371_v58  ;;  %v7261_v42 = vsel %vm2262_vm2, %v9286_v61, %v4367_v5  ;;  %v7265_v39 = vsel %vm2262_vm2, %v9287_v32, %v4366_v12  ;;  %v9289_v20 = vld [vmem:[#allocation165_spill] sm:$0xff]  ;;  %v9290_v11 = vld [vmem:[#allocation84_spill] sm:$0xff]  ;;  %v9291_v60 = vld [vmem:[#allocation83_spill] sm:$0xff] }
 0x13a   : > { %4914 = vrot.lane.b32.xlu0 %v9288_v47, %s5439_s26  ;;  %v4492_v54 = vunpack.i.h.bf16 %v9289_v20  ;;  %v4491_v14 = vunpack.i.l.bf16 %v9289_v20  ;;  %v7275_v58 = vsel %vm2262_vm2, %v9290_v11, %v4382_v35  ;;  %v7279_v5 = vsel %vm2262_vm2, %v9291_v60, %v4381_v33  ;;  %v9292_v61 = vld [vmem:[#allocation167_spill] sm:$0xff]  ;;  %v9294_v20 = vld [vmem:[#allocation81_spill] sm:$0xff]  ;;  %v9295_v11 = vld [vmem:[#allocation168_spill] sm:$0xff] }
 0x13b   : > { %v7271_v63 = vpop.permute.xlu1 %4639  ;;  %v4502_v12 = vunpack.i.h.bf16 %v9292_v61  ;;  %v4501_v32 = vunpack.i.l.bf16 %v9292_v61  ;;  %v9293_v47 = vld [vmem:[#allocation87_spill] sm:$0xff]  ;;  %v7291_v27 = vsel %vm2262_vm2, %v9294_v20, %v4376_v3  ;;  %v4497_v35 = vunpack.i.h.bf16 %v9295_v11  ;;  %v9296_v33 = vld [vmem:[#allocation130_spill] sm:$0xff]  ;;  %v9297_v60 = vld [vmem:[#allocation169_spill] sm:$0xff] }
 0x13c   : > { %v7283_v16 = vpop.permute.xlu0 %4634  ;;  %v7287_v19 = vsel %vm2262_vm2, %v9293_v47, %v4377_v1  ;;  %v4496_v4 = vunpack.i.l.bf16 %v9295_v11  ;;  %v4512_v56 = vunpack.i.h.bf16 %v9297_v60  ;;  %v4511_v61 = vunpack.i.l.bf16 %v9297_v60  ;;  %v9298_v57 = vld [vmem:[#allocation111_spill] sm:$0xff]  ;;  %v9299_v47 = vld [vmem:[#allocation170_spill] sm:$0xff] }
 0x13d   : > { %4929 = vrot.lane.b32.xlu1 %v9296_v33, %s5438_s24  ;;  %v2371_v1 = vsel %vm2327_vm3, %v7019_v36, %v4492_v54  ;;  %v2370_v3 = vsel %vm2327_vm3, %v7023_v18, %v4491_v14  ;;  %v4507_v20 = vunpack.i.h.bf16 %v9299_v47  ;;  %v4506_v11 = vunpack.i.l.bf16 %v9299_v47  ;;  %v9301_v54 = vld [vmem:[#allocation67_spill] sm:$0xff] }
 0x13e   : > { %4924 = vrot.lane.b32.xlu0 %v9298_v57, %s5437_s22  ;;  %v2375_v33 = vsel %vm2327_vm3, %v7029_v40, %v4502_v12  ;;  %v2374_v60 = vsel %vm2327_vm3, %v7033_v6, %v4501_v32  ;;  %v2372_v36 = vsel %vm2327_vm3, %v7043_v9, %v4496_v4  ;;  %v2373_v18 = vsel %vm2327_vm3, %v7039_v44, %v4497_v35  ;;  %v9305_v44 = vld [vmem:[#allocation57_spill] sm:$0xff]  ;;  %v9306_v12 = vld [vmem:[#allocation171_spill] sm:$0xff] }
 0x13f   : > { %v4650_v45 = vpop.permute.xlu1 %4649  ;;  %v4522_v14 = vunpack.i.h.bf16 %v9301_v54  ;;  %v4521_v47 = vunpack.i.l.bf16 %v9301_v54  ;;  %v2379_v40 = vsel %vm2327_vm3, %v7049_v0, %v4512_v56  ;;  %v2378_v6 = vsel %vm2327_vm3, %v7053_v55, %v4511_v61 }
 0x140   : > { %v4652_v22 = vunpack.i.h.bf16 %v4650_v45  ;;  %v4651_v13 = vunpack.i.l.bf16 %v4650_v45  ;;  %v7311_v57 = vpop.permute.xlu0 %4644  ;;  %v2376_v4 = vsel %vm2327_vm3, %v7061_v49, %v4506_v11  ;;  %v4517_v0 = vunpack.i.h.bf16 %v9306_v12 }
 0x141   : > { %9300 = vst [vmem:[#allocation68_spill] sm:$0xff] %v7311_v57  ;;  %4939 = vrot.lane.b32.xlu1 %v9302_v29, %s5439_s26  ;;  %v2377_v29 = vsel %vm2327_vm3, %v7057_v8, %v4507_v20  ;;  %v4516_v56 = vunpack.i.l.bf16 %v9306_v12  ;;  %v4531_v32 = vunpack.i.l.bf16 %v6887_v21  ;;  %v2382_v49 = vsel %vm2327_vm3, %v7221_v31, %v4521_v47  ;;  %v9307_v20 = vld [vmem:[#allocation99_spill] sm:$0xff] }
 0x142   : > { %v7326_v45 = vsel %vm2392_vm4, %v2370_v3, %v4651_v13  ;;  %v7329_v9 = vsel %vm2392_vm4, %v2371_v1, %v4652_v22  ;;  %4934 = vrot.lane.b32.xlu0 %v9305_v44, %s5438_s24  ;;  %v4532_v13 = vunpack.i.h.bf16 %v6887_v21  ;;  %v2383_v1 = vsel %vm2327_vm3, %v7215_v28, %v4522_v14  ;;  %v9310_v28 = vld [vmem:[#allocation76_spill] sm:$0xff] }
 0x143   : > { %9303 = vst [vmem:[#allocation139_spill] sm:$0xff] %v7326_v45  ;;  %9304 = vst [vmem:[#allocation28_spill] sm:$0xff] %v7329_v9  ;;  %v4660_v55 = vpop.permute.xlu1 %4659  ;;  %v4527_v11 = vunpack.i.h.bf16 %v6898_v24  ;;  %v4526_v54 = vunpack.i.l.bf16 %v6898_v24  ;;  %v2380_v31 = vsel %vm2327_vm3, %v7241_v53, %v4516_v56  ;;  %v2381_v14 = vsel %vm2327_vm3, %v7235_v17, %v4517_v0  ;;  %v9313_v17 = vld [vmem:[#allocation23_spill] sm:$0xff]  ;;  %v9420_v9 = vld [vmem:[#allocation50_spill] sm:$0xff] }
 0x144   : > { %v4662_v22 = vunpack.i.h.bf16 %v4660_v55  ;;  %v4661_v35 = vunpack.i.l.bf16 %v4660_v55  ;;  %v4655_v61 = vpop.permute.xlu0 %4654  ;;  %v2386_v12 = vsel %vm2327_vm3, %v7257_v38, %v4531_v32  ;;  %v9314_v0 = vld [vmem:[#allocation79_spill] sm:$0xff]  ;;  %v9318_v32 = vld [vmem:[#allocation114_spill] sm:$0xff] }
 0x145   : > { %v4657_v3 = vunpack.i.h.bf16 %v4655_v61  ;;  %v4656_v8 = vunpack.i.l.bf16 %v4655_v61  ;;  %4949 = vrot.lane.b32.xlu1 %v9307_v20, %s5437_s22  ;;  %v630_v61 = vrot.slane %v9314_v0, 2 }
 0x146   : > { %v7350_v21 = vsel %vm2392_vm4, %v2374_v60, %v4661_v35  ;;  %v7353_v44 = vsel %vm2392_vm4, %v2375_v33, %v4662_v22  ;;  %4944 = vrot.lane.b32.xlu0 %v9310_v28, %s5439_s26  ;;  %v2387_v33 = vsel %vm2327_vm3, %v7253_v7, %v4532_v13  ;;  %v2385_v7 = vsel %vm2327_vm3, %v7261_v42, %v4527_v11 }
 0x147   : > { %9308 = vst [vmem:[#allocation61_spill] sm:$0xff] %v7350_v21  ;;  %9309 = vst [vmem:[#allocation72_spill] sm:$0xff] %v7353_v44  ;;  %v7362_v47 = vsel %vm2392_vm4, %v2372_v36, %v4656_v8  ;;  %v7365_v24 = vsel %vm2392_vm4, %v2373_v18, %v4657_v3  ;;  %v4670_v60 = vpop.permute.xlu1 %4669  ;;  %v4137_v36 = vld [vmem:[%s5530_s7 + $0x110] sm:$0xff]   ;;  %v2384_v8 = vsel %vm2327_vm3, %v7265_v39, %v4526_v54  ;;  %v9389_v44 = vld [vmem:[#allocation128_spill] sm:$0xff]  ;;  %s246_s7 = sand.u32 1, %s5414_s16  }
 0x148   : > { %9311 = vst [vmem:[#allocation71_spill] sm:$0xff] %v7362_v47  ;;  %9312 = vst [vmem:[#allocation74_spill] sm:$0xff] %v7365_v24  ;;  %v4672_v55 = vunpack.i.h.bf16 %v4670_v60  ;;  %v4671_v22 = vunpack.i.l.bf16 %v4670_v60  ;;  %v4665_v35 = vpop.permute.xlu0 %4664  ;;  %v9315_v18 = vld [vmem:[#allocation149_spill] sm:$0xff]  ;;  %v4247_v21 = vunpack.i.h.bf16 %v9389_v44  ;;  %v9402_v24 = vld [vmem:[#allocation19_spill] sm:$0xff]  ;;  %s3909_s6 = sshll.u32 %s246_s7, 9  ;;  %s8604_s18 = scalar_lea.sflag [#allocation5], %s246_s7 }
 0x149   : > { %v4667_v53 = vunpack.i.h.bf16 %v4665_v35  ;;  %v4666_v56 = vunpack.i.l.bf16 %v4665_v35  ;;  %4959 = vrot.lane.b32.xlu1 %v9313_v17, %s5438_s24  ;;  %v8919_v3 = vrot.slane %v9315_v18, 2  ;;  %v9327_v35 = vld [vmem:[#allocation172_spill] sm:$0xff]  ;;  %s8404_s8 = scalar_lea.vmem [#allocation4], %s3909_s6 }
 0x14a   : > { %v7381_v38 = vsel %vm2392_vm4, %v2378_v6, %v4671_v22  ;;  %v7384_v13 = vsel %vm2392_vm4, %v2379_v40, %v4672_v55  ;;  %4954 = vrot.lane.b32.xlu0 %v9318_v32, %s5437_s22  ;;  %v9323_v6 = vld [vmem:[#allocation85_spill] sm:$0xff]  ;;  %v7406_v22 = vunpack.c.l.bf16 %v4137_v36  ;;  %s3783_s10 = sshll.u32 %s8404_s8, 4  ;;  %s8597_s10 = int_to_ptr.vmem [resolvable:$true] %s3783_s10 }
 0x14b   : > { %9316 = vst [vmem:[#allocation69_spill] sm:$0xff] %v7381_v38  ;;  %9317 = vst [vmem:[#allocation142_spill] sm:$0xff] %v7384_v13  ;;  %v7389_v20 = vsel %vm2392_vm4, %v2376_v4, %v4666_v56  ;;  %v7392_v28 = vsel %vm2392_vm4, %v2377_v29, %v4667_v53  ;;  %v4680_v60 = vpop.permute.xlu1 %4679  ;;  %v7398_v42 = vsel %vm637_vm1, %v630_v61, %v8919_v3  ;;  %v9324_v11 = vrot.slane %v9323_v6, 2  ;;  %v9328_v3 = vld [vmem:[#allocation32_spill] sm:$0xff]  ;;  %s5352_s21 = scalar_lea.vmem %s8597_s10, 8192 }
 0x14c   : > { %9319 = vst [vmem:[#allocation143_spill] sm:$0xff] %v7389_v20  ;;  %9320 = vst [vmem:[#allocation96_spill] sm:$0xff] %v7392_v28  ;;  %v4682_v54 = vunpack.i.h.bf16 %v4680_v60  ;;  %v4681_v4 = vunpack.i.l.bf16 %v4680_v60  ;;  %v4675_v55 = vpop.permute.xlu0 %4674  ;;  %v4542_v53 = vunpack.i.h.bf16 %v9327_v35  ;;  %v4541_v56 = vunpack.i.l.bf16 %v9327_v35  ;;  %v9384_v28 = vld [vmem:[#allocation124_spill] sm:$0xff]  ;;  %p5353_p12 = scmp.ne.s32.totalorder %s8597_s10, %s5352_s21 }
 0x14d   : > { %9322 = vst [vmem:[#allocation80_spill] sm:$0xff] %v7398_v42  ;;  %v7404_v40 = vsel %vm637_vm1, %v9324_v11, %v630_v61  ;;  %9326 = vst [vmem:[#allocation82_spill] sm:$0xff] %v7406_v22  ;;  %v4677_v17 = vunpack.i.h.bf16 %v4675_v55  ;;  %v4676_v32 = vunpack.i.l.bf16 %v4675_v55  ;;  %4969 = vrot.lane.b32.xlu1 %v9328_v3, %s5439_s26  ;;  %v4537_v61 = vunpack.i.h.bf16 %v6937_v10 }
 0x14e   : > { %9325 = vst [vmem:[#allocation75_spill] sm:$0xff] %v7404_v40  ;;  %v7416_v11 = vsel %vm2392_vm4, %v2382_v49, %v4681_v4  ;;  %v7419_v60 = vsel %vm2392_vm4, %v2383_v1, %v4682_v54  ;;  %4964 = vrot.lane.b32.xlu0 %v9331_v37, %s5438_s24  ;;  %v7423_v29 = vunpack.c.h.bf16 %v4137_v36  ;;  %v4536_v35 = vunpack.i.l.bf16 %v6937_v10  ;;  %v9336_v10 = vld [vmem:[#allocation98_spill] sm:$0xff]  ;;  %p5354_p13 = pnand %p5353_p12, %p5508_p4 }
 0x14f   : > { %9329 = vst [vmem:[#allocation73_spill] sm:$0xff] %v7416_v11  ;;  %9330 = vst [vmem:[#allocation77_spill] sm:$0xff] %v7419_v60  ;;  %v7428_v55 = vsel %vm2392_vm4, %v2380_v31, %v4676_v32  ;;  %v7431_v3 = vsel %vm2392_vm4, %v2381_v14, %v4677_v17  ;;  %v4690_v13 = vpop.permute.xlu1 %4689  ;;  %v7433_v49 = vunpack.c.l.bf16 %v4138_v25  ;;  %v2774_v31 = vpack.c.bf16 %v7398_v42, %v7404_v40  ;;  %v9339_v37 = vld [vmem:[#allocation86_spill] sm:$0xff] }
 0x150   : > { %9332 = vst [vmem:[#allocation165_spill] sm:$0xff] %v7423_v29  ;;  %9333 = vst [vmem:[#allocation84_spill] sm:$0xff] %v7428_v55  ;;  %v4692_v4 = vunpack.i.h.bf16 %v4690_v13  ;;  %v4691_v1 = vunpack.i.l.bf16 %v4690_v13  ;;  %v4685_v54 = vpop.permute.xlu0 %4684  ;;  %v487_v14 = vrot.slane %v7423_v29, 1  ;;  %v2391_v17 = vsel %vm2327_vm3, %v7275_v58, %v4542_v53  ;;  %v9381_v55 = vld [vmem:[#allocation120_spill] sm:$0xff]  ;;  %p5355_p0 = pneg %p5354_p13 }
 0x151   : > { %9334 = vst [vmem:[#allocation83_spill] sm:$0xff] %v7431_v3  ;;  %9335 = vst [vmem:[#allocation167_spill] sm:$0xff] %v7433_v49  ;;  %v4687_v36 = vunpack.i.h.bf16 %v4685_v54  ;;  %v4686_v11 = vunpack.i.l.bf16 %v4685_v54  ;;  %4979 = vrot.lane.b32.xlu1 %v9336_v10, %s5437_s22  ;;  %v488_v54 = vrot.slane %v7433_v49, 1  ;;  %v2390_v10 = vsel %vm2327_vm3, %v7279_v5, %v4541_v56 }
 0x152   : > { %v7446_v13 = vsel %vm2392_vm4, %v2386_v12, %v4691_v1  ;;  %v7449_v32 = vsel %vm2392_vm4, %v2387_v33, %v4692_v4  ;;  %4974 = vrot.lane.b32.xlu0 %v9339_v37, %s5439_s26  ;;  %2838 = vst.msk [vmem:[#allocation3 + $0x1c8] sm:$0xff] %vm2262_vm2, %v2774_v31  ;;  %v9342_v33 = vrot.slane %v7406_v22, 1  ;;  %v2388_v53 = vsel %vm2327_vm3, %v7291_v27, %v4536_v35  ;;  %v9345_v1 = vld [vmem:[#allocation24_spill] sm:$0xff] }
 0x153   : > { %9337 = vst [vmem:[#allocation87_spill] sm:$0xff] %v7446_v13  ;;  %9338 = vst [vmem:[#allocation81_spill] sm:$0xff] %v7449_v32  ;;  %v7457_v60 = vsel %vm2392_vm4, %v2384_v8, %v4686_v11  ;;  %v7460_v3 = vsel %vm2392_vm4, %v2385_v7, %v4687_v36  ;;  %v4700_v58 = vpop.permute.xlu1 %4699  ;;  %v7473_v8 = vsel %vm492_vm0, %v487_v14, %v488_v54  ;;  %v9346_v36 = vld [vmem:[#allocation150_spill] sm:$0xff]  ;;  %v4227_v38 = vunpack.i.h.bf16 %v9381_v55 }
 0x154   : > { %9340 = vst [vmem:[#allocation168_spill] sm:$0xff] %v7457_v60  ;;  %9341 = vst [vmem:[#allocation130_spill] sm:$0xff] %v7460_v3  ;;  %v7467_v12 = vsel %vm492_vm0, %v9342_v33, %v487_v14  ;;  %v4702_v4 = vunpack.i.h.bf16 %v4700_v58  ;;  %v4701_v5 = vunpack.i.l.bf16 %v4700_v58  ;;  %v4695_v56 = vpop.permute.xlu0 %4694  ;;  %v632_v31 = vrot.slane %v9346_v36, 2  ;;  %v9349_v14 = vld [vmem:[#allocation113_spill] sm:$0xff] }
 0x155   : > { %9343 = vst [vmem:[#allocation169_spill] sm:$0xff] %v7467_v12  ;;  %9344 = vst [vmem:[#allocation111_spill] sm:$0xff] %v7473_v8  ;;  %v4697_v7 = vunpack.i.h.bf16 %v4695_v56  ;;  %v4696_v11 = vunpack.i.l.bf16 %v4695_v56  ;;  %4989 = vrot.lane.b32.xlu1 %v9345_v1, %s5438_s24  ;;  %v2389_v27 = vsel %vm2327_vm3, %v7287_v19, %v4537_v61  ;;  %v633_v33 = vrot.slane %v7406_v22, 2  ;;  %v9372_v3 = vld [vmem:[#allocation141_spill] sm:$0xff]  ;;  %v9417_v12 = vld [vmem:[#allocation147_spill] sm:$0xff] }
 0x156   : > { %v7483_v35 = vsel %vm2392_vm4, %v2390_v10, %v4701_v5  ;;  %v7486_v58 = vsel %vm2392_vm4, %v2391_v17, %v4702_v4  ;;  %4984 = vrot.lane.b32.xlu0 %v9349_v14, %s5437_s22  ;;  %v9352_v19 = vrot.slane %v9315_v18, 2  ;;  %v634_v4 = vrot.slane %v7423_v29, 2  ;;  %v9419_v29 = vld [vmem:[#allocation39_spill] sm:$0xff] }
 0x157   : > { %9347 = vst [vmem:[#allocation170_spill] sm:$0xff] %v7483_v35  ;;  %9348 = vst [vmem:[#allocation67_spill] sm:$0xff] %v7486_v58  ;;  %v7492_v56 = vsel %vm2392_vm4, %v2388_v53, %v4696_v11  ;;  %v7495_v1 = vsel %vm2392_vm4, %v2389_v27, %v4697_v7  ;;  %v7497_v37 = vpop.permute.xlu1 %4709  ;;  %v7509_v10 = vsel %vm637_vm1, %v632_v31, %v633_v33  ;;  %v9355_v53 = vld [vmem:[#allocation31_spill] sm:$0xff]  ;;  %v635_v5 = vrot.slane %v7433_v49, 2  ;;  %v9356_v11 = vld [vmem:[#allocation64_spill] sm:$0xff] }
 0x158   : > { %9350 = vst [vmem:[#allocation27_spill] sm:$0xff] %v7492_v56  ;;  %9351 = vst [vmem:[#allocation57_spill] sm:$0xff] %v7495_v1  ;;  %v7503_v61 = vsel %vm637_vm1, %v9352_v19, %v632_v31  ;;  %v7505_v17 = vpop.permute.xlu0 %4704  ;;  %v7519_v27 = vunpack.c.h.bf16 %v4138_v25  ;;  %v640_v7 = vsel %vm637_vm1, %v633_v33, %v634_v4  ;;  %v4232_v20 = vunpack.i.h.bf16 %v9384_v28 }
 0x159   : > { %9353 = vst [vmem:[#allocation171_spill] sm:$0xff] %v7503_v61  ;;  %9354 = vst [vmem:[#allocation99_spill] sm:$0xff] %v7509_v10  ;;  %4999 = vrot.lane.b32.xlu1 %v9355_v53, %s5439_s26  ;;  %v9358_v53 = vld [vmem:[#allocation101_spill] sm:$0xff]  ;;  %v639_v58 = vsel %vm637_vm1, %v634_v4, %v635_v5  ;;  %v2776_v35 = vpack.c.bf16 %v7509_v10, %v7503_v61  ;;  %v4231_v59 = vunpack.i.l.bf16 %v9384_v28  ;;  %v9413_v61 = vld [vmem:[#allocation136_spill] sm:$0xff]  ;;  %v4387_v8 = vunpack.i.h.bf16 %v9417_v12 }
 0x15a   : > { %4994 = vrot.lane.b32.xlu0 %v9356_v11, %s5438_s24  ;;  %9357 = vst [vmem:[#allocation76_spill] sm:$0xff] %v7519_v27  ;;  %v9359_v11 = vld [vmem:[#allocation78_spill] sm:$0xff]  ;;  %v2778_v25 = vpack.c.bf16 %v639_v58, %v640_v7  ;;  %v489_v31 = vrot.slane %v7519_v27, 1  ;;  %v9364_v58 = vld [vmem:[#allocation12_spill] sm:$0xff]  ;;  %v4327_v10 = vunpack.i.h.bf16 %v9413_v61 }
 0x15b   : > { %v7521_v14 = vpop.permute.xlu1 %4719  ;;  %2840 = vst.msk [vmem:[#allocation3 + $0x1d8] sm:$0xff] %vm2262_vm2, %v2776_v35  ;;  %v9365_v4 = vrot.slane %v9364_v58, 1  ;;  %v9370_v13 = vrot.slane %v9364_v58, 2 }
 0x15c   : > { %v7523_v19 = vpop.permute.xlu0 %4714  ;;  %2842 = vst.msk [vmem:[#allocation3 + $0x1e8] sm:$0xff] %vm2262_vm2, %v2778_v25  ;;  %v7548_v33 = vsel %vm492_vm0, %v488_v54, %v489_v31  ;;  %v636_v25 = vrot.slane %v7519_v27, 2 }
 0x15d   : > { %5009 = vrot.lane.b32.xlu1 %v9358_v53, %s5437_s22  ;;  %v9362_v53 = vld [vmem:[#allocation30_spill] sm:$0xff]  ;;  %9363 = vst [vmem:[#allocation149_spill] sm:$0xff] %v7548_v33  ;;  %v7554_v7 = vsel %vm492_vm0, %v489_v31, %v9365_v4  ;;  %v9393_v33 = vld [vmem:[#allocation36_spill] sm:$0xff] }
 0x15e   : > { %5004 = vrot.lane.b32.xlu0 %v9359_v11, %s5439_s26  ;;  %9366 = vst [vmem:[#allocation114_spill] sm:$0xff] %v7554_v7  ;;  %v9367_v11 = vld [vmem:[#allocation116_spill] sm:$0xff]  ;;  %v638_v54 = vsel %vm637_vm1, %v635_v5, %v636_v25  ;;  %v709_v31 = vsel %vm637_vm1, %v636_v25, %v9370_v13  ;;  %v9371_v4 = vld [vmem:[#allocation34_spill] sm:$0xff]  ;;  %v4311_v7 = vunpack.i.l.bf16 %v9393_v33 }
 0x15f   : > { %v7537_v1 = vpop.permute.xlu1 %4729  ;;  %v9375_v5 = vld [vmem:[#allocation100_spill] sm:$0xff] }
 0x160   : > { %9360 = vst [vmem:[#allocation23_spill] sm:$0xff] %v7537_v1  ;;  %v7540_v56 = vpop.permute.xlu0 %4724  ;;  %v9425_v1 = vld [vmem:[#allocation60_spill] sm:$0xff] }
 0x161   : > { %9361 = vst [vmem:[#allocation79_spill] sm:$0xff] %v7540_v56  ;;  %5019 = vrot.lane.b32.xlu1 %v9362_v53, %s5438_s24 }
 0x162   : > { %5014 = vrot.lane.b32.xlu0 %v9367_v11, %s5437_s22  ;;  %v2780_v11 = vpack.c.bf16 %v709_v31, %v638_v54  ;;  %v9378_v54 = vld [vmem:[#allocation131_spill] sm:$0xff] }
 0x163   : > { %v7561_v32 = vpop.permute.xlu1 %4739 }
 0x164   : > { %9368 = vst [vmem:[#allocation7_spill] sm:$0xff] %v7561_v32  ;;  %v7563_v53 = vpop.permute.xlu0 %4734  ;;  %2844 = vst.msk [vmem:[#allocation3 + $0x1f8] sm:$0xff] %vm2262_vm2, %v2780_v11 }
 0x165   : > { %9369 = vst [vmem:[#allocation85_spill] sm:$0xff] %v7563_v53  ;;  %5029 = vrot.lane.b32.xlu1 %v9371_v4, %s5439_s26  ;;  %v9380_v4 = vld [vmem:[#allocation115_spill] sm:$0xff]  ;;  %v9418_v53 = vld [vmem:[#allocation118_spill] sm:$0xff] }
 0x166   : > { %5024 = vrot.lane.b32.xlu0 %v9372_v3, %s5438_s24  ;;  %v9379_v3 = vld [vmem:[#allocation119_spill] sm:$0xff] }
 0x167   : > { %v7575_v35 = vpop.permute.xlu1 %4749  ;;  %v4237_v31 = vunpack.i.h.bf16 %v9379_v3  ;;  %v4236_v11 = vunpack.i.l.bf16 %v9379_v3  ;;  %v4251_v3 = vunpack.i.l.bf16 %v9386_v62 }
 0x168   : > { %9373 = vst [vmem:[#allocation172_spill] sm:$0xff] %v7575_v35  ;;  %v7578_v60 = vpop.permute.xlu0 %4744  ;;  %v9383_v35 = vld [vmem:[#allocation123_spill] sm:$0xff] }
 0x169   : > { %9374 = vst [vmem:[#allocation32_spill] sm:$0xff] %v7578_v60  ;;  %5039 = vrot.lane.b32.xlu1 %v9375_v5, %s5437_s22  ;;  %v9387_v60 = vld [vmem:[#allocation33_spill] sm:$0xff] }
 0x16a   : > { %5034 = vrot.lane.b32.xlu0 %v9230_v50, %s5439_s26  ;;  %v4226_v50 = vunpack.i.l.bf16 %v9381_v55 }
 0x16b   : > { %v7584_v13 = vpop.permute.xlu1 %4759 }
 0x16c   : > { %9376 = vst [vmem:[#allocation65_spill] sm:$0xff] %v7584_v13  ;;  %v7586_v25 = vpop.permute.xlu0 %4754  ;;  %v4242_v13 = vunpack.i.h.bf16 %v9383_v35 }
 0x16d   : > { %9377 = vst [vmem:[#allocation98_spill] sm:$0xff] %v7586_v25  ;;  %5049 = vrot.lane.b32.xlu1 %v9378_v54, %s5438_s24  ;;  %v4241_v25 = vunpack.i.l.bf16 %v9383_v35  ;;  %v4246_v35 = vunpack.i.l.bf16 %v9389_v44  ;;  %v9395_v44 = vld [vmem:[#allocation11_spill] sm:$0xff] }
 0x16e   : > { %5044 = vrot.lane.b32.xlu0 %v9380_v4, %s5437_s22  ;;  %v4252_v4 = vunpack.i.h.bf16 %v9386_v62  ;;  %v2264_v62 = vsel %vm2262_vm2, %v9392_v46, %v4227_v38  ;;  %v2270_v32 = vsel %vm2262_vm2, %v9395_v44, %v4242_v13  ;;  %v9399_v46 = vld [vmem:[#allocation14_spill] sm:$0xff]  ;;  %v9404_v13 = vld [vmem:[#allocation103_spill] sm:$0xff] }
 0x16f   : > { %v7595_v5 = vpop.permute.xlu1 %4769  ;;  %v2265_v38 = vsel %vm2262_vm2, %v9399_v46, %v4231_v59 }
 0x170   : > { %9382 = vst [vmem:[#allocation86_spill] sm:$0xff] %v7595_v5  ;;  %v7601_v54 = vpop.permute.xlu0 %4764  ;;  %v9388_v5 = vld [vmem:[#allocation9_spill] sm:$0xff] }
 0x171   : > { %9385 = vst [vmem:[#allocation24_spill] sm:$0xff] %v7601_v54  ;;  %5059 = vrot.lane.b32.xlu1 %v9387_v60, %s5439_s26  ;;  %v7610_v55 = vsel %vm2262_vm2, %v9388_v5, %v4237_v31  ;;  %v9391_v54 = vld [vmem:[#allocation8_spill] sm:$0xff]  ;;  %v4312_v60 = vunpack.i.h.bf16 %v9393_v33  ;;  %v2263_v5 = vsel %vm2262_vm2, %v9364_v58, %v4226_v50  ;;  %v7644_v58 = vsel %vm2262_vm2, %v9402_v24, %v4251_v3  ;;  %v9410_v24 = vld [vmem:[#allocation41_spill] sm:$0xff] }
 0x172   : > { %5054 = vrot.lane.b32.xlu0 %v9390_v41, %s5438_s24  ;;  %v7618_v28 = vsel %vm2262_vm2, %v9391_v54, %v4236_v11  ;;  %v9396_v41 = vld [vmem:[#allocation10_spill] sm:$0xff]  ;;  %v9397_v11 = vld [vmem:[#allocation15_spill] sm:$0xff]  ;;  %v9400_v33 = vld [vmem:[#allocation20_spill] sm:$0xff]  ;;  %9403 = vst [vmem:[#allocation64_spill] sm:$0xff] %v7644_v58  ;;  %v2297_v3 = vsel %vm2262_vm2, %v9410_v24, %v4311_v7 }
 0x173   : > { %v7624_v31 = vpop.permute.xlu1 %4779  ;;  %v2269_v49 = vsel %vm2262_vm2, %v9396_v41, %v4241_v25  ;;  %v2266_v54 = vsel %vm2262_vm2, %v9397_v11, %v4232_v20  ;;  %v9405_v25 = vld [vmem:[#allocation22_spill] sm:$0xff]  ;;  %v9406_v20 = vld [vmem:[#allocation16_spill] sm:$0xff]  ;;  %v9407_v41 = vld [vmem:[#allocation133_spill] sm:$0xff] }
 0x174   : > { %9394 = vst [vmem:[#allocation150_spill] sm:$0xff] %v7624_v31  ;;  %v7634_v27 = vpop.permute.xlu0 %4774  ;;  %v7640_v31 = vsel %vm2262_vm2, %v9400_v33, %v4252_v4  ;;  %v7650_v50 = vsel %vm2262_vm2, %v9405_v25, %v4247_v21  ;;  %v2271_v44 = vsel %vm2262_vm2, %v9406_v20, %v4246_v35  ;;  %v4307_v59 = vunpack.i.h.bf16 %v9407_v41  ;;  %v9408_v11 = vld [vmem:[#allocation88_spill] sm:$0xff]  ;;  %v9409_v4 = vld [vmem:[#allocation45_spill] sm:$0xff] }
 0x175   : > { %9398 = vst [vmem:[#allocation113_spill] sm:$0xff] %v7634_v27  ;;  %9401 = vst [vmem:[#allocation31_spill] sm:$0xff] %v7640_v31  ;;  %5069 = vrot.lane.b32.xlu1 %v9404_v13, %s5437_s22  ;;  %v2298_v46 = vsel %vm2262_vm2, %v9409_v4, %v4312_v60  ;;  %v4306_v33 = vunpack.i.l.bf16 %v9407_v41  ;;  %v9411_v13 = vld [vmem:[#allocation35_spill] sm:$0xff]  ;;  %v9412_v35 = vld [vmem:[#allocation40_spill] sm:$0xff]  ;;  %v4326_v60 = vunpack.i.l.bf16 %v9413_v61 }
 0x176   : > { %5064 = vrot.lane.b32.xlu0 %v9408_v11, %s5439_s26  ;;  %v4322_v27 = vunpack.i.h.bf16 %v9411_v13  ;;  %v4321_v25 = vunpack.i.l.bf16 %v9411_v13  ;;  %v4317_v20 = vunpack.i.h.bf16 %v9412_v35  ;;  %v4316_v47 = vunpack.i.l.bf16 %v9412_v35  ;;  %v9414_v4 = vld [vmem:[#allocation146_spill] sm:$0xff]  ;;  %v9415_v24 = vld [vmem:[#allocation29_spill] sm:$0xff]  ;;  %v9423_v58 = vld [vmem:[#allocation52_spill] sm:$0xff] }
 0x177   : > { %v7663_v21 = vpop.permute.xlu1 %4789  ;;  %v4392_v7 = vunpack.i.h.bf16 %v9414_v4  ;;  %v4391_v41 = vunpack.i.l.bf16 %v9414_v4  ;;  %v2296_v13 = vsel %vm2262_vm2, %v9416_v51, %v4307_v59  ;;  %v4386_v35 = vunpack.i.l.bf16 %v9417_v12  ;;  %v9421_v4 = vld [vmem:[#allocation152_spill] sm:$0xff]  ;;  %v9422_v51 = vld [vmem:[#allocation49_spill] sm:$0xff]  ;;  %v9424_v31 = vld [vmem:[#allocation47_spill] sm:$0xff] }
 0x178   : > { %v7669_v26 = vpop.permute.xlu0 %4784  ;;  %v2295_v61 = vsel %vm2262_vm2, %v9419_v29, %v4306_v33  ;;  %v2302_v45 = vsel %vm2262_vm2, %v9420_v9, %v4322_v27  ;;  %v4402_v40 = vunpack.i.h.bf16 %v9421_v4  ;;  %v2301_v59 = vsel %vm2262_vm2, %v9422_v51, %v4321_v25  ;;  %v9426_v9 = vld [vmem:[#allocation51_spill] sm:$0xff]  ;;  %v9433_v51 = vld [vmem:[#allocation162_spill] sm:$0xff] }
 0x179   : > { %5079 = vrot.lane.b32.xlu1 %v9415_v24, %s5438_s24  ;;  %v4401_v24 = vunpack.i.l.bf16 %v9421_v4  ;;  %v2300_v12 = vsel %vm2262_vm2, %v9423_v58, %v4317_v20  ;;  %v2304_v29 = vsel %vm2262_vm2, %v9425_v1, %v4327_v10  ;;  %v2303_v27 = vsel %vm2262_vm2, %v9426_v9, %v4326_v60  ;;  %v9427_v25 = vld [vmem:[#allocation43_spill] sm:$0xff]  ;;  %v9429_v1 = vld [vmem:[#allocation145_spill] sm:$0xff] }
 0x17a   : > { %5074 = vrot.lane.b32.xlu0 %v9418_v53, %s5437_s22  ;;  %v2299_v53 = vsel %vm2262_vm2, %v9424_v31, %v4316_v47  ;;  %v2330_v4 = vsel %vm2327_vm3, %v2265_v38, %v4391_v41  ;;  %v2331_v15 = vsel %vm2327_vm3, %v2266_v54, %v4392_v7  ;;  %v2328_v58 = vsel %vm2327_vm3, %v2263_v5, %v4386_v35  ;;  %v9428_v47 = vld [vmem:[#allocation153_spill] sm:$0xff] }
 0x17b   : > { %v7688_v42 = vpop.permute.xlu1 %4799  ;;  %v2329_v20 = vsel %vm2327_vm3, %v2264_v62, %v4387_v8  ;;  %v4397_v31 = vunpack.i.h.bf16 %v9428_v47  ;;  %v7712_v10 = vsel %vm2327_vm3, %v2270_v32, %v4402_v40  ;;  %v7715_v60 = vsel %vm2327_vm3, %v2269_v49, %v4401_v24  ;;  %v9430_v38 = vld [vmem:[#allocation157_spill] sm:$0xff]  ;;  %v9435_v49 = vld [vmem:[#allocation163_spill] sm:$0xff] }
 0x17c   : > { %v7698_v33 = vpop.permute.xlu0 %4794  ;;  %v4396_v54 = vunpack.i.l.bf16 %v9428_v47  ;;  %v4406_v7 = vunpack.i.l.bf16 %v9430_v38  ;;  %v4407_v5 = vunpack.i.h.bf16 %v9430_v38  ;;  %v9432_v8 = vld [vmem:[#allocation161_spill] sm:$0xff]  ;;  %v4466_v9 = vunpack.i.l.bf16 %v9433_v51  ;;  %v9436_v47 = vld [vmem:[#allocation164_spill] sm:$0xff] }
 0x17d   : > { %5089 = vrot.lane.b32.xlu1 %v9427_v25, %s5439_s26  ;;  %v4472_v62 = vunpack.i.h.bf16 %v9432_v8  ;;  %v4471_v35 = vunpack.i.l.bf16 %v9432_v8  ;;  %v4467_v40 = vunpack.i.h.bf16 %v9433_v51  ;;  %v4482_v32 = vunpack.i.h.bf16 %v9435_v49  ;;  %v9438_v8 = vld [vmem:[#allocation91_spill] sm:$0xff] }
 0x17e   : > { %5084 = vrot.lane.b32.xlu0 %v9429_v1, %s5438_s24  ;;  %v4481_v24 = vunpack.i.l.bf16 %v9435_v49  ;;  %v4477_v1 = vunpack.i.h.bf16 %v9436_v47  ;;  %v4476_v38 = vunpack.i.l.bf16 %v9436_v47  ;;  %v7743_v51 = vsel %vm2327_vm3, %v7618_v28, %v4396_v54 }
 0x17f   : > { %v7719_v41 = vpop.permute.xlu1 %4809  ;;  %v7746_v49 = vsel %vm2327_vm3, %v2271_v44, %v4406_v7  ;;  %v7753_v47 = vsel %vm2327_vm3, %v7650_v50, %v4407_v5  ;;  %v7756_v22 = vsel %vm2327_vm3, %v2298_v46, %v4472_v62  ;;  %v7762_v28 = vsel %vm2327_vm3, %v2295_v61, %v4466_v9  ;;  %v9440_v46 = vld [vmem:[#allocation117_spill] sm:$0xff] }
 0x180   : > { %9431 = vst [vmem:[#allocation101_spill] sm:$0xff] %v7719_v41  ;;  %v7725_v25 = vpop.permute.xlu0 %4804  ;;  %v9437_v41 = vld [vmem:[#allocation166_spill] sm:$0xff]  ;;  %v7768_v54 = vsel %vm2327_vm3, %v2302_v45, %v4482_v32  ;;  %v7771_v50 = vsel %vm2327_vm3, %v2301_v59, %v4481_v24  ;;  %v7779_v61 = vsel %vm2327_vm3, %v2300_v12, %v4477_v1  ;;  %v4552_v59 = vunpack.i.h.bf16 %v6978_v23 }
 0x181   : > { %9434 = vst [vmem:[#allocation78_spill] sm:$0xff] %v7725_v25  ;;  %5099 = vrot.lane.b32.xlu1 %v9408_v11, %s5435_s11  ;;  %v4486_v57 = vunpack.i.l.bf16 %v9437_v41  ;;  %v7739_v25 = vsel %vm2327_vm3, %v7610_v55, %v4397_v31  ;;  %v4487_v11 = vunpack.i.h.bf16 %v9437_v41  ;;  %v7759_v55 = vsel %vm2327_vm3, %v2297_v3, %v4471_v35 }
 0x182   : > { %5094 = vrot.lane.b32.xlu0 %v9438_v8, %s5439_s26  ;;  %v2361_v31 = vsel %vm2327_vm3, %v2296_v13, %v4467_v40  ;;  %v7776_v3 = vsel %vm2327_vm3, %v2299_v53, %v4476_v38  ;;  %v9441_v13 = vld [vmem:[#allocation102_spill] sm:$0xff]  ;;  %v4551_v41 = vunpack.i.l.bf16 %v6978_v23  ;;  %v4547_v53 = vunpack.i.h.bf16 %v6988_v34 }
 0x183   : > { %v7749_v56 = vpop.permute.xlu1 %4819  ;;  %v7782_v7 = vsel %vm2327_vm3, %v2303_v27, %v4486_v57  ;;  %v7787_v45 = vsel %vm2327_vm3, %v2304_v29, %v4487_v11  ;;  %v4546_v12 = vunpack.i.l.bf16 %v6988_v34  ;;  %v9443_v57 = vld [vmem:[#allocation144_spill] sm:$0xff]  ;;  %v7803_v23 = vsel %vm2392_vm4, %v2331_v15, %v4552_v59  ;;  %v9445_v15 = vld [vmem:[#allocation90_spill] sm:$0xff] }
 0x184   : > { %9439 = vst [vmem:[#allocation30_spill] sm:$0xff] %v7749_v56  ;;  %v7764_v44 = vpop.permute.xlu0 %4814  ;;  %v9444_v29 = vld [vmem:[#allocation132_spill] sm:$0xff]  ;;  %v7800_v27 = vsel %vm2392_vm4, %v2330_v4, %v4551_v41  ;;  %v4707_v35 = vunpack.i.h.bf16 %v7505_v17  ;;  %v4706_v34 = vunpack.i.l.bf16 %v7505_v17  ;;  %v2394_v32 = vsel %vm2392_vm4, %v2329_v20, %v4547_v53 }
 0x185   : > { %5109 = vrot.lane.b32.xlu1 %v9440_v46, %s5437_s22  ;;  %v2393_v40 = vsel %vm2392_vm4, %v2328_v58, %v4546_v12  ;;  %v4562_v11 = vunpack.i.h.bf16 %v7009_v2  ;;  %v4561_v4 = vunpack.i.l.bf16 %v7009_v2  ;;  %v4627_v59 = vunpack.i.h.bf16 %v7245_v30  ;;  %v9446_v58 = vld [vmem:[#allocation42_spill] sm:$0xff] }
 0x186   : > { %5104 = vrot.lane.b32.xlu0 %v9441_v13, %s5437_s22  ;;  %v4626_v17 = vunpack.i.l.bf16 %v7245_v30  ;;  %v2458_v20 = vsel %vm2457_vm5, %v2393_v40, %v4706_v34  ;;  %v2459_v41 = vsel %vm2457_vm5, %v2394_v32, %v4707_v35  ;;  %v4786_v2 = vunpack.i.l.bf16 %v7669_v26  ;;  %v9447_v35 = vld [vmem:[#allocation105_spill] sm:$0xff] }
 0x187   : > { %v4830_v5 = vpop.permute.xlu1 %4829 }
 0x188   : > { %v7793_v62 = vpop.permute.xlu0 %4824  ;;  %v4832_v24 = vunpack.i.h.bf16 %v4830_v5  ;;  %v4831_v1 = vunpack.i.l.bf16 %v4830_v5  ;;  %v4787_v5 = vunpack.i.h.bf16 %v7669_v26 }
 0x189   : > { %9442 = vst [vmem:[#allocation12_spill] sm:$0xff] %v7793_v62  ;;  %5119 = vrot.lane.b32.xlu1 %v9443_v57, %s5438_s24 }
 0x18a   : > { %5114 = vrot.lane.b32.xlu0 %v9444_v29, %s5438_s24  ;;  %v2523_v12 = vsel %vm2522_vm6, %v2458_v20, %v4831_v1  ;;  %v2524_v57 = vsel %vm2522_vm6, %v2459_v41, %v4832_v24  ;;  %v4557_v24 = vunpack.i.h.bf16 %v7015_v52  ;;  %v2848_v41 = vld [vmem:[#allocation3 + $0x18] sm:$0xff] }
 0x18b   : > { %v4840_v9 = vpop.permute.xlu1 %4839 }
 0x18c   : > { %v4835_v38 = vpop.permute.xlu0 %4834  ;;  %v4842_v46 = vunpack.i.h.bf16 %v4840_v9  ;;  %v4841_v13 = vunpack.i.l.bf16 %v4840_v9 }
 0x18d   : > { %5129 = vrot.lane.b32.xlu1 %v9445_v15, %s5439_s26  ;;  %v4837_v56 = vunpack.i.h.bf16 %v4835_v38  ;;  %v4836_v34 = vunpack.i.l.bf16 %v4835_v38 }
 0x18e   : > { %5124 = vrot.lane.b32.xlu0 %v9446_v58, %s5439_s26  ;;  %v2588_v30 = vsel %vm2587_vm7, %v2523_v12, %v4841_v13  ;;  %v2589_v58 = vsel %vm2587_vm7, %v2524_v57, %v4842_v46  ;;  %v2425_v13 = vsel %vm2392_vm4, %v7762_v28, %v4626_v17  ;;  %v2426_v46 = vsel %vm2392_vm4, %v2361_v31, %v4627_v59  ;;  %v9448_v59 = vld [vmem:[#allocation38_spill] sm:$0xff] }
 0x18f   : > { %v4850_v53 = vpop.permute.xlu1 %4849  ;;  %v4556_v12 = vunpack.i.l.bf16 %v7015_v52 }
 0x190   : > { %v4852_v29 = vunpack.i.h.bf16 %v4850_v53  ;;  %v4851_v9 = vunpack.i.l.bf16 %v4850_v53  ;;  %v4845_v62 = vpop.permute.xlu0 %4844  ;;  %v7837_v53 = vsel %vm2392_vm4, %v7715_v60, %v4561_v4  ;;  %v7848_v60 = vsel %vm2392_vm4, %v7712_v10, %v4562_v11 }
 0x191   : > { %5139 = vrot.lane.b32.xlu1 %v9447_v35, %s5437_s22  ;;  %v4847_v32 = vunpack.i.h.bf16 %v4845_v62  ;;  %v4846_v1 = vunpack.i.l.bf16 %v4845_v62  ;;  %v2490_v62 = vsel %vm2457_vm5, %v2425_v13, %v4786_v2  ;;  %v4711_v2 = vunpack.i.l.bf16 %v7497_v37  ;;  %v9450_v13 = vld [vmem:[#allocation46_spill] sm:$0xff] }
 0x192   : > { %v2653_v40 = vsel %vm2652_vm8, %v2588_v30, %v4851_v9  ;;  %v2654_v26 = vsel %vm2652_vm8, %v2589_v58, %v4852_v29  ;;  %5134 = vrot.lane.b32.xlu0 %v9438_v8, %s5435_s11  ;;  %v2491_v8 = vsel %vm2457_vm5, %v2426_v46, %v4787_v5  ;;  %v2555_v29 = vsel %vm2522_vm6, %v2490_v62, %v4836_v34  ;;  %v9449_v5 = vld [vmem:[#allocation122_spill] sm:$0xff] }
 0x193   : > { %v2717_v38 = vpack.c.bf16 %v2654_v26, %v2653_v40  ;;  %v4860_v20 = vpop.permute.xlu1 %4859  ;;  %v2556_v28 = vsel %vm2522_vm6, %v2491_v8, %v4837_v56  ;;  %v2620_v52 = vsel %vm2587_vm7, %v2555_v29, %v4846_v1  ;;  %v4712_v56 = vunpack.i.h.bf16 %v7497_v37  ;;  %v2880_v26 = vld [vmem:[#allocation3 + $0x118] sm:$0xff] }
 0x194   : > { %v4855_v57 = vpop.permute.xlu0 %4854  ;;  %v2621_v4 = vsel %vm2587_vm7, %v2556_v28, %v4847_v32  ;;  %v7861_v10 = vsel %vm2392_vm4, %v7743_v51, %v4556_v12  ;;  %v4862_v11 = vunpack.i.h.bf16 %v4860_v20  ;;  %v4861_v34 = vunpack.i.l.bf16 %v4860_v20  ;;  %v9451_v20 = vld [vmem:[#allocation151_spill] sm:$0xff] }
 0x195   : > { %v4857_v17 = vunpack.i.h.bf16 %v4855_v57  ;;  %v4856_v31 = vunpack.i.l.bf16 %v4855_v57  ;;  %5149 = vrot.lane.b32.xlu1 %v9448_v59, %s5438_s24  ;;  %3111 = vmatmul.mubr.bf16.vlgmr.msra.gmra.mrb[0].mxu0 %v2717_v38  ;;  %v7865_v32 = vsel %vm2392_vm4, %v7739_v25, %v4557_v24  ;;  %v4566_v46 = vunpack.i.l.bf16 %v7063_v43 }
 0x196   : > { %5144 = vrot.lane.b32.xlu0 %v9449_v5, %s5437_s22  ;;  %3921 = vmatprep.mubr.msk.bf16.mxu0 %vm2262_vm2, %v2848_v41  ;;  %v4632_v38 = vunpack.i.h.bf16 %v7229_v48  ;;  %v4631_v51 = vunpack.i.l.bf16 %v7229_v48  ;;  %v2460_v41 = vsel %vm2457_vm5, %v7800_v27, %v4711_v2  ;;  %v2461_v25 = vsel %vm2457_vm5, %v7803_v23, %v4712_v56  ;;  %v9452_v5 = vld [vmem:[#allocation93_spill] sm:$0xff] }
 0x197   : > { %v2685_v9 = vsel %vm2652_vm8, %v2620_v52, %v4856_v31  ;;  %v2686_v30 = vsel %vm2652_vm8, %v2621_v4, %v4857_v17  ;;  %v4870_v58 = vpop.permute.xlu1 %4869  ;;  %v4792_v24 = vunpack.i.h.bf16 %v7663_v21  ;;  %v4791_v12 = vunpack.i.l.bf16 %v7663_v21 }
 0x198   : > { %v2749_v35 = vpack.c.bf16 %v2686_v30, %v2685_v9  ;;  %v4865_v40 = vpop.permute.xlu0 %4864  ;;  %v4872_v1 = vunpack.i.h.bf16 %v4870_v58  ;;  %v4871_v37 = vunpack.i.l.bf16 %v4870_v58  ;;  %v2525_v8 = vsel %vm2522_vm6, %v2460_v41, %v4861_v34  ;;  %v2850_v58 = vld [vmem:[#allocation3 + $0x28] sm:$0xff] }
 0x199   : > { %5159 = vrot.lane.b32.xlu1 %v9450_v13, %s5439_s26  ;;  %v2526_v48 = vsel %vm2522_vm6, %v2461_v25, %v4862_v11  ;;  %v4867_v31 = vunpack.i.h.bf16 %v4865_v40  ;;  %v4866_v23 = vunpack.i.l.bf16 %v4865_v40  ;;  %v7893_v56 = vsel %vm2392_vm4, %v7746_v49, %v4566_v46  ;;  %v9454_v13 = vld [vmem:[#allocation104_spill] sm:$0xff] }
 0x19a   : > { %5154 = vrot.lane.b32.xlu0 %v9451_v20, %s5438_s24  ;;  %3239 = vmatmul.mubr.bf16.vlgmr.msra.gmra.mrb[0].mxu1 %v2749_v35  ;;  %v2590_v17 = vsel %vm2587_vm7, %v2525_v8, %v4871_v37  ;;  %v2591_v27 = vsel %vm2587_vm7, %v2526_v48, %v4872_v1  ;;  %v2427_v2 = vsel %vm2392_vm4, %v7759_v55, %v4631_v51  ;;  %v9453_v37 = vld [vmem:[#allocation121_spill] sm:$0xff]  ;;  %v4717_v46 = vunpack.i.h.bf16 %v7523_v19  ;;  %v2882_v8 = vld [vmem:[#allocation3 + $0x128] sm:$0xff] }
 0x19b   : > { %v4880_v62 = vpop.permute.xlu1 %4879  ;;  %3937 = vmatprep.mubr.msk.bf16.mxu1 %vm2262_vm2, %v2880_v26  ;;  %v2428_v9 = vsel %vm2392_vm4, %v7756_v22, %v4632_v38  ;;  %v2492_v11 = vsel %vm2457_vm5, %v2427_v2, %v4791_v12  ;;  %v4716_v38 = vunpack.i.l.bf16 %v7523_v19  ;;  %v9456_v19 = vld [vmem:[#allocation37_spill] sm:$0xff] }
 0x19c   : > { %v4882_v57 = vunpack.i.h.bf16 %v4880_v62  ;;  %v4881_v29 = vunpack.i.l.bf16 %v4880_v62  ;;  %v4875_v28 = vpop.permute.xlu0 %4874  ;;  %v2493_v34 = vsel %vm2457_vm5, %v2428_v9, %v4792_v24  ;;  %v2557_v26 = vsel %vm2522_vm6, %v2492_v11, %v4866_v23  ;;  %v9457_v11 = vld [vmem:[#allocation92_spill] sm:$0xff] }
 0x19d   : > { %5169 = vrot.lane.b32.xlu1 %v9445_v15, %s5435_s11  ;;  %v4877_v52 = vunpack.i.h.bf16 %v4875_v28  ;;  %v4876_v4 = vunpack.i.l.bf16 %v4875_v28  ;;  %v2558_v40 = vsel %vm2522_vm6, %v2493_v34, %v4867_v31  ;;  %v4637_v28 = vunpack.i.h.bf16 %v7283_v16 }
 0x19e   : > { %v2655_v21 = vsel %vm2652_vm8, %v2590_v17, %v4881_v29  ;;  %v2656_v59 = vsel %vm2652_vm8, %v2591_v27, %v4882_v57  ;;  %5164 = vrot.lane.b32.xlu0 %v9452_v5, %s5439_s26  ;;  %v9455_v29 = vld [vmem:[#allocation148_spill] sm:$0xff]  ;;  %v4636_v17 = vunpack.i.l.bf16 %v7283_v16  ;;  %v483_v27 = vrot.slane %v9314_v0, 1 }
 0x19f   : > { %v2719_v15 = vpack.c.bf16 %v2656_v59, %v2655_v21  ;;  %v4890_v30 = vpop.permute.xlu1 %4889  ;;  %v2622_v22 = vsel %vm2587_vm7, %v2557_v26, %v4876_v4  ;;  %v2623_v55 = vsel %vm2587_vm7, %v2558_v40, %v4877_v52  ;;  %v484_v31 = vrot.slane %v9315_v18, 1  ;;  %v9458_v26 = vld [vmem:[#allocation44_spill] sm:$0xff] }
 0x1a0   : > { %v4885_v35 = vpop.permute.xlu0 %4884  ;;  %v4892_v25 = vunpack.i.h.bf16 %v4890_v30  ;;  %v4891_v24 = vunpack.i.l.bf16 %v4890_v30  ;;  %v2462_v23 = vsel %vm2457_vm5, %v7861_v10, %v4716_v38  ;;  %v2463_v21 = vsel %vm2457_vm5, %v7865_v32, %v4717_v46 }
 0x1a1   : > { %v4887_v49 = vunpack.i.h.bf16 %v4885_v35  ;;  %v4886_v1 = vunpack.i.l.bf16 %v4885_v35  ;;  %5179 = vrot.lane.b32.xlu1 %v9453_v37, %s5437_s22  ;;  %3119 = vmatmul.mubr.bf16.gmra.mrb[4].mxu0 %v2719_v15  ;;  %v4797_v59 = vunpack.i.h.bf16 %v7698_v33  ;;  %v4796_v52 = vunpack.i.l.bf16 %v7698_v33 }
 0x1a2   : > { %5174 = vrot.lane.b32.xlu0 %v9454_v13, %s5437_s22  ;;  %3922 = vmatprep.mubr.msk.bf16.mxu0 %vm2262_vm2, %v2850_v58  ;;  %v2527_v16 = vsel %vm2522_vm6, %v2462_v23, %v4891_v24  ;;  %v2528_v2 = vsel %vm2522_vm6, %v2463_v21, %v4892_v25  ;;  %v4567_v24 = vunpack.i.h.bf16 %v7063_v43 }
 0x1a3   : > { %v2687_v51 = vsel %vm2652_vm8, %v2622_v22, %v4886_v1  ;;  %v2688_v20 = vsel %vm2652_vm8, %v2623_v55, %v4887_v49  ;;  %v4900_v41 = vpop.permute.xlu1 %4899  ;;  %v2429_v49 = vsel %vm2392_vm4, %v7776_v3, %v4636_v17  ;;  %v2430_v1 = vsel %vm2392_vm4, %v7779_v61, %v4637_v28  ;;  %v2852_v55 = vld [vmem:[#allocation3 + $0x38] sm:$0xff]  ;;  %v9459_v61 = vld [vmem:[#allocation107_spill] sm:$0xff] }
 0x1a4   : > { %v2751_v12 = vpack.c.bf16 %v2688_v20, %v2687_v51  ;;  %v4895_v62 = vpop.permute.xlu0 %4894  ;;  %v4902_v48 = vunpack.i.h.bf16 %v4900_v41  ;;  %v4901_v57 = vunpack.i.l.bf16 %v4900_v41  ;;  %v2494_v13 = vsel %vm2457_vm5, %v2429_v49, %v4796_v52  ;;  %v2884_v52 = vld [vmem:[#allocation3 + $0x138] sm:$0xff]  ;;  %v9463_v49 = vld [vmem:[#allocation55_spill] sm:$0xff] }
 0x1a5   : > { %5189 = vrot.lane.b32.xlu1 %v9455_v29, %s5438_s24  ;;  %v4897_v58 = vunpack.i.h.bf16 %v4895_v62  ;;  %v4896_v32 = vunpack.i.l.bf16 %v4895_v62  ;;  %v2495_v46 = vsel %vm2457_vm5, %v2430_v1, %v4797_v59  ;;  %v498_v51 = vsel %vm492_vm0, %v483_v27, %v484_v31 }
 0x1a6   : > { %5184 = vrot.lane.b32.xlu0 %v9456_v19, %s5438_s24  ;;  %3247 = vmatmul.mubr.bf16.gmra.mrb[4].mxu1 %v2751_v12  ;;  %v2592_v30 = vsel %vm2587_vm7, %v2527_v16, %v4901_v57  ;;  %v2593_v10 = vsel %vm2587_vm7, %v2528_v2, %v4902_v48  ;;  %v4722_v57 = vunpack.i.h.bf16 %v7521_v14  ;;  %v4721_v29 = vunpack.i.l.bf16 %v7521_v14  ;;  %v9462_v14 = vld [vmem:[#allocation126_spill] sm:$0xff] }
 0x1a7   : > { %v4910_v4 = vpop.permute.xlu1 %4909  ;;  %3938 = vmatprep.mubr.msk.bf16.mxu1 %vm2262_vm2, %v2882_v8  ;;  %v2559_v20 = vsel %vm2522_vm6, %v2494_v13, %v4896_v32  ;;  %v2560_v3 = vsel %vm2522_vm6, %v2495_v46, %v4897_v58  ;;  %v9460_v8 = vrot.slane %v9323_v6, 1  ;;  %v4642_v16 = vunpack.i.h.bf16 %v7271_v63 }
 0x1a8   : > { %v4912_v0 = vunpack.i.h.bf16 %v4910_v4  ;;  %v4911_v9 = vunpack.i.l.bf16 %v4910_v4  ;;  %v4905_v15 = vpop.permute.xlu0 %4904  ;;  %v4641_v2 = vunpack.i.l.bf16 %v7271_v63  ;;  %v4801_v58 = vunpack.i.l.bf16 %v7688_v42 }
 0x1a9   : > { %5199 = vrot.lane.b32.xlu1 %v9457_v11, %s5439_s26  ;;  %v4907_v35 = vunpack.i.h.bf16 %v4905_v15  ;;  %v4906_v40 = vunpack.i.l.bf16 %v4905_v15  ;;  %v499_v48 = vsel %vm492_vm0, %v9460_v8, %v483_v27  ;;  %v9461_v27 = vld [vmem:[#allocation135_spill] sm:$0xff]  ;;  %v2464_v15 = vsel %vm2457_vm5, %v7837_v53, %v4721_v29 }
 0x1aa   : > { %v2657_v33 = vsel %vm2652_vm8, %v2592_v30, %v4911_v9  ;;  %v2658_v34 = vsel %vm2652_vm8, %v2593_v10, %v4912_v0  ;;  %5194 = vrot.lane.b32.xlu0 %v9458_v26, %s5439_s26  ;;  %v7973_v0 = vpack.i.bf16 %v498_v51, %v499_v48  ;;  %v485_v9 = vrot.slane %v9346_v36, 1 }
 0x1ab   : > { %v2721_v37 = vpack.c.bf16 %v2658_v34, %v2657_v33  ;;  %v4920_v22 = vpop.permute.xlu1 %4919  ;;  %v2624_v12 = vsel %vm2587_vm7, %v2559_v20, %v4906_v40  ;;  %v2625_v62 = vsel %vm2587_vm7, %v2560_v3, %v4907_v35  ;;  %v2465_v30 = vsel %vm2457_vm5, %v7848_v60, %v4722_v57  ;;  %v2854_v20 = vld [vmem:[#allocation3 + $0x48] sm:$0xff] }
 0x1ac   : > { %v4915_v38 = vpop.permute.xlu0 %4914  ;;  %v4922_v23 = vunpack.i.h.bf16 %v4920_v22  ;;  %v4921_v21 = vunpack.i.l.bf16 %v4920_v22  ;;  %v4802_v10 = vunpack.i.h.bf16 %v7688_v42  ;;  %v2431_v13 = vsel %vm2392_vm4, %v7771_v50, %v4641_v2 }
 0x1ad   : > { %v4917_v41 = vunpack.i.h.bf16 %v4915_v38  ;;  %v4916_v25 = vunpack.i.l.bf16 %v4915_v38  ;;  %5209 = vrot.lane.b32.xlu1 %v9459_v61, %s5437_s22  ;;  %3127 = vmatmul.mubr.bf16.gmra.mrb[8].mxu0 %v2721_v37  ;;  %v2432_v46 = vsel %vm2392_vm4, %v7768_v54, %v4642_v16  ;;  %v2496_v3 = vsel %vm2457_vm5, %v2431_v13, %v4801_v58  ;;  %v9465_v61 = vld [vmem:[#allocation82_spill] sm:$0xff]  ;;  %v9467_v54 = vld [vmem:[#allocation156_spill] sm:$0xff] }
 0x1ae   : > { %5204 = vrot.lane.b32.xlu0 %v9452_v5, %s5435_s11  ;;  %3923 = vmatprep.mubr.msk.bf16.mxu0 %vm2262_vm2, %v2852_v55  ;;  %v2529_v63 = vsel %vm2522_vm6, %v2464_v15, %v4921_v21  ;;  %v2530_v33 = vsel %vm2522_vm6, %v2465_v30, %v4922_v23  ;;  %v9464_v55 = vld [vmem:[#allocation155_spill] sm:$0xff]  ;;  %v4412_v29 = vunpack.i.h.bf16 %v9467_v54  ;;  %v9472_v58 = vld [vmem:[#allocation78_spill] sm:$0xff] }
 0x1af   : > { %v2689_v28 = vsel %vm2652_vm8, %v2624_v12, %v4916_v25  ;;  %v2690_v17 = vsel %vm2652_vm8, %v2625_v62, %v4917_v41  ;;  %v4930_v19 = vpop.permute.xlu1 %4929  ;;  %v2497_v41 = vsel %vm2457_vm5, %v2432_v46, %v4802_v10  ;;  %v9466_v12 = vrot.slane %v9465_v61, 1  ;;  %v9468_v23 = vld [vmem:[#allocation79_spill] sm:$0xff]  ;;  %v9471_v10 = vld [vmem:[#allocation106_spill] sm:$0xff] }
 0x1b0   : > { %v2753_v59 = vpack.c.bf16 %v2690_v17, %v2689_v28  ;;  %v4925_v5 = vpop.permute.xlu0 %4924  ;;  %v4932_v6 = vunpack.i.h.bf16 %v4930_v19  ;;  %v4931_v4 = vunpack.i.l.bf16 %v4930_v19  ;;  %v497_v19 = vsel %vm492_vm0, %v484_v31, %v485_v9  ;;  %v9474_v13 = vld [vmem:[#allocation134_spill] sm:$0xff] }
 0x1b1   : > { %5219 = vrot.lane.b32.xlu1 %v9461_v27, %s5438_s24  ;;  %v4927_v26 = vunpack.i.h.bf16 %v4925_v5  ;;  %v4926_v60 = vunpack.i.l.bf16 %v4925_v5  ;;  %v496_v62 = vsel %vm492_vm0, %v485_v9, %v9466_v12  ;;  %v4727_v21 = vunpack.i.h.bf16 %v9468_v23  ;;  %v2886_v27 = vld [vmem:[#allocation3 + $0x148] sm:$0xff] }
 0x1b2   : > { %5214 = vrot.lane.b32.xlu0 %v9462_v14, %s5437_s22  ;;  %3255 = vmatmul.mubr.bf16.gmra.mrb[8].mxu1 %v2753_v59  ;;  %v2594_v40 = vsel %vm2587_vm7, %v2529_v63, %v4931_v4  ;;  %v2595_v53 = vsel %vm2587_vm7, %v2530_v33, %v4932_v6  ;;  %v2402_v6 = vsel %vm2392_vm4, %v7753_v47, %v4567_v24  ;;  %v9469_v14 = vld [vmem:[#allocation125_spill] sm:$0xff]  ;;  %v9470_v9 = vld [vmem:[#allocation68_spill] sm:$0xff]  ;;  %v4806_v63 = vunpack.i.l.bf16 %v9472_v58 }
 0x1b3   : > { %v4940_v32 = vpop.permute.xlu1 %4939  ;;  %3939 = vmatprep.mubr.msk.bf16.mxu1 %vm2262_vm2, %v2884_v52  ;;  %v2562_v8 = vsel %vm2522_vm6, %v2497_v41, %v4927_v26  ;;  %v2561_v50 = vsel %vm2522_vm6, %v2496_v3, %v4926_v60  ;;  %v4647_v15 = vunpack.i.h.bf16 %v9470_v9  ;;  %v4646_v30 = vunpack.i.l.bf16 %v9470_v9  ;;  %v2856_v41 = vld [vmem:[#allocation3 + $0x58] sm:$0xff] }
 0x1b4   : > { %v4942_v34 = vunpack.i.h.bf16 %v4940_v32  ;;  %v4941_v35 = vunpack.i.l.bf16 %v4940_v32  ;;  %v4935_v36 = vpop.permute.xlu0 %4934  ;;  %v8031_v43 = vpack.i.bf16 %v496_v62, %v497_v19  ;;  %v2467_v24 = vsel %vm2457_vm5, %v2402_v6, %v4727_v21  ;;  %v9477_v21 = vld [vmem:[#allocation23_spill] sm:$0xff] }
 0x1b5   : > { %5229 = vrot.lane.b32.xlu1 %v9463_v49, %s5439_s26  ;;  %v4937_v37 = vunpack.i.h.bf16 %v4935_v36  ;;  %v4936_v22 = vunpack.i.l.bf16 %v4935_v36  ;;  %v4807_v32 = vunpack.i.h.bf16 %v9472_v58  ;;  %v4411_v46 = vunpack.i.l.bf16 %v9467_v54  ;;  %v9481_v58 = vld [vmem:[#allocation101_spill] sm:$0xff] }
 0x1b6   : > { %v2659_v42 = vsel %vm2652_vm8, %v2594_v40, %v4941_v35  ;;  %v2660_v1 = vsel %vm2652_vm8, %v2595_v53, %v4942_v34  ;;  %5224 = vrot.lane.b32.xlu0 %v9464_v55, %s5438_s24 }
 0x1b7   : > { %v2723_v38 = vpack.c.bf16 %v2660_v1, %v2659_v42  ;;  %v4950_v51 = vpop.permute.xlu1 %4949  ;;  %v2626_v28 = vsel %vm2587_vm7, %v2561_v50, %v4936_v22  ;;  %v2627_v17 = vsel %vm2587_vm7, %v2562_v8, %v4937_v37  ;;  %v9473_v42 = vld [vmem:[#allocation154_spill] sm:$0xff] }
 0x1b8   : > { %v4945_v25 = vpop.permute.xlu0 %4944  ;;  %v4952_v18 = vunpack.i.h.bf16 %v4950_v51  ;;  %v4951_v4 = vunpack.i.l.bf16 %v4950_v51  ;;  %v2434_v51 = vsel %vm2392_vm4, %v7787_v45, %v4647_v15 }
 0x1b9   : > { %v4947_v48 = vunpack.i.h.bf16 %v4945_v25  ;;  %v4946_v57 = vunpack.i.l.bf16 %v4945_v25  ;;  %5239 = vrot.lane.b32.xlu1 %v9457_v11, %s5435_s11  ;;  %3135 = vmatmul.mubr.bf16.gmra.mrb[12].mxu0 %v2723_v38  ;;  %v4726_v11 = vunpack.i.l.bf16 %v9468_v23  ;;  %v2433_v38 = vsel %vm2392_vm4, %v7782_v7, %v4646_v30  ;;  %v9475_v25 = vld [vmem:[#allocation95_spill] sm:$0xff]  ;;  %v9476_v23 = vld [vmem:[#allocation54_spill] sm:$0xff] }
 0x1ba   : > { %5234 = vrot.lane.b32.xlu0 %v7973_v0, %s5439_s26  ;;  %3924 = vmatprep.mubr.msk.bf16.mxu0 %vm2262_vm2, %v2854_v20  ;;  %v2532_v35 = vsel %vm2522_vm6, %v2467_v24, %v4952_v18  ;;  %v4572_v12 = vunpack.i.h.bf16 %v9475_v25  ;;  %v2498_v62 = vsel %vm2457_vm5, %v2433_v38, %v4806_v63  ;;  %v2499_v8 = vsel %vm2457_vm5, %v2434_v51, %v4807_v32  ;;  %v9478_v18 = vld [vmem:[#allocation31_spill] sm:$0xff] }
 0x1bb   : > { %v2691_v59 = vsel %vm2652_vm8, %v2626_v28, %v4946_v57  ;;  %v2692_v5 = vsel %vm2652_vm8, %v2627_v17, %v4947_v48  ;;  %v4960_v52 = vpop.permute.xlu1 %4959  ;;  %v2466_v47 = vsel %vm2457_vm5, %v7893_v56, %v4726_v11  ;;  %v4571_v7 = vunpack.i.l.bf16 %v9475_v25  ;;  %v9487_v25 = vld [vmem:[#allocation28_spill] sm:$0xff] }
 0x1bc   : > { %v2755_v39 = vpack.c.bf16 %v2692_v5, %v2691_v59  ;;  %v4955_v31 = vpop.permute.xlu0 %4954  ;;  %v4962_v16 = vunpack.i.h.bf16 %v4960_v52  ;;  %v4961_v2 = vunpack.i.l.bf16 %v4960_v52  ;;  %v2531_v34 = vsel %vm2522_vm6, %v2466_v47, %v4951_v4 }
 0x1bd   : > { %5249 = vrot.lane.b32.xlu1 %v9469_v14, %s5437_s22  ;;  %v4957_v60 = vunpack.i.h.bf16 %v4955_v31  ;;  %v4956_v49 = vunpack.i.l.bf16 %v4955_v31  ;;  %v4732_v11 = vunpack.i.h.bf16 %v9477_v21  ;;  %v4731_v59 = vunpack.i.l.bf16 %v9477_v21  ;;  %v9479_v14 = vld [vmem:[#allocation64_spill] sm:$0xff] }
 0x1be   : > { %5244 = vrot.lane.b32.xlu0 %v9471_v10, %s5437_s22  ;;  %3263 = vmatmul.mubr.bf16.gmra.mrb[12].mxu1 %v2755_v39  ;;  %v2596_v26 = vsel %vm2587_vm7, %v2531_v34, %v4961_v2  ;;  %v2597_v56 = vsel %vm2587_vm7, %v2532_v35, %v4962_v16  ;;  %v2339_v4 = vsel %vm2327_vm3, %v9478_v18, %v4412_v29  ;;  %v2888_v2 = vld [vmem:[#allocation3 + $0x158] sm:$0xff]  ;;  %v9480_v10 = vld [vmem:[#allocation109_spill] sm:$0xff]  ;;  %v4812_v32 = vunpack.i.h.bf16 %v9481_v58 }
 0x1bf   : > { %v4970_v33 = vpop.permute.xlu1 %4969  ;;  %3940 = vmatprep.mubr.msk.bf16.mxu1 %vm2262_vm2, %v2886_v27  ;;  %v2563_v48 = vsel %vm2522_vm6, %v2498_v62, %v4956_v49  ;;  %v2564_v57 = vsel %vm2522_vm6, %v2499_v8, %v4957_v60  ;;  %v2338_v9 = vsel %vm2327_vm3, %v9479_v14, %v4411_v46  ;;  %v2404_v54 = vsel %vm2392_vm4, %v2339_v4, %v4572_v12  ;;  %v9482_v49 = vld [vmem:[#allocation138_spill] sm:$0xff] }
 0x1c0   : > { %v4972_v36 = vunpack.i.h.bf16 %v4970_v33  ;;  %v4971_v40 = vunpack.i.l.bf16 %v4970_v33  ;;  %v4965_v53 = vpop.permute.xlu0 %4964  ;;  %v2403_v47 = vsel %vm2392_vm4, %v2338_v9, %v4571_v7  ;;  %v2469_v24 = vsel %vm2457_vm5, %v2404_v54, %v4732_v11  ;;  %v9495_v9 = vld [vmem:[#allocation63_spill] sm:$0xff] }
 0x1c1   : > { %5259 = vrot.lane.b32.xlu1 %v9473_v42, %s5438_s24  ;;  %v4967_v22 = vunpack.i.h.bf16 %v4965_v53  ;;  %v4966_v55 = vunpack.i.l.bf16 %v4965_v53  ;;  %v2468_v29 = vsel %vm2457_vm5, %v2403_v47, %v4731_v59  ;;  %v4811_v63 = vunpack.i.l.bf16 %v9481_v58 }
 0x1c2   : > { %v2661_v1 = vsel %vm2652_vm8, %v2596_v26, %v4971_v40  ;;  %v2662_v37 = vsel %vm2652_vm8, %v2597_v56, %v4972_v36  ;;  %5254 = vrot.lane.b32.xlu0 %v9474_v13, %s5438_s24  ;;  %v9484_v13 = vld [vmem:[#allocation75_spill] sm:$0xff]  ;;  %v2501_v12 = vsel %vm2457_vm5, %v9487_v25, %v4812_v32  ;;  %v4817_v47 = vunpack.i.h.bf16 %v7764_v44  ;;  %v9503_v25 = vld [vmem:[#allocation76_spill] sm:$0xff] }
 0x1c3   : > { %v2725_v20 = vpack.c.bf16 %v2662_v37, %v2661_v1  ;;  %v4980_v3 = vpop.permute.xlu1 %4979  ;;  %v2628_v45 = vsel %vm2587_vm7, %v2563_v48, %v4966_v55  ;;  %v2629_v19 = vsel %vm2587_vm7, %v2564_v57, %v4967_v22  ;;  %v9483_v55 = vld [vmem:[#allocation80_spill] sm:$0xff]  ;;  %v4816_v54 = vunpack.i.l.bf16 %v7764_v44 }
 0x1c4   : > { %v4975_v50 = vpop.permute.xlu0 %4974  ;;  %v4982_v39 = vunpack.i.h.bf16 %v4980_v3  ;;  %v4981_v31 = vunpack.i.l.bf16 %v4980_v3  ;;  %v9485_v46 = vpack.i.bf16 %v9483_v55, %v9484_v13  ;;  %v9486_v3 = vld [vmem:[#allocation139_spill] sm:$0xff]  ;;  %v9502_v13 = vld [vmem:[#allocation74_spill] sm:$0xff] }
 0x1c5   : > { %v4977_v28 = vunpack.i.h.bf16 %v4975_v50  ;;  %v4976_v17 = vunpack.i.l.bf16 %v4975_v50  ;;  %5269 = vrot.lane.b32.xlu1 %v8031_v43, %s5439_s26  ;;  %3143 = vmatmul.mubr.bf16.gmra.mrb[16].mxu0 %v2725_v20  ;;  %v2858_v20 = vld [vmem:[#allocation3 + $0x68] sm:$0xff] }
 0x1c6   : > { %5264 = vrot.lane.b32.xlu0 %v9476_v23, %s5439_s26  ;;  %3925 = vmatprep.mubr.msk.bf16.mxu0 %vm2262_vm2, %v2856_v41  ;;  %v2533_v34 = vsel %vm2522_vm6, %v2468_v29, %v4981_v31  ;;  %v2534_v35 = vsel %vm2522_vm6, %v2469_v24, %v4982_v39  ;;  %v2500_v41 = vsel %vm2457_vm5, %v9486_v3, %v4811_v63  ;;  %v9491_v23 = vld [vmem:[#allocation85_spill] sm:$0xff]  ;;  %v2890_v31 = vld [vmem:[#allocation3 + $0x168] sm:$0xff] }
 0x1c7   : > { %v2693_v5 = vsel %vm2652_vm8, %v2628_v45, %v4976_v17  ;;  %v2694_v52 = vsel %vm2652_vm8, %v2629_v19, %v4977_v28  ;;  %v4990_v6 = vpop.permute.xlu1 %4989  ;;  %v9488_v28 = vld [vmem:[#allocation58_spill] sm:$0xff]  ;;  %v9489_v45 = vld [vmem:[#allocation165_spill] sm:$0xff]  ;;  %v4737_v21 = vunpack.i.h.bf16 %v9491_v23  ;;  %v4736_v11 = vunpack.i.l.bf16 %v9491_v23 }
 0x1c8   : > { %v2757_v27 = vpack.c.bf16 %v2694_v52, %v2693_v5  ;;  %v4985_v16 = vpop.permute.xlu0 %4984  ;;  %v4992_v15 = vunpack.i.h.bf16 %v4990_v6  ;;  %v4991_v30 = vunpack.i.l.bf16 %v4990_v6  ;;  %v9490_v19 = vpack.i.bf16 %v9489_v45, %v9465_v61  ;;  %v9492_v61 = vld [vmem:[#allocation111_spill] sm:$0xff] }
 0x1c9   : > { %5279 = vrot.lane.b32.xlu1 %v9480_v10, %s5437_s22  ;;  %v4987_v56 = vunpack.i.h.bf16 %v4985_v16  ;;  %v4986_v60 = vunpack.i.l.bf16 %v4985_v16 }
 0x1ca   : > { %5274 = vrot.lane.b32.xlu0 %v7973_v0, %s5435_s11  ;;  %3271 = vmatmul.mubr.bf16.gmra.mrb[16].mxu1 %v2757_v27  ;;  %v2598_v0 = vsel %vm2587_vm7, %v2533_v34, %v4991_v30  ;;  %v2599_v26 = vsel %vm2587_vm7, %v2534_v35, %v4992_v15  ;;  %v2470_v15 = vsel %vm2457_vm5, %v9495_v9, %v4736_v11  ;;  %v9496_v30 = vld [vmem:[#allocation62_spill] sm:$0xff] }
 0x1cb   : > { %v5000_v33 = vpop.permute.xlu1 %4999  ;;  %3941 = vmatprep.mubr.msk.bf16.mxu1 %vm2262_vm2, %v2888_v2  ;;  %v2566_v8 = vsel %vm2522_vm6, %v2501_v12, %v4987_v56  ;;  %v2565_v50 = vsel %vm2522_vm6, %v2500_v41, %v4986_v60  ;;  %v9493_v2 = vld [vmem:[#allocation169_spill] sm:$0xff]  ;;  %v2471_v10 = vsel %vm2457_vm5, %v9496_v30, %v4737_v21  ;;  %v9504_v12 = vld [vmem:[#allocation167_spill] sm:$0xff] }
 0x1cc   : > { %v5002_v36 = vunpack.i.h.bf16 %v5000_v33  ;;  %v5001_v40 = vunpack.i.l.bf16 %v5000_v33  ;;  %v4995_v53 = vpop.permute.xlu0 %4994  ;;  %v9494_v14 = vpack.i.bf16 %v9492_v61, %v9493_v2  ;;  %v9513_v61 = vld [vmem:[#allocation70_spill] sm:$0xff] }
 0x1cd   : > { %5289 = vrot.lane.b32.xlu1 %v9482_v49, %s5438_s24  ;;  %v4997_v37 = vunpack.i.h.bf16 %v4995_v53  ;;  %v4996_v22 = vunpack.i.l.bf16 %v4995_v53  ;;  %v9498_v53 = vld [vmem:[#allocation171_spill] sm:$0xff]  ;;  %v9500_v49 = vld [vmem:[#allocation108_spill] sm:$0xff] }
 0x1ce   : > { %v2663_v42 = vsel %vm2652_vm8, %v2598_v0, %v5001_v40  ;;  %v2664_v1 = vsel %vm2652_vm8, %v2599_v26, %v5002_v36  ;;  %5284 = vrot.lane.b32.xlu0 %v9485_v46, %s5437_s22  ;;  %v9497_v40 = vld [vmem:[#allocation99_spill] sm:$0xff]  ;;  %v2503_v46 = vsel %vm2457_vm5, %v9502_v13, %v4817_v47 }
 0x1cf   : > { %v2727_v38 = vpack.c.bf16 %v2664_v1, %v2663_v42  ;;  %v5010_v51 = vpop.permute.xlu1 %5009  ;;  %v2630_v17 = vsel %vm2587_vm7, %v2565_v50, %v4996_v22  ;;  %v2631_v7 = vsel %vm2587_vm7, %v2566_v8, %v4997_v37  ;;  %v9499_v44 = vpack.i.bf16 %v9497_v40, %v9498_v53  ;;  %v2860_v37 = vld [vmem:[#allocation3 + $0x78] sm:$0xff]  ;;  %v9501_v22 = vld [vmem:[#allocation71_spill] sm:$0xff] }
 0x1d0   : > { %v5005_v62 = vpop.permute.xlu0 %5004  ;;  %v5012_v6 = vunpack.i.h.bf16 %v5010_v51  ;;  %v5011_v18 = vunpack.i.l.bf16 %v5010_v51  ;;  %v2502_v55 = vsel %vm2457_vm5, %v9501_v22, %v4816_v54 }
 0x1d1   : > { %v5007_v48 = vunpack.i.h.bf16 %v5005_v62  ;;  %v5006_v57 = vunpack.i.l.bf16 %v5005_v62  ;;  %5299 = vrot.lane.b32.xlu1 %v9488_v28, %s5439_s26  ;;  %3151 = vmatmul.mubr.bf16.gmra.mrb[20].mxu0 %v2727_v38  ;;  %v9505_v62 = vpack.i.bf16 %v9503_v25, %v9504_v12 }
 0x1d2   : > { %5294 = vrot.lane.b32.xlu0 %v9490_v19, %s5438_s24  ;;  %3926 = vmatprep.mubr.msk.bf16.mxu0 %vm2262_vm2, %v2858_v20  ;;  %v2536_v24 = vsel %vm2522_vm6, %v2471_v10, %v5012_v6 }
 0x1d3   : > { %v2695_v59 = vsel %vm2652_vm8, %v2630_v17, %v5006_v57  ;;  %v2696_v5 = vsel %vm2652_vm8, %v2631_v7, %v5007_v48  ;;  %v5020_v52 = vpop.permute.xlu1 %5019  ;;  %v9506_v48 = vld [vmem:[#allocation137_spill] sm:$0xff]  ;;  %v9507_v57 = vld [vmem:[#allocation7_spill] sm:$0xff] }
 0x1d4   : > { %v2759_v4 = vpack.c.bf16 %v2696_v5, %v2695_v59  ;;  %v5015_v39 = vpop.permute.xlu0 %5014  ;;  %v5022_v27 = vunpack.i.h.bf16 %v5020_v52  ;;  %v5021_v16 = vunpack.i.l.bf16 %v5020_v52  ;;  %v4742_v28 = vunpack.i.h.bf16 %v9507_v57  ;;  %v2892_v5 = vld [vmem:[#allocation3 + $0x178] sm:$0xff] }
 0x1d5   : > { %5309 = vrot.lane.b32.xlu1 %v8031_v43, %s5435_s11  ;;  %v2535_v43 = vsel %vm2522_vm6, %v2470_v15, %v5011_v18  ;;  %v5017_v35 = vunpack.i.h.bf16 %v5015_v39  ;;  %v5016_v36 = vunpack.i.l.bf16 %v5015_v39  ;;  %v4741_v17 = vunpack.i.l.bf16 %v9507_v57  ;;  %v9508_v18 = vld [vmem:[#allocation114_spill] sm:$0xff] }
 0x1d6   : > { %5304 = vrot.lane.b32.xlu0 %v9494_v14, %s5439_s26  ;;  %3279 = vmatmul.mubr.bf16.gmra.mrb[20].mxu1 %v2759_v4  ;;  %v2600_v33 = vsel %vm2587_vm7, %v2535_v43, %v5021_v16  ;;  %v2601_v34 = vsel %vm2587_vm7, %v2536_v24, %v5022_v27  ;;  %v9509_v4 = vld [vmem:[#allocation149_spill] sm:$0xff]  ;;  %v2473_v2 = vsel %vm2457_vm5, %v9513_v61, %v4742_v28  ;;  %v9514_v14 = vld [vmem:[#allocation30_spill] sm:$0xff] }
 0x1d7   : > { %v5030_v29 = vpop.permute.xlu1 %5029  ;;  %3942 = vmatprep.mubr.msk.bf16.mxu1 %vm2262_vm2, %v2890_v31  ;;  %v2567_v51 = vsel %vm2522_vm6, %v2502_v55, %v5016_v36  ;;  %v2568_v20 = vsel %vm2522_vm6, %v2503_v46, %v5017_v35  ;;  %v9510_v39 = vpack.i.bf16 %v9508_v18, %v9509_v4  ;;  %v9511_v31 = vld [vmem:[#allocation56_spill] sm:$0xff]  ;;  %v9512_v27 = vld [vmem:[#allocation89_spill] sm:$0xff]  ;;  %v4822_v9 = vunpack.i.h.bf16 %v9514_v14 }
 0x1d8   : > { %v5032_v58 = vunpack.i.h.bf16 %v5030_v29  ;;  %v5031_v32 = vunpack.i.l.bf16 %v5030_v29  ;;  %v5025_v63 = vpop.permute.xlu0 %5024  ;;  %v2472_v16 = vsel %vm2457_vm5, %v9512_v27, %v4741_v17  ;;  %v4821_v15 = vunpack.i.l.bf16 %v9514_v14  ;;  %v9517_v46 = vld [vmem:[#allocation32_spill] sm:$0xff]  ;;  %v9518_v28 = vld [vmem:[#allocation129_spill] sm:$0xff] }
 0x1d9   : > { %5319 = vrot.lane.b32.xlu1 %v9499_v44, %s5437_s22  ;;  %v5027_v56 = vunpack.i.h.bf16 %v5025_v63  ;;  %v5026_v60 = vunpack.i.l.bf16 %v5025_v63  ;;  %v2862_v44 = vld [vmem:[#allocation3 + $0x88] sm:$0xff] }
 0x1da   : > { %v2665_v0 = vsel %vm2652_vm8, %v2600_v33, %v5031_v32  ;;  %v2666_v26 = vsel %vm2652_vm8, %v2601_v34, %v5032_v58  ;;  %5314 = vrot.lane.b32.xlu0 %v9500_v49, %s5437_s22  ;;  %s5440_s22 = smov [#allocation4]  }
 0x1db   : > { %v2729_v42 = vpack.c.bf16 %v2666_v26, %v2665_v0  ;;  %v5040_v1 = vpop.permute.xlu1 %5039  ;;  %v2632_v8 = vsel %vm2587_vm7, %v2567_v51, %v5026_v60  ;;  %v2633_v50 = vsel %vm2587_vm7, %v2568_v20, %v5027_v56  ;;  %v9515_v0 = vld [vmem:[#allocation61_spill] sm:$0xff]  ;;  %v9516_v56 = vld [vmem:[#allocation72_spill] sm:$0xff]  ;;  %v4746_v51 = vunpack.i.l.bf16 %v9517_v46 }
 0x1dc   : > { %v5035_v38 = vpop.permute.xlu0 %5034  ;;  %v5042_v23 = vunpack.i.h.bf16 %v5040_v1  ;;  %v5041_v21 = vunpack.i.l.bf16 %v5040_v1  ;;  %v2504_v26 = vsel %vm2457_vm5, %v9515_v0, %v4821_v15  ;;  %v2505_v60 = vsel %vm2457_vm5, %v9516_v56, %v4822_v9  ;;  %v2896_v0 = vld [vmem:[#allocation3 + $0x198] sm:$0xff] }
 0x1dd   : > { %v5037_v3 = vunpack.i.h.bf16 %v5035_v38  ;;  %v5036_v41 = vunpack.i.l.bf16 %v5035_v38  ;;  %5329 = vrot.lane.b32.xlu1 %v9505_v62, %s5438_s24  ;;  %3159 = vmatmul.mubr.bf16.gmra.mrb[24].mxu0 %v2729_v42  ;;  %v4747_v38 = vunpack.i.h.bf16 %v9517_v46  ;;  %v2474_v17 = vsel %vm2457_vm5, %v9518_v28, %v4746_v51 }
 0x1de   : > { %5324 = vrot.lane.b32.xlu0 %v9506_v48, %s5438_s24  ;;  %3927 = vmatprep.mubr.msk.bf16.mxu0 %vm2262_vm2, %v2860_v37  ;;  %v2537_v10 = vsel %vm2522_vm6, %v2472_v16, %v5041_v21  ;;  %v2538_v47 = vsel %vm2522_vm6, %v2473_v2, %v5042_v23  ;;  %s5356_s24 = sshll.u32 %s5440_s22, 4  ;;  %s5357_s24 = int_to_ptr.vmem [resolvable:$false] %s5356_s24 }
 0x1df   : > { %v2697_v7 = vsel %vm2652_vm8, %v2632_v8, %v5036_v41  ;;  %v2698_v45 = vsel %vm2652_vm8, %v2633_v50, %v5037_v3  ;;  %v5050_v19 = vpop.permute.xlu1 %5049  ;;  %v2894_v50 = vld [vmem:[#allocation3 + $0x188] sm:$0xff]  ;;  %p5359_p1 = scmp.lt.s32.totalorder %s8597_s10, %s5357_s24 }
 0x1e0   : > { %v2761_v11 = vpack.c.bf16 %v2698_v45, %v2697_v7  ;;  %v5045_v59 = vpop.permute.xlu0 %5044  ;;  %v5052_v52 = vunpack.i.h.bf16 %v5050_v19  ;;  %v5051_v6 = vunpack.i.l.bf16 %v5050_v19  ;;  %v9519_v7 = vld [vmem:[#allocation110_spill] sm:$0xff]  ;;  %v9520_v19 = vld [vmem:[#allocation12_spill] sm:$0xff] }
 0x1e1   : > { %5339 = vrot.lane.b32.xlu1 %v9510_v39, %s5439_s26  ;;  %v5047_v32 = vunpack.i.h.bf16 %v5045_v59  ;;  %v5046_v63 = vunpack.i.l.bf16 %v5045_v59  ;;  %v2475_v45 = vsel %vm2457_vm5, %v9519_v7, %v4747_v38  ;;  %v4827_v23 = vunpack.i.h.bf16 %v9520_v19 }
 0x1e2   : > { %5334 = vrot.lane.b32.xlu0 %v9511_v31, %s5439_s26  ;;  %3287 = vmatmul.mubr.bf16.gmra.mrb[24].mxu1 %v2761_v11  ;;  %v2602_v24 = vsel %vm2587_vm7, %v2537_v10, %v5051_v6  ;;  %v2603_v58 = vsel %vm2587_vm7, %v2538_v47, %v5052_v52  ;;  %v4826_v21 = vunpack.i.l.bf16 %v9520_v19  ;;  %v9521_v10 = vld [vmem:[#allocation143_spill] sm:$0xff]  ;;  %s5358_s26 = scalar_lea.vmem %s5357_s24, 16384 }
 0x1e3   : > { %v5060_v30 = vpop.permute.xlu1 %5059  ;;  %3943 = vmatprep.mubr.msk.bf16.mxu1 %vm2262_vm2, %v2892_v5  ;;  %v2570_v42 = vsel %vm2522_vm6, %v2505_v60, %v5047_v32  ;;  %v2569_v1 = vsel %vm2522_vm6, %v2504_v26, %v5046_v63  ;;  %v9523_v60 = vld [vmem:[#allocation172_spill] sm:$0xff]  ;;  %p5360_p2 = scmp.lt.s32.totalorder %s5358_s26, %s5352_s21 }
 0x1e4   : > { %v5062_v54 = vunpack.i.h.bf16 %v5060_v30  ;;  %v5061_v29 = vunpack.i.l.bf16 %v5060_v30  ;;  %v5055_v43 = vpop.permute.xlu0 %5054  ;;  %v2864_v30 = vld [vmem:[#allocation3 + $0x98] sm:$0xff]  ;;  %v2506_v47 = vsel %vm2457_vm5, %v9521_v10, %v4826_v21 }
 0x1e5   : > { %v5057_v35 = vunpack.i.h.bf16 %v5055_v43  ;;  %v5056_v36 = vunpack.i.l.bf16 %v5055_v43  ;;  %v9528_v10 = vld [vmem:[#allocation98_spill] sm:$0xff]  ;;  %p5361_p3 = por %p5360_p2, %p5359_p1 }
 0x1e6   : > { %v2667_v33 = vsel %vm2652_vm8, %v2602_v24, %v5061_v29  ;;  %v2668_v34 = vsel %vm2652_vm8, %v2603_v58, %v5062_v54  ;;  %v9522_v54 = vld [vmem:[#allocation96_spill] sm:$0xff] }
 0x1e7   : > { %v2731_v40 = vpack.c.bf16 %v2668_v34, %v2667_v33  ;;  %v5070_v53 = vpop.permute.xlu1 %5069  ;;  %v2634_v55 = vsel %vm2587_vm7, %v2569_v1, %v5056_v36  ;;  %v2635_v13 = vsel %vm2587_vm7, %v2570_v42, %v5057_v35  ;;  %v2507_v29 = vsel %vm2457_vm5, %v9522_v54, %v4827_v23  ;;  %p5362_p5 = pnand %p5361_p3, %p5355_p0 }
 0x1e8   : > { %v5065_v49 = vpop.permute.xlu0 %5064  ;;  %v5072_v25 = vunpack.i.h.bf16 %v5070_v53  ;;  %v5071_v12 = vunpack.i.l.bf16 %v5070_v53  ;;  %v4751_v42 = vunpack.i.l.bf16 %v9523_v60  ;;  %v4756_v54 = vunpack.i.l.bf16 %v9528_v10 }
 0x1e9   : > { %v5067_v37 = vunpack.i.h.bf16 %v5065_v49  ;;  %v5066_v22 = vunpack.i.l.bf16 %v5065_v49  ;;  %3167 = vmatmul.mubr.bf16.gmra.mrb[28].mxu0 %v2731_v40  ;;  %v4752_v49 = vunpack.i.h.bf16 %v9523_v60 }
 0x1ea   : > { %3928 = vmatprep.mubr.msk.bf16.mxu0 %vm2262_vm2, %v2862_v44  ;;  %v2539_v59 = vsel %vm2522_vm6, %v2474_v17, %v5071_v12  ;;  %v2540_v5 = vsel %vm2522_vm6, %v2475_v45, %v5072_v25 }
 0x1eb   : > { %v2699_v20 = vsel %vm2652_vm8, %v2634_v55, %v5066_v22  ;;  %v2700_v3 = vsel %vm2652_vm8, %v2635_v13, %v5067_v37  ;;  %v5080_v41 = vpop.permute.xlu1 %5079 }
 0x1ec   : > { %v2763_v62 = vpack.c.bf16 %v2700_v3, %v2699_v20  ;;  %v5075_v8 = vpop.permute.xlu0 %5074  ;;  %v5082_v48 = vunpack.i.h.bf16 %v5080_v41  ;;  %v5081_v57 = vunpack.i.l.bf16 %v5080_v41  ;;  %v9524_v20 = vld [vmem:[#allocation69_spill] sm:$0xff]  ;;  %v9525_v41 = vld [vmem:[#allocation142_spill] sm:$0xff] }
 0x1ed   : > { %v5077_v31 = vunpack.i.h.bf16 %v5075_v8  ;;  %v5076_v27 = vunpack.i.l.bf16 %v5075_v8  ;;  %v9526_v8 = vld [vmem:[#allocation94_spill] sm:$0xff] }
 0x1ee   : > { %3295 = vmatmul.mubr.bf16.gmra.mrb[28].mxu1 %v2763_v62  ;;  %v2604_v4 = vsel %vm2587_vm7, %v2539_v59, %v5081_v57  ;;  %v2605_v39 = vsel %vm2587_vm7, %v2540_v5, %v5082_v48  ;;  %v9527_v48 = vld [vmem:[#allocation59_spill] sm:$0xff] }
 0x1ef   : > { %v5090_v11 = vpop.permute.xlu1 %5089  ;;  %3944 = vmatprep.mubr.msk.bf16.mxu1 %vm2262_vm2, %v2894_v50  ;;  %v2571_v24 = vsel %vm2522_vm6, %v2506_v47, %v5076_v27  ;;  %v2572_v58 = vsel %vm2522_vm6, %v2507_v29, %v5077_v31  ;;  %v2476_v50 = vsel %vm2457_vm5, %v9526_v8, %v4751_v42  ;;  %v2477_v57 = vsel %vm2457_vm5, %v9527_v48, %v4752_v49 }
 0x1f0   : > { %v5092_v52 = vunpack.i.h.bf16 %v5090_v11  ;;  %v5091_v6 = vunpack.i.l.bf16 %v5090_v11  ;;  %v5085_v18 = vpop.permute.xlu0 %5084  ;;  %v4757_v47 = vunpack.i.h.bf16 %v9528_v10  ;;  %v9535_v10 = vld [vmem:[#allocation77_spill] sm:$0xff] }
 0x1f1   : > { %v5087_v2 = vunpack.i.h.bf16 %v5085_v18  ;;  %v5086_v14 = vunpack.i.l.bf16 %v5085_v18 }
 0x1f2   : > { %v2669_v16 = vsel %vm2652_vm8, %v2604_v4, %v5091_v6  ;;  %v2670_v61 = vsel %vm2652_vm8, %v2605_v39, %v5092_v52 }
 0x1f3   : > { %v2733_v9 = vpack.c.bf16 %v2670_v61, %v2669_v16  ;;  %v5100_v15 = vpop.permute.xlu1 %5099  ;;  %v2636_v33 = vsel %vm2587_vm7, %v2571_v24, %v5086_v14  ;;  %v2637_v34 = vsel %vm2587_vm7, %v2572_v58, %v5087_v2  ;;  %v2898_v14 = vld [vmem:[#allocation3 + $0x1a8] sm:$0xff] }
 0x1f4   : > { %v5095_v43 = vpop.permute.xlu0 %5094  ;;  %v5102_v26 = vunpack.i.h.bf16 %v5100_v15  ;;  %v5101_v56 = vunpack.i.l.bf16 %v5100_v15 }
 0x1f5   : > { %v5097_v32 = vunpack.i.h.bf16 %v5095_v43  ;;  %v5096_v63 = vunpack.i.l.bf16 %v5095_v43  ;;  %3175 = vmatmul.mubr.bf16.gmra.mrb[32].mxu0 %v2733_v9 }
 0x1f6   : > { %3929 = vmatprep.mubr.msk.bf16.mxu0 %vm2262_vm2, %v2864_v30  ;;  %v2508_v3 = vsel %vm2457_vm5, %v9524_v20, %v5101_v56  ;;  %v2509_v25 = vsel %vm2457_vm5, %v9525_v41, %v5102_v26  ;;  %v2866_v30 = vld [vmem:[#allocation3 + $0xa8] sm:$0xff] }
 0x1f7   : > { %v2701_v35 = vsel %vm2652_vm8, %v2636_v33, %v5096_v63  ;;  %v2702_v36 = vsel %vm2652_vm8, %v2637_v34, %v5097_v32  ;;  %v5110_v40 = vpop.permute.xlu1 %5109  ;;  %v9529_v33 = vld [vmem:[#allocation17_spill] sm:$0xff]  ;;  %v9531_v41 = vld [vmem:[#allocation84_spill] sm:$0xff] }
 0x1f8   : > { %v2765_v53 = vpack.c.bf16 %v2702_v36, %v2701_v35  ;;  %v5105_v44 = vpop.permute.xlu0 %5104  ;;  %v5112_v1 = vunpack.i.h.bf16 %v5110_v40  ;;  %v5111_v37 = vunpack.i.l.bf16 %v5110_v40  ;;  %v2478_v34 = vsel %vm2457_vm5, %v9529_v33, %v4756_v54  ;;  %v9530_v35 = vld [vmem:[#allocation53_spill] sm:$0xff] }
 0x1f9   : > { %v5107_v55 = vunpack.i.h.bf16 %v5105_v44  ;;  %v5106_v13 = vunpack.i.l.bf16 %v5105_v44  ;;  %v2479_v36 = vsel %vm2457_vm5, %v9530_v35, %v4757_v47 }
 0x1fa   : > { %3303 = vmatmul.mubr.bf16.gmra.mrb[32].mxu1 %v2765_v53  ;;  %v2573_v28 = vsel %vm2522_vm6, %v2508_v3, %v5111_v37  ;;  %v2574_v17 = vsel %vm2522_vm6, %v2509_v25, %v5112_v1  ;;  %v2868_v3 = vld [vmem:[#allocation3 + $0xb8] sm:$0xff] }
 0x1fb   : > { %v5120_v22 = vpop.permute.xlu1 %5119  ;;  %3945 = vmatprep.mubr.msk.bf16.mxu1 %vm2262_vm2, %v2896_v0  ;;  %v2542_v45 = vsel %vm2522_vm6, %v2477_v57, %v5107_v55  ;;  %v2541_v19 = vsel %vm2522_vm6, %v2476_v50, %v5106_v13 }
 0x1fc   : > { %v5115_v46 = vpop.permute.xlu0 %5114  ;;  %v5122_v38 = vunpack.i.h.bf16 %v5120_v22  ;;  %v5121_v51 = vunpack.i.l.bf16 %v5120_v22 }
 0x1fd   : > { %v5117_v12 = vunpack.i.h.bf16 %v5115_v46  ;;  %v5116_v62 = vunpack.i.l.bf16 %v5115_v46 }
 0x1fe   : > { %v2638_v59 = vsel %vm2587_vm7, %v2573_v28, %v5121_v51  ;;  %v2639_v5 = vsel %vm2587_vm7, %v2574_v17, %v5122_v38 }
 0x1ff   : > { %v5130_v7 = vpop.permute.xlu1 %5129  ;;  %v2606_v18 = vsel %vm2587_vm7, %v2541_v19, %v5116_v62  ;;  %v2607_v4 = vsel %vm2587_vm7, %v2542_v45, %v5117_v12  ;;  %v9532_v12 = vld [vmem:[#allocation83_spill] sm:$0xff] }
 0x200   : > { %v5132_v23 = vunpack.i.h.bf16 %v5130_v7  ;;  %v5131_v21 = vunpack.i.l.bf16 %v5130_v7  ;;  %v5125_v11 = vpop.permute.xlu0 %5124 }
 0x201   : > { %v5127_v52 = vunpack.i.h.bf16 %v5125_v11  ;;  %v5126_v6 = vunpack.i.l.bf16 %v5125_v11 }
 0x202   : > { %v2703_v39 = vsel %vm2652_vm8, %v2638_v59, %v5131_v21  ;;  %v2704_v31 = vsel %vm2652_vm8, %v2639_v5, %v5132_v23  ;;  %v2900_v59 = vld [vmem:[#allocation3 + $0x1b8] sm:$0xff] }
 0x203   : > { %v2767_v27 = vpack.c.bf16 %v2704_v31, %v2703_v39  ;;  %v2671_v16 = vsel %vm2652_vm8, %v2606_v18, %v5126_v6  ;;  %v2672_v61 = vsel %vm2652_vm8, %v2607_v4, %v5127_v52  ;;  %v5140_v2 = vpop.permute.xlu1 %5139  ;;  %v9533_v6 = vld [vmem:[#allocation65_spill] sm:$0xff] }
 0x204   : > { %v2735_v9 = vpack.c.bf16 %v2672_v61, %v2671_v16  ;;  %v5135_v15 = vpop.permute.xlu0 %5134  ;;  %v5142_v43 = vunpack.i.h.bf16 %v5140_v2  ;;  %v5141_v24 = vunpack.i.l.bf16 %v5140_v2  ;;  %v4762_v18 = vunpack.i.h.bf16 %v9533_v6 }
 0x205   : > { %3311 = vmatmul.mubr.bf16.gmra.mrb[36].mxu1 %v2767_v27  ;;  %v5137_v40 = vunpack.i.h.bf16 %v5135_v15  ;;  %v5136_v53 = vunpack.i.l.bf16 %v5135_v15  ;;  %v4761_v4 = vunpack.i.l.bf16 %v9533_v6  ;;  %v9534_v15 = vld [vmem:[#allocation73_spill] sm:$0xff] }
 0x206   : > { %3183 = vmatmul.mubr.bf16.gmra.mrb[36].mxu0 %v2735_v9  ;;  %3946 = vmatprep.mubr.msk.bf16.mxu1 %vm2262_vm2, %v2898_v14  ;;  %v2543_v0 = vsel %vm2522_vm6, %v2478_v34, %v5141_v24  ;;  %v2544_v26 = vsel %vm2522_vm6, %v2479_v36, %v5142_v43  ;;  %v9536_v43 = vld [vmem:[#allocation18_spill] sm:$0xff] }
 0x207   : > { %v5150_v29 = vpop.permute.xlu1 %5149  ;;  %3930 = vmatprep.mubr.msk.bf16.mxu0 %vm2262_vm2, %v2866_v30  ;;  %v2510_v25 = vsel %vm2457_vm5, %v9531_v41, %v5136_v53  ;;  %v2511_v62 = vsel %vm2457_vm5, %v9532_v12, %v5137_v40  ;;  %v2480_v24 = vsel %vm2457_vm5, %v9536_v43, %v4761_v4  ;;  %v9538_v41 = vld [vmem:[#allocation24_spill] sm:$0xff] }
 0x208   : > { %v5145_v58 = vpop.permute.xlu0 %5144  ;;  %v5152_v32 = vunpack.i.h.bf16 %v5150_v29  ;;  %v5151_v63 = vunpack.i.l.bf16 %v5150_v29  ;;  %v4766_v12 = vunpack.i.l.bf16 %v9538_v41 }
 0x209   : > { %v5147_v37 = vunpack.i.h.bf16 %v5145_v58  ;;  %v5146_v22 = vunpack.i.l.bf16 %v5145_v58  ;;  %v9537_v58 = vld [vmem:[#allocation25_spill] sm:$0xff] }
 0x20a   : > { %v2608_v42 = vsel %vm2587_vm7, %v2543_v0, %v5151_v63  ;;  %v2609_v1 = vsel %vm2587_vm7, %v2544_v26, %v5152_v32  ;;  %v2481_v32 = vsel %vm2457_vm5, %v9537_v58, %v4762_v18 }
 0x20b   : > { %v5160_v44 = vpop.permute.xlu1 %5159  ;;  %v2575_v50 = vsel %vm2522_vm6, %v2510_v25, %v5146_v22  ;;  %v2576_v48 = vsel %vm2522_vm6, %v2511_v62, %v5147_v37  ;;  %v4767_v25 = vunpack.i.h.bf16 %v9538_v41  ;;  %v9545_v41 = vld [vmem:[#allocation81_spill] sm:$0xff] }
 0x20c   : > { %v5162_v56 = vunpack.i.h.bf16 %v5160_v44  ;;  %v5161_v60 = vunpack.i.l.bf16 %v5160_v44  ;;  %v5155_v49 = vpop.permute.xlu0 %5154 }
 0x20d   : > { %v5157_v46 = vunpack.i.h.bf16 %v5155_v49  ;;  %v5156_v38 = vunpack.i.l.bf16 %v5155_v49 }
 0x20e   : > { %v2673_v55 = vsel %vm2652_vm8, %v2608_v42, %v5161_v60  ;;  %v2674_v13 = vsel %vm2652_vm8, %v2609_v1, %v5162_v56 }
 0x20f   : > { %v2737_v51 = vpack.c.bf16 %v2674_v13, %v2673_v55  ;;  %v5170_v20 = vpop.permute.xlu1 %5169  ;;  %v2640_v17 = vsel %vm2587_vm7, %v2575_v50, %v5156_v38  ;;  %v2641_v7 = vsel %vm2587_vm7, %v2576_v48, %v5157_v46  ;;  %v2902_v38 = vld [vmem:[#allocation3 + $0x1c8] sm:$0xff] }
 0x210   : > { %v5165_v8 = vpop.permute.xlu0 %5164  ;;  %v5172_v5 = vunpack.i.h.bf16 %v5170_v20  ;;  %v5171_v52 = vunpack.i.l.bf16 %v5170_v20 }
 0x211   : > { %v5167_v57 = vunpack.i.h.bf16 %v5165_v8  ;;  %v5166_v28 = vunpack.i.l.bf16 %v5165_v8  ;;  %3191 = vmatmul.mubr.bf16.gmra.mrb[40].mxu0 %v2737_v51 }
 0x212   : > { %3931 = vmatprep.mubr.msk.bf16.mxu0 %vm2262_vm2, %v2868_v3  ;;  %v2512_v30 = vsel %vm2457_vm5, %v9534_v15, %v5171_v52  ;;  %v2513_v47 = vsel %vm2457_vm5, %v9535_v10, %v5172_v5  ;;  %v2870_v3 = vld [vmem:[#allocation3 + $0xc8] sm:$0xff] }
 0x213   : > { %v2705_v45 = vsel %vm2652_vm8, %v2640_v17, %v5166_v28  ;;  %v2706_v19 = vsel %vm2652_vm8, %v2641_v7, %v5167_v57  ;;  %v5180_v23 = vpop.permute.xlu1 %5179  ;;  %v9539_v17 = vld [vmem:[#allocation97_spill] sm:$0xff]  ;;  %v9541_v10 = vld [vmem:[#allocation168_spill] sm:$0xff] }
 0x214   : > { %v2769_v21 = vpack.c.bf16 %v2706_v19, %v2705_v45  ;;  %v5175_v11 = vpop.permute.xlu0 %5174  ;;  %v5182_v39 = vunpack.i.h.bf16 %v5180_v23  ;;  %v5181_v31 = vunpack.i.l.bf16 %v5180_v23  ;;  %v2482_v7 = vsel %vm2457_vm5, %v9539_v17, %v4766_v12  ;;  %v9540_v45 = vld [vmem:[#allocation66_spill] sm:$0xff] }
 0x215   : > { %v5177_v16 = vunpack.i.h.bf16 %v5175_v11  ;;  %v5176_v61 = vunpack.i.l.bf16 %v5175_v11  ;;  %v2483_v19 = vsel %vm2457_vm5, %v9540_v45, %v4767_v25 }
 0x216   : > { %3319 = vmatmul.mubr.bf16.gmra.mrb[40].mxu1 %v2769_v21  ;;  %v2577_v63 = vsel %vm2522_vm6, %v2512_v30, %v5181_v31  ;;  %v2578_v33 = vsel %vm2522_vm6, %v2513_v47, %v5182_v39  ;;  %v2872_v30 = vld [vmem:[#allocation3 + $0xd8] sm:$0xff] }
 0x217   : > { %v5190_v27 = vpop.permute.xlu1 %5189  ;;  %3947 = vmatprep.mubr.msk.bf16.mxu1 %vm2262_vm2, %v2900_v59  ;;  %v2546_v35 = vsel %vm2522_vm6, %v2481_v32, %v5177_v16  ;;  %v2545_v36 = vsel %vm2522_vm6, %v2480_v24, %v5176_v61 }
 0x218   : > { %v5185_v2 = vpop.permute.xlu0 %5184  ;;  %v5192_v14 = vunpack.i.h.bf16 %v5190_v27  ;;  %v5191_v9 = vunpack.i.l.bf16 %v5190_v27 }
 0x219   : > { %v5187_v54 = vunpack.i.h.bf16 %v5185_v2  ;;  %v5186_v29 = vunpack.i.l.bf16 %v5185_v2 }
 0x21a   : > { %v2642_v0 = vsel %vm2587_vm7, %v2577_v63, %v5191_v9  ;;  %v2643_v26 = vsel %vm2587_vm7, %v2578_v33, %v5192_v14 }
 0x21b   : > { %v5200_v34 = vpop.permute.xlu1 %5199  ;;  %v2610_v49 = vsel %vm2587_vm7, %v2545_v36, %v5186_v29  ;;  %v2611_v42 = vsel %vm2587_vm7, %v2546_v35, %v5187_v54  ;;  %v9542_v54 = vld [vmem:[#allocation130_spill] sm:$0xff] }
 0x21c   : > { %v5202_v40 = vunpack.i.h.bf16 %v5200_v34  ;;  %v5201_v53 = vunpack.i.l.bf16 %v5200_v34  ;;  %v5195_v44 = vpop.permute.xlu0 %5194 }
 0x21d   : > { %v5197_v56 = vunpack.i.h.bf16 %v5195_v44  ;;  %v5196_v60 = vunpack.i.l.bf16 %v5195_v44 }
 0x21e   : > { %v2707_v1 = vsel %vm2652_vm8, %v2642_v0, %v5201_v53  ;;  %v2708_v37 = vsel %vm2652_vm8, %v2643_v26, %v5202_v40  ;;  %v2904_v0 = vld [vmem:[#allocation3 + $0x1d8] sm:$0xff] }
 0x21f   : > { %v2771_v22 = vpack.c.bf16 %v2708_v37, %v2707_v1  ;;  %v2675_v55 = vsel %vm2652_vm8, %v2610_v49, %v5196_v60  ;;  %v2676_v13 = vsel %vm2652_vm8, %v2611_v42, %v5197_v56  ;;  %v5210_v46 = vpop.permute.xlu1 %5209  ;;  %v9543_v60 = vld [vmem:[#allocation86_spill] sm:$0xff] }
 0x220   : > { %v2739_v51 = vpack.c.bf16 %v2676_v13, %v2675_v55  ;;  %v5205_v20 = vpop.permute.xlu0 %5204  ;;  %v5212_v8 = vunpack.i.h.bf16 %v5210_v46  ;;  %v5211_v50 = vunpack.i.l.bf16 %v5210_v46  ;;  %v4772_v49 = vunpack.i.h.bf16 %v9543_v60 }
 0x221   : > { %3327 = vmatmul.mubr.bf16.gmra.mrb[44].mxu1 %v2771_v22  ;;  %v5207_v23 = vunpack.i.h.bf16 %v5205_v20  ;;  %v5206_v21 = vunpack.i.l.bf16 %v5205_v20  ;;  %v4771_v42 = vunpack.i.l.bf16 %v9543_v60  ;;  %v9544_v20 = vld [vmem:[#allocation87_spill] sm:$0xff] }
 0x222   : > { %3199 = vmatmul.mubr.bf16.gmra.mrb[44].mxu0 %v2739_v51  ;;  %3948 = vmatprep.mubr.msk.bf16.mxu1 %vm2262_vm2, %v2902_v38  ;;  %v2547_v59 = vsel %vm2522_vm6, %v2482_v7, %v5211_v50  ;;  %v2548_v5 = vsel %vm2522_vm6, %v2483_v19, %v5212_v8  ;;  %v9546_v8 = vld [vmem:[#allocation26_spill] sm:$0xff] }
 0x223   : > { %v5220_v62 = vpop.permute.xlu1 %5219  ;;  %3932 = vmatprep.mubr.msk.bf16.mxu0 %vm2262_vm2, %v2870_v3  ;;  %v2514_v47 = vsel %vm2457_vm5, %v9541_v10, %v5206_v21  ;;  %v2515_v29 = vsel %vm2457_vm5, %v9542_v54, %v5207_v23  ;;  %v2484_v50 = vsel %vm2457_vm5, %v9546_v8, %v4771_v42  ;;  %v9548_v10 = vld [vmem:[#allocation113_spill] sm:$0xff] }
 0x224   : > { %v5215_v48 = vpop.permute.xlu0 %5214  ;;  %v5222_v57 = vunpack.i.h.bf16 %v5220_v62  ;;  %v5221_v28 = vunpack.i.l.bf16 %v5220_v62  ;;  %v4776_v54 = vunpack.i.l.bf16 %v9548_v10 }
 0x225   : > { %v5217_v31 = vunpack.i.h.bf16 %v5215_v48  ;;  %v5216_v27 = vunpack.i.l.bf16 %v5215_v48  ;;  %v9547_v48 = vld [vmem:[#allocation158_spill] sm:$0xff] }
 0x226   : > { %v2612_v4 = vsel %vm2587_vm7, %v2547_v59, %v5221_v28  ;;  %v2613_v39 = vsel %vm2587_vm7, %v2548_v5, %v5222_v57  ;;  %v2485_v57 = vsel %vm2457_vm5, %v9547_v48, %v4772_v49 }
 0x227   : > { %v5230_v11 = vpop.permute.xlu1 %5229  ;;  %v2579_v24 = vsel %vm2522_vm6, %v2514_v47, %v5216_v27  ;;  %v2580_v58 = vsel %vm2522_vm6, %v2515_v29, %v5217_v31  ;;  %v4777_v47 = vunpack.i.h.bf16 %v9548_v10  ;;  %v9555_v10 = vld [vmem:[#allocation67_spill] sm:$0xff] }
 0x228   : > { %v5232_v52 = vunpack.i.h.bf16 %v5230_v11  ;;  %v5231_v6 = vunpack.i.l.bf16 %v5230_v11  ;;  %v5225_v18 = vpop.permute.xlu0 %5224 }
 0x229   : > { %v5227_v2 = vunpack.i.h.bf16 %v5225_v18  ;;  %v5226_v14 = vunpack.i.l.bf16 %v5225_v18 }
 0x22a   : > { %v2677_v16 = vsel %vm2652_vm8, %v2612_v4, %v5231_v6  ;;  %v2678_v61 = vsel %vm2652_vm8, %v2613_v39, %v5232_v52 }
 0x22b   : > { %v2741_v9 = vpack.c.bf16 %v2678_v61, %v2677_v16  ;;  %v5240_v15 = vpop.permute.xlu1 %5239  ;;  %v2644_v33 = vsel %vm2587_vm7, %v2579_v24, %v5226_v14  ;;  %v2645_v34 = vsel %vm2587_vm7, %v2580_v58, %v5227_v2  ;;  %v2906_v14 = vld [vmem:[#allocation3 + $0x1e8] sm:$0xff] }
 0x22c   : > { %v5235_v43 = vpop.permute.xlu0 %5234  ;;  %v5242_v26 = vunpack.i.h.bf16 %v5240_v15  ;;  %v5241_v56 = vunpack.i.l.bf16 %v5240_v15 }
 0x22d   : > { %v5237_v32 = vunpack.i.h.bf16 %v5235_v43  ;;  %v5236_v63 = vunpack.i.l.bf16 %v5235_v43  ;;  %3207 = vmatmul.mubr.bf16.gmra.mrb[48].mxu0 %v2741_v9 }
 0x22e   : > { %3933 = vmatprep.mubr.msk.bf16.mxu0 %vm2262_vm2, %v2872_v30  ;;  %v2516_v3 = vsel %vm2457_vm5, %v9544_v20, %v5241_v56  ;;  %v2517_v25 = vsel %vm2457_vm5, %v9545_v41, %v5242_v26  ;;  %v2874_v30 = vld [vmem:[#allocation3 + $0xe8] sm:$0xff]  ;;  %v9551_v41 = vld [vmem:[#allocation27_spill] sm:$0xff] }
 0x22f   : > { %v2709_v35 = vsel %vm2652_vm8, %v2644_v33, %v5236_v63  ;;  %v2710_v36 = vsel %vm2652_vm8, %v2645_v34, %v5237_v32  ;;  %v5250_v40 = vpop.permute.xlu1 %5249  ;;  %v9549_v33 = vld [vmem:[#allocation160_spill] sm:$0xff] }
 0x230   : > { %v2773_v53 = vpack.c.bf16 %v2710_v36, %v2709_v35  ;;  %v5245_v44 = vpop.permute.xlu0 %5244  ;;  %v5252_v1 = vunpack.i.h.bf16 %v5250_v40  ;;  %v5251_v37 = vunpack.i.l.bf16 %v5250_v40  ;;  %v2486_v34 = vsel %vm2457_vm5, %v9549_v33, %v4776_v54  ;;  %v9550_v35 = vld [vmem:[#allocation112_spill] sm:$0xff] }
 0x231   : > { %v5247_v55 = vunpack.i.h.bf16 %v5245_v44  ;;  %v5246_v13 = vunpack.i.l.bf16 %v5245_v44  ;;  %v2487_v36 = vsel %vm2457_vm5, %v9550_v35, %v4777_v47 }
 0x232   : > { %3335 = vmatmul.mubr.bf16.gmra.mrb[48].mxu1 %v2773_v53  ;;  %v2581_v28 = vsel %vm2522_vm6, %v2516_v3, %v5251_v37  ;;  %v2582_v17 = vsel %vm2522_vm6, %v2517_v25, %v5252_v1  ;;  %v2876_v3 = vld [vmem:[#allocation3 + $0xf8] sm:$0xff] }
 0x233   : > { %v5260_v22 = vpop.permute.xlu1 %5259  ;;  %3949 = vmatprep.mubr.msk.bf16.mxu1 %vm2262_vm2, %v2904_v0  ;;  %v2550_v45 = vsel %vm2522_vm6, %v2485_v57, %v5247_v55  ;;  %v2549_v19 = vsel %vm2522_vm6, %v2484_v50, %v5246_v13 }
 0x234   : > { %v5255_v46 = vpop.permute.xlu0 %5254  ;;  %v5262_v38 = vunpack.i.h.bf16 %v5260_v22  ;;  %v5261_v51 = vunpack.i.l.bf16 %v5260_v22 }
 0x235   : > { %v5257_v12 = vunpack.i.h.bf16 %v5255_v46  ;;  %v5256_v62 = vunpack.i.l.bf16 %v5255_v46 }
 0x236   : > { %v2646_v59 = vsel %vm2587_vm7, %v2581_v28, %v5261_v51  ;;  %v2647_v5 = vsel %vm2587_vm7, %v2582_v17, %v5262_v38 }
 0x237   : > { %v5270_v7 = vpop.permute.xlu1 %5269  ;;  %v2614_v18 = vsel %vm2587_vm7, %v2549_v19, %v5256_v62  ;;  %v2615_v4 = vsel %vm2587_vm7, %v2550_v45, %v5257_v12  ;;  %v9552_v12 = vld [vmem:[#allocation57_spill] sm:$0xff] }
 0x238   : > { %v5272_v23 = vunpack.i.h.bf16 %v5270_v7  ;;  %v5271_v21 = vunpack.i.l.bf16 %v5270_v7  ;;  %v5265_v11 = vpop.permute.xlu0 %5264 }
 0x239   : > { %v5267_v52 = vunpack.i.h.bf16 %v5265_v11  ;;  %v5266_v6 = vunpack.i.l.bf16 %v5265_v11 }
 0x23a   : > { %v2711_v39 = vsel %vm2652_vm8, %v2646_v59, %v5271_v21  ;;  %v2712_v31 = vsel %vm2652_vm8, %v2647_v5, %v5272_v23  ;;  %v2908_v59 = vld [vmem:[#allocation3 + $0x1f8] sm:$0xff] }
 0x23b   : > { %v2775_v27 = vpack.c.bf16 %v2712_v31, %v2711_v39  ;;  %v2679_v16 = vsel %vm2652_vm8, %v2614_v18, %v5266_v6  ;;  %v2680_v61 = vsel %vm2652_vm8, %v2615_v4, %v5267_v52  ;;  %v5280_v2 = vpop.permute.xlu1 %5279  ;;  %v9553_v6 = vld [vmem:[#allocation150_spill] sm:$0xff] }
 0x23c   : > { %v2743_v9 = vpack.c.bf16 %v2680_v61, %v2679_v16  ;;  %v5275_v15 = vpop.permute.xlu0 %5274  ;;  %v5282_v43 = vunpack.i.h.bf16 %v5280_v2  ;;  %v5281_v24 = vunpack.i.l.bf16 %v5280_v2  ;;  %v4782_v18 = vunpack.i.h.bf16 %v9553_v6 }
 0x23d   : > { %3343 = vmatmul.mubr.bf16.gmra.mrb[52].mxu1 %v2775_v27  ;;  %v5277_v40 = vunpack.i.h.bf16 %v5275_v15  ;;  %v5276_v53 = vunpack.i.l.bf16 %v5275_v15  ;;  %v4781_v4 = vunpack.i.l.bf16 %v9553_v6  ;;  %v9554_v15 = vld [vmem:[#allocation170_spill] sm:$0xff] }
 0x23e   : > { %3215 = vmatmul.mubr.bf16.gmra.mrb[52].mxu0 %v2743_v9  ;;  %3950 = vmatprep.mubr.msk.bf16.mxu1 %vm2262_vm2, %v2906_v14  ;;  %v2551_v0 = vsel %vm2522_vm6, %v2486_v34, %v5281_v24  ;;  %v2552_v26 = vsel %vm2522_vm6, %v2487_v36, %v5282_v43  ;;  %v9556_v43 = vld [vmem:[#allocation159_spill] sm:$0xff] }
 0x23f   : > { %v5290_v29 = vpop.permute.xlu1 %5289  ;;  %3934 = vmatprep.mubr.msk.bf16.mxu0 %vm2262_vm2, %v2874_v30  ;;  %v2518_v25 = vsel %vm2457_vm5, %v9551_v41, %v5276_v53  ;;  %v2519_v62 = vsel %vm2457_vm5, %v9552_v12, %v5277_v40  ;;  %v2488_v24 = vsel %vm2457_vm5, %v9556_v43, %v4781_v4 }
 0x240   : > { %v5285_v58 = vpop.permute.xlu0 %5284  ;;  %v5292_v32 = vunpack.i.h.bf16 %v5290_v29  ;;  %v5291_v63 = vunpack.i.l.bf16 %v5290_v29 }
 0x241   : > { %v5287_v37 = vunpack.i.h.bf16 %v5285_v58  ;;  %v5286_v22 = vunpack.i.l.bf16 %v5285_v58  ;;  %v9557_v58 = vld [vmem:[#allocation21_spill] sm:$0xff] }
 0x242   : > { %v2616_v42 = vsel %vm2587_vm7, %v2551_v0, %v5291_v63  ;;  %v2617_v1 = vsel %vm2587_vm7, %v2552_v26, %v5292_v32  ;;  %v2489_v32 = vsel %vm2457_vm5, %v9557_v58, %v4782_v18 }
 0x243   : > { %v5300_v44 = vpop.permute.xlu1 %5299  ;;  %v2583_v50 = vsel %vm2522_vm6, %v2518_v25, %v5286_v22  ;;  %v2584_v48 = vsel %vm2522_vm6, %v2519_v62, %v5287_v37 }
 0x244   : > { %v5302_v56 = vunpack.i.h.bf16 %v5300_v44  ;;  %v5301_v60 = vunpack.i.l.bf16 %v5300_v44  ;;  %v5295_v49 = vpop.permute.xlu0 %5294 }
 0x245   : > { %v5297_v46 = vunpack.i.h.bf16 %v5295_v49  ;;  %v5296_v38 = vunpack.i.l.bf16 %v5295_v49 }
 0x246   : > { %v2681_v55 = vsel %vm2652_vm8, %v2616_v42, %v5301_v60  ;;  %v2682_v13 = vsel %vm2652_vm8, %v2617_v1, %v5302_v56 }
 0x247   : > { %v2745_v51 = vpack.c.bf16 %v2682_v13, %v2681_v55  ;;  %v5310_v20 = vpop.permute.xlu1 %5309  ;;  %v2648_v17 = vsel %vm2587_vm7, %v2583_v50, %v5296_v38  ;;  %v2649_v7 = vsel %vm2587_vm7, %v2584_v48, %v5297_v46  ;;  %v8390_v38 = vld [vmem:[%s8652_s2] ss:$0 sm:$0xff] }
 0x248   : > { %v5305_v8 = vpop.permute.xlu0 %5304  ;;  %v5312_v5 = vunpack.i.h.bf16 %v5310_v20  ;;  %v5311_v52 = vunpack.i.l.bf16 %v5310_v20  ;;  %v8395_v20 = vld [vmem:[%s8653_s3] ss:$0 sm:$0xff] }
 0x249   : > { %v5307_v57 = vunpack.i.h.bf16 %v5305_v8  ;;  %v5306_v28 = vunpack.i.l.bf16 %v5305_v8  ;;  %3223 = vmatmul.mubr.bf16.gmra.mrb[56].mxu0 %v2745_v51 }
 0x24a   : > { %3935 = vmatprep.mubr.msk.bf16.mxu0 %vm2262_vm2, %v2876_v3  ;;  %v2520_v30 = vsel %vm2457_vm5, %v9554_v15, %v5311_v52  ;;  %v2521_v47 = vsel %vm2457_vm5, %v9555_v10, %v5312_v5 }
 0x24b   : > { %v2713_v45 = vsel %vm2652_vm8, %v2648_v17, %v5306_v28  ;;  %v2714_v19 = vsel %vm2652_vm8, %v2649_v7, %v5307_v57  ;;  %v5320_v23 = vpop.permute.xlu1 %5319 }
 0x24c   : > { %v2777_v21 = vpack.c.bf16 %v2714_v19, %v2713_v45  ;;  %v5315_v11 = vpop.permute.xlu0 %5314  ;;  %v5322_v39 = vunpack.i.h.bf16 %v5320_v23  ;;  %v5321_v31 = vunpack.i.l.bf16 %v5320_v23 }
 0x24d   : > { %v5317_v16 = vunpack.i.h.bf16 %v5315_v11  ;;  %v5316_v61 = vunpack.i.l.bf16 %v5315_v11 }
 0x24e   : > { %3351 = vmatmul.mubr.bf16.gmra.mrb[56].mxu1 %v2777_v21  ;;  %v2585_v63 = vsel %vm2522_vm6, %v2520_v30, %v5321_v31  ;;  %v2586_v33 = vsel %vm2522_vm6, %v2521_v47, %v5322_v39 }
 0x24f   : > { %v5330_v27 = vpop.permute.xlu1 %5329  ;;  %3951 = vmatprep.mubr.msk.bf16.mxu1 %vm2262_vm2, %v2908_v59  ;;  %v2554_v35 = vsel %vm2522_vm6, %v2489_v32, %v5317_v16  ;;  %v2553_v36 = vsel %vm2522_vm6, %v2488_v24, %v5316_v61 }
 0x250   : > { %v5325_v2 = vpop.permute.xlu0 %5324  ;;  %v5332_v14 = vunpack.i.h.bf16 %v5330_v27  ;;  %v5331_v9 = vunpack.i.l.bf16 %v5330_v27 }
 0x251   : > { %v5327_v54 = vunpack.i.h.bf16 %v5325_v2  ;;  %v5326_v29 = vunpack.i.l.bf16 %v5325_v2 }
 0x252   : > { %v2650_v0 = vsel %vm2587_vm7, %v2585_v63, %v5331_v9  ;;  %v2651_v26 = vsel %vm2587_vm7, %v2586_v33, %v5332_v14 }
 0x253   : > { %v5340_v34 = vpop.permute.xlu1 %5339  ;;  %v2618_v49 = vsel %vm2587_vm7, %v2553_v36, %v5326_v29  ;;  %v2619_v42 = vsel %vm2587_vm7, %v2554_v35, %v5327_v54 }
 0x254   : > { %v5342_v40 = vunpack.i.h.bf16 %v5340_v34  ;;  %v5341_v53 = vunpack.i.l.bf16 %v5340_v34  ;;  %v5335_v44 = vpop.permute.xlu0 %5334 }
 0x255   : > { %v5337_v56 = vunpack.i.h.bf16 %v5335_v44  ;;  %v5336_v60 = vunpack.i.l.bf16 %v5335_v44 }
 0x256   : > { %v2716_v1 = vsel %vm2652_vm8, %v2651_v26, %v5342_v40  ;;  %v2715_v37 = vsel %vm2652_vm8, %v2650_v0, %v5341_v53 }
 0x257   : > { %v2779_v22 = vpack.c.bf16 %v2716_v1, %v2715_v37  ;;  %v2683_v55 = vsel %vm2652_vm8, %v2618_v49, %v5336_v60  ;;  %v2684_v13 = vsel %vm2652_vm8, %v2619_v42, %v5337_v56 }
 0x258   : > { %v2747_v46 = vpack.c.bf16 %v2684_v13, %v2683_v55 }
 0x259   : > { %3359 = vmatmul.mubr.bf16.gmra.mrb[60].mxu1 %v2779_v22 }
 0x25a   : > { %3231 = vmatmul.mubr.bf16.gmra.mrb[60].mxu0 %v2747_v46 }
 0x268   : > { %v3112_v51 = vpop.f32.mrb[0].mxu0 }
 0x269   : > { %v3502_v3 = vmul.f32 %v8390_v38, %v3112_v51  ;;  %v3114_v41 = vpop.f32.mrb[1].mxu0 }
 0x26a   : > { %v3115_v25 = vpop.f32.mrb[2].mxu0 }
 0x26b   : > { %v3573_v12 = vadd.f32 %v8395_v20, %v3502_v3  ;;  %v3503_v62 = vmul.f32 %v8390_v38, %v3115_v25  ;;  %v3117_v8 = vpop.f32.mrb[3].mxu0 }
 0x26d   : > { %v3637_v50 = vmax.f32 %v3573_v12, 0.0  ;;  %v3574_v48 = vadd.f32 %v8395_v20, %v3503_v62  ;;  %v3240_v57 = vpop.f32.mrb[0].mxu1 }
 0x26e   : > { %v3534_v28 = vmul.f32 %v8390_v38, %v3240_v57  ;;  %v3242_v17 = vpop.f32.mrb[1].mxu1 }
 0x26f   : > { %3701 = vst [vmem:[%s8404_s8] sm:$0xff] %v3637_v50  ;;  %v3638_v7 = vmax.f32 %v3574_v48, 0.0  ;;  %v3243_v45 = vpop.f32.mrb[2].mxu1 }
 0x270   : > { %v3605_v19 = vadd.f32 %v8395_v20, %v3534_v28  ;;  %v3535_v23 = vmul.f32 %v8390_v38, %v3243_v45  ;;  %v3245_v21 = vpop.f32.mrb[3].mxu1 }
 0x271   : > { %3702 = vst [vmem:[%s8404_s8 + $0x8] sm:$0xff] %v3638_v7 }
 0x272   : > { %v3669_v11 = vmax.f32 %v3605_v19, 0.0  ;;  %v3606_v59 = vadd.f32 %v8395_v20, %v3535_v23 }
 0x274   : > { %3733 = vst [vmem:[%s8404_s8 + $0x100] sm:$0xff] %v3669_v11  ;;  %v3670_v5 = vmax.f32 %v3606_v59, 0.0  ;;  %v3120_v52 = vpop.f32.mrb[4].mxu0 }
 0x275   : > { %v3504_v6 = vmul.f32 %v8390_v38, %v3120_v52  ;;  %v3122_v18 = vpop.f32.mrb[5].mxu0 }
 0x276   : > { %3734 = vst [vmem:[%s8404_s8 + $0x108] sm:$0xff] %v3670_v5  ;;  %v3123_v4 = vpop.f32.mrb[6].mxu0 }
 0x277   : > { %v3575_v39 = vadd.f32 %v8395_v20, %v3504_v6  ;;  %v3505_v31 = vmul.f32 %v8390_v38, %v3123_v4  ;;  %v3125_v27 = vpop.f32.mrb[7].mxu0 }
 0x279   : > { %v3639_v16 = vmax.f32 %v3575_v39, 0.0  ;;  %v3576_v61 = vadd.f32 %v8395_v20, %v3505_v31  ;;  %v3248_v2 = vpop.f32.mrb[4].mxu1 }
 0x27a   : > { %v3536_v14 = vmul.f32 %v8390_v38, %v3248_v2  ;;  %v3250_v9 = vpop.f32.mrb[5].mxu1 }
 0x27b   : > { %3703 = vst [vmem:[%s8404_s8 + $0x10] sm:$0xff] %v3639_v16  ;;  %v3640_v15 = vmax.f32 %v3576_v61, 0.0  ;;  %v3251_v30 = vpop.f32.mrb[6].mxu1 }
 0x27c   : > { %v3607_v10 = vadd.f32 %v8395_v20, %v3536_v14  ;;  %v3537_v47 = vmul.f32 %v8390_v38, %v3251_v30  ;;  %v3253_v54 = vpop.f32.mrb[7].mxu1 }
 0x27d   : > { %3704 = vst [vmem:[%s8404_s8 + $0x18] sm:$0xff] %v3640_v15 }
 0x27e   : > { %v3671_v29 = vmax.f32 %v3607_v10, 0.0  ;;  %v3608_v43 = vadd.f32 %v8395_v20, %v3537_v47 }
 0x280   : > { %3735 = vst [vmem:[%s8404_s8 + $0x110] sm:$0xff] %v3671_v29  ;;  %v3672_v24 = vmax.f32 %v3608_v43, 0.0  ;;  %v3128_v58 = vpop.f32.mrb[8].mxu0 }
 0x281   : > { %v3506_v32 = vmul.f32 %v8390_v38, %v3128_v58  ;;  %v3130_v63 = vpop.f32.mrb[9].mxu0 }
 0x282   : > { %3736 = vst [vmem:[%s8404_s8 + $0x118] sm:$0xff] %v3672_v24  ;;  %v3131_v33 = vpop.f32.mrb[10].mxu0 }
 0x283   : > { %v3577_v34 = vadd.f32 %v8395_v20, %v3506_v32  ;;  %v3507_v35 = vmul.f32 %v8390_v38, %v3131_v33  ;;  %v3133_v36 = vpop.f32.mrb[11].mxu0 }
 0x285   : > { %v3641_v40 = vmax.f32 %v3577_v34, 0.0  ;;  %v3578_v53 = vadd.f32 %v8395_v20, %v3507_v35  ;;  %v3256_v44 = vpop.f32.mrb[8].mxu1 }
 0x286   : > { %v3538_v0 = vmul.f32 %v8390_v38, %v3256_v44  ;;  %v3258_v26 = vpop.f32.mrb[9].mxu1 }
 0x287   : > { %3705 = vst [vmem:[%s8404_s8 + $0x20] sm:$0xff] %v3641_v40  ;;  %v3642_v56 = vmax.f32 %v3578_v53, 0.0  ;;  %v3259_v60 = vpop.f32.mrb[10].mxu1 }
 0x288   : > { %v3609_v49 = vadd.f32 %v8395_v20, %v3538_v0  ;;  %v3539_v42 = vmul.f32 %v8390_v38, %v3259_v60  ;;  %v3261_v1 = vpop.f32.mrb[11].mxu1 }
 0x289   : > { %3706 = vst [vmem:[%s8404_s8 + $0x28] sm:$0xff] %v3642_v56 }
 0x28a   : > { %v3673_v37 = vmax.f32 %v3609_v49, 0.0  ;;  %v3610_v22 = vadd.f32 %v8395_v20, %v3539_v42 }
 0x28c   : > { %3737 = vst [vmem:[%s8404_s8 + $0x120] sm:$0xff] %v3673_v37  ;;  %v3674_v55 = vmax.f32 %v3610_v22, 0.0  ;;  %v3136_v13 = vpop.f32.mrb[12].mxu0 }
 0x28d   : > { %v3508_v46 = vmul.f32 %v8390_v38, %v3136_v13  ;;  %v3138_v51 = vpop.f32.mrb[13].mxu0 }
 0x28e   : > { %3738 = vst [vmem:[%s8404_s8 + $0x128] sm:$0xff] %v3674_v55  ;;  %v3139_v3 = vpop.f32.mrb[14].mxu0 }
 0x28f   : > { %v3579_v41 = vadd.f32 %v8395_v20, %v3508_v46  ;;  %v3509_v25 = vmul.f32 %v8390_v38, %v3139_v3  ;;  %v3141_v12 = vpop.f32.mrb[15].mxu0 }
 0x291   : > { %v3643_v62 = vmax.f32 %v3579_v41, 0.0  ;;  %v3580_v8 = vadd.f32 %v8395_v20, %v3509_v25  ;;  %v3264_v50 = vpop.f32.mrb[12].mxu1 }
 0x292   : > { %v3540_v48 = vmul.f32 %v8390_v38, %v3264_v50  ;;  %v3266_v57 = vpop.f32.mrb[13].mxu1 }
 0x293   : > { %3707 = vst [vmem:[%s8404_s8 + $0x30] sm:$0xff] %v3643_v62  ;;  %v3644_v28 = vmax.f32 %v3580_v8, 0.0  ;;  %v3267_v17 = vpop.f32.mrb[14].mxu1 }
 0x294   : > { %v3611_v7 = vadd.f32 %v8395_v20, %v3540_v48  ;;  %v3541_v45 = vmul.f32 %v8390_v38, %v3267_v17  ;;  %v3269_v19 = vpop.f32.mrb[15].mxu1 }
 0x295   : > { %3708 = vst [vmem:[%s8404_s8 + $0x38] sm:$0xff] %v3644_v28 }
 0x296   : > { %v3675_v23 = vmax.f32 %v3611_v7, 0.0  ;;  %v3612_v21 = vadd.f32 %v8395_v20, %v3541_v45 }
 0x298   : > { %3739 = vst [vmem:[%s8404_s8 + $0x130] sm:$0xff] %v3675_v23  ;;  %v3676_v11 = vmax.f32 %v3612_v21, 0.0  ;;  %v3144_v59 = vpop.f32.mrb[16].mxu0 }
 0x299   : > { %v3510_v5 = vmul.f32 %v8390_v38, %v3144_v59  ;;  %v3146_v52 = vpop.f32.mrb[17].mxu0 }
 0x29a   : > { %3740 = vst [vmem:[%s8404_s8 + $0x138] sm:$0xff] %v3676_v11  ;;  %v3147_v6 = vpop.f32.mrb[18].mxu0 }
 0x29b   : > { %v3581_v18 = vadd.f32 %v8395_v20, %v3510_v5  ;;  %v3511_v4 = vmul.f32 %v8390_v38, %v3147_v6  ;;  %v3149_v39 = vpop.f32.mrb[19].mxu0 }
 0x29d   : > { %v3645_v31 = vmax.f32 %v3581_v18, 0.0  ;;  %v3582_v27 = vadd.f32 %v8395_v20, %v3511_v4  ;;  %v3272_v16 = vpop.f32.mrb[16].mxu1 }
 0x29e   : > { %v3542_v61 = vmul.f32 %v8390_v38, %v3272_v16  ;;  %v3274_v2 = vpop.f32.mrb[17].mxu1 }
 0x29f   : > { %3709 = vst [vmem:[%s8404_s8 + $0x40] sm:$0xff] %v3645_v31  ;;  %v3646_v14 = vmax.f32 %v3582_v27, 0.0  ;;  %v3275_v9 = vpop.f32.mrb[18].mxu1 }
 0x2a0   : > { %v3613_v15 = vadd.f32 %v8395_v20, %v3542_v61  ;;  %v3543_v30 = vmul.f32 %v8390_v38, %v3275_v9  ;;  %v3277_v10 = vpop.f32.mrb[19].mxu1 }
 0x2a1   : > { %3710 = vst [vmem:[%s8404_s8 + $0x48] sm:$0xff] %v3646_v14 }
 0x2a2   : > { %v3677_v47 = vmax.f32 %v3613_v15, 0.0  ;;  %v3614_v54 = vadd.f32 %v8395_v20, %v3543_v30 }
 0x2a4   : > { %3741 = vst [vmem:[%s8404_s8 + $0x140] sm:$0xff] %v3677_v47  ;;  %v3678_v29 = vmax.f32 %v3614_v54, 0.0  ;;  %v3152_v43 = vpop.f32.mrb[20].mxu0 }
 0x2a5   : > { %v3512_v24 = vmul.f32 %v8390_v38, %v3152_v43  ;;  %v3154_v58 = vpop.f32.mrb[21].mxu0 }
 0x2a6   : > { %3742 = vst [vmem:[%s8404_s8 + $0x148] sm:$0xff] %v3678_v29  ;;  %v3155_v32 = vpop.f32.mrb[22].mxu0 }
 0x2a7   : > { %v3583_v63 = vadd.f32 %v8395_v20, %v3512_v24  ;;  %v3513_v33 = vmul.f32 %v8390_v38, %v3155_v32  ;;  %v3157_v34 = vpop.f32.mrb[23].mxu0 }
 0x2a9   : > { %v3647_v35 = vmax.f32 %v3583_v63, 0.0  ;;  %v3584_v36 = vadd.f32 %v8395_v20, %v3513_v33  ;;  %v3280_v40 = vpop.f32.mrb[20].mxu1 }
 0x2aa   : > { %v3544_v53 = vmul.f32 %v8390_v38, %v3280_v40  ;;  %v3282_v44 = vpop.f32.mrb[21].mxu1 }
 0x2ab   : > { %3711 = vst [vmem:[%s8404_s8 + $0x50] sm:$0xff] %v3647_v35  ;;  %v3648_v0 = vmax.f32 %v3584_v36, 0.0  ;;  %v3283_v26 = vpop.f32.mrb[22].mxu1 }
 0x2ac   : > { %v3615_v56 = vadd.f32 %v8395_v20, %v3544_v53  ;;  %v3545_v60 = vmul.f32 %v8390_v38, %v3283_v26  ;;  %v3285_v49 = vpop.f32.mrb[23].mxu1 }
 0x2ad   : > { %3712 = vst [vmem:[%s8404_s8 + $0x58] sm:$0xff] %v3648_v0 }
 0x2ae   : > { %v3679_v42 = vmax.f32 %v3615_v56, 0.0  ;;  %v3616_v1 = vadd.f32 %v8395_v20, %v3545_v60 }
 0x2b0   : > { %3743 = vst [vmem:[%s8404_s8 + $0x150] sm:$0xff] %v3679_v42  ;;  %v3680_v37 = vmax.f32 %v3616_v1, 0.0  ;;  %v3160_v22 = vpop.f32.mrb[24].mxu0 }
 0x2b1   : > { %v3514_v55 = vmul.f32 %v8390_v38, %v3160_v22  ;;  %v3162_v13 = vpop.f32.mrb[25].mxu0 }
 0x2b2   : > { %3744 = vst [vmem:[%s8404_s8 + $0x158] sm:$0xff] %v3680_v37  ;;  %v3163_v46 = vpop.f32.mrb[26].mxu0 }
 0x2b3   : > { %v3585_v51 = vadd.f32 %v8395_v20, %v3514_v55  ;;  %v3515_v3 = vmul.f32 %v8390_v38, %v3163_v46  ;;  %v3165_v41 = vpop.f32.mrb[27].mxu0 }
 0x2b5   : > { %v3649_v25 = vmax.f32 %v3585_v51, 0.0  ;;  %v3586_v12 = vadd.f32 %v8395_v20, %v3515_v3  ;;  %v3288_v62 = vpop.f32.mrb[24].mxu1 }
 0x2b6   : > { %v3546_v8 = vmul.f32 %v8390_v38, %v3288_v62  ;;  %v3290_v50 = vpop.f32.mrb[25].mxu1 }
 0x2b7   : > { %3713 = vst [vmem:[%s8404_s8 + $0x60] sm:$0xff] %v3649_v25  ;;  %v3650_v48 = vmax.f32 %v3586_v12, 0.0  ;;  %v3291_v57 = vpop.f32.mrb[26].mxu1 }
 0x2b8   : > { %v3617_v28 = vadd.f32 %v8395_v20, %v3546_v8  ;;  %v3547_v17 = vmul.f32 %v8390_v38, %v3291_v57  ;;  %v3293_v7 = vpop.f32.mrb[27].mxu1 }
 0x2b9   : > { %3714 = vst [vmem:[%s8404_s8 + $0x68] sm:$0xff] %v3650_v48 }
 0x2ba   : > { %v3681_v45 = vmax.f32 %v3617_v28, 0.0  ;;  %v3618_v19 = vadd.f32 %v8395_v20, %v3547_v17 }
 0x2bc   : > { %3745 = vst [vmem:[%s8404_s8 + $0x160] sm:$0xff] %v3681_v45  ;;  %v3682_v23 = vmax.f32 %v3618_v19, 0.0  ;;  %v3168_v21 = vpop.f32.mrb[28].mxu0 }
 0x2bd   : > { %v3516_v11 = vmul.f32 %v8390_v38, %v3168_v21  ;;  %v3170_v59 = vpop.f32.mrb[29].mxu0 }
 0x2be   : > { %3746 = vst [vmem:[%s8404_s8 + $0x168] sm:$0xff] %v3682_v23  ;;  %v3171_v5 = vpop.f32.mrb[30].mxu0 }
 0x2bf   : > { %v3587_v52 = vadd.f32 %v8395_v20, %v3516_v11  ;;  %v3517_v6 = vmul.f32 %v8390_v38, %v3171_v5  ;;  %v3173_v18 = vpop.f32.mrb[31].mxu0 }
 0x2c1   : > { %v3651_v4 = vmax.f32 %v3587_v52, 0.0  ;;  %v3588_v39 = vadd.f32 %v8395_v20, %v3517_v6  ;;  %v3296_v31 = vpop.f32.mrb[28].mxu1 }
 0x2c2   : > { %v3548_v27 = vmul.f32 %v8390_v38, %v3296_v31  ;;  %v3298_v16 = vpop.f32.mrb[29].mxu1 }
 0x2c3   : > { %3715 = vst [vmem:[%s8404_s8 + $0x70] sm:$0xff] %v3651_v4  ;;  %v3652_v61 = vmax.f32 %v3588_v39, 0.0  ;;  %v3299_v2 = vpop.f32.mrb[30].mxu1 }
 0x2c4   : > { %v3619_v14 = vadd.f32 %v8395_v20, %v3548_v27  ;;  %v3549_v9 = vmul.f32 %v8390_v38, %v3299_v2  ;;  %v3301_v15 = vpop.f32.mrb[31].mxu1 }
 0x2c5   : > { %3716 = vst [vmem:[%s8404_s8 + $0x78] sm:$0xff] %v3652_v61 }
 0x2c6   : > { %v3683_v30 = vmax.f32 %v3619_v14, 0.0  ;;  %v3620_v10 = vadd.f32 %v8395_v20, %v3549_v9 }
 0x2c8   : > { %3747 = vst [vmem:[%s8404_s8 + $0x170] sm:$0xff] %v3683_v30  ;;  %v3684_v47 = vmax.f32 %v3620_v10, 0.0  ;;  %v3176_v54 = vpop.f32.mrb[32].mxu0 }
 0x2c9   : > { %v3518_v29 = vmul.f32 %v8390_v38, %v3176_v54  ;;  %v3178_v43 = vpop.f32.mrb[33].mxu0 }
 0x2ca   : > { %3748 = vst [vmem:[%s8404_s8 + $0x178] sm:$0xff] %v3684_v47  ;;  %v3179_v24 = vpop.f32.mrb[34].mxu0 }
 0x2cb   : > { %v3589_v58 = vadd.f32 %v8395_v20, %v3518_v29  ;;  %v3519_v32 = vmul.f32 %v8390_v38, %v3179_v24  ;;  %v3181_v63 = vpop.f32.mrb[35].mxu0 }
 0x2cd   : > { %v3653_v33 = vmax.f32 %v3589_v58, 0.0  ;;  %v3590_v34 = vadd.f32 %v8395_v20, %v3519_v32  ;;  %v3304_v35 = vpop.f32.mrb[32].mxu1 }
 0x2ce   : > { %v3550_v36 = vmul.f32 %v8390_v38, %v3304_v35  ;;  %v3306_v40 = vpop.f32.mrb[33].mxu1 }
 0x2cf   : > { %3717 = vst [vmem:[%s8404_s8 + $0x80] sm:$0xff] %v3653_v33  ;;  %v3654_v53 = vmax.f32 %v3590_v34, 0.0  ;;  %v3307_v44 = vpop.f32.mrb[34].mxu1 }
 0x2d0   : > { %v3621_v0 = vadd.f32 %v8395_v20, %v3550_v36  ;;  %v3551_v26 = vmul.f32 %v8390_v38, %v3307_v44  ;;  %v3309_v56 = vpop.f32.mrb[35].mxu1 }
 0x2d1   : > { %3718 = vst [vmem:[%s8404_s8 + $0x88] sm:$0xff] %v3654_v53 }
 0x2d2   : > { %v3685_v60 = vmax.f32 %v3621_v0, 0.0  ;;  %v3622_v49 = vadd.f32 %v8395_v20, %v3551_v26 }
 0x2d4   : > { %3749 = vst [vmem:[%s8404_s8 + $0x180] sm:$0xff] %v3685_v60  ;;  %v3686_v42 = vmax.f32 %v3622_v49, 0.0 }
 0x2d6   : > { %3750 = vst [vmem:[%s8404_s8 + $0x188] sm:$0xff] %v3686_v42 }
 0x2d8   : > { %v3312_v1 = vpop.f32.mrb[36].mxu1 }
 0x2d9   : > { %v3184_v37 = vpop.f32.mrb[36].mxu0  ;;  %v3552_v22 = vmul.f32 %v8390_v38, %v3312_v1  ;;  %v3314_v55 = vpop.f32.mrb[37].mxu1 }
 0x2da   : > { %v3520_v13 = vmul.f32 %v8390_v38, %v3184_v37  ;;  %v3186_v46 = vpop.f32.mrb[37].mxu0  ;;  %v3315_v51 = vpop.f32.mrb[38].mxu1 }
 0x2db   : > { %v3623_v3 = vadd.f32 %v8395_v20, %v3552_v22  ;;  %v3187_v41 = vpop.f32.mrb[38].mxu0  ;;  %v3553_v25 = vmul.f32 %v8390_v38, %v3315_v51  ;;  %v3317_v12 = vpop.f32.mrb[39].mxu1 }
 0x2dc   : > { %v3591_v62 = vadd.f32 %v8395_v20, %v3520_v13  ;;  %v3521_v8 = vmul.f32 %v8390_v38, %v3187_v41  ;;  %v3189_v50 = vpop.f32.mrb[39].mxu0 }
 0x2dd   : > { %v3687_v48 = vmax.f32 %v3623_v3, 0.0  ;;  %v3624_v57 = vadd.f32 %v8395_v20, %v3553_v25 }
 0x2de   : > { %v3655_v28 = vmax.f32 %v3591_v62, 0.0  ;;  %v3592_v17 = vadd.f32 %v8395_v20, %v3521_v8 }
 0x2df   : > { %3751 = vst [vmem:[%s8404_s8 + $0x190] sm:$0xff] %v3687_v48  ;;  %v3688_v7 = vmax.f32 %v3624_v57, 0.0 }
 0x2e0   : > { %3719 = vst [vmem:[%s8404_s8 + $0x90] sm:$0xff] %v3655_v28  ;;  %v3656_v45 = vmax.f32 %v3592_v17, 0.0 }
 0x2e1   : > { %3752 = vst [vmem:[%s8404_s8 + $0x198] sm:$0xff] %v3688_v7 }
 0x2e2   : > { %3720 = vst [vmem:[%s8404_s8 + $0x98] sm:$0xff] %v3656_v45 }
 0x2e4   : > { %v3192_v19 = vpop.f32.mrb[40].mxu0 }
 0x2e5   : > { %v3522_v23 = vmul.f32 %v8390_v38, %v3192_v19  ;;  %v3194_v21 = vpop.f32.mrb[41].mxu0 }
 0x2e6   : > { %v3195_v11 = vpop.f32.mrb[42].mxu0 }
 0x2e7   : > { %v3593_v59 = vadd.f32 %v8395_v20, %v3522_v23  ;;  %v3523_v5 = vmul.f32 %v8390_v38, %v3195_v11  ;;  %v3197_v52 = vpop.f32.mrb[43].mxu0 }
 0x2e9   : > { %v3657_v6 = vmax.f32 %v3593_v59, 0.0  ;;  %v3594_v18 = vadd.f32 %v8395_v20, %v3523_v5  ;;  %v3320_v4 = vpop.f32.mrb[40].mxu1 }
 0x2ea   : > { %v3554_v39 = vmul.f32 %v8390_v38, %v3320_v4  ;;  %v3322_v31 = vpop.f32.mrb[41].mxu1 }
 0x2eb   : > { %3721 = vst [vmem:[%s8404_s8 + $0xa0] sm:$0xff] %v3657_v6  ;;  %v3658_v27 = vmax.f32 %v3594_v18, 0.0  ;;  %v3323_v16 = vpop.f32.mrb[42].mxu1 }
 0x2ec   : > { %v3625_v61 = vadd.f32 %v8395_v20, %v3554_v39  ;;  %v3555_v2 = vmul.f32 %v8390_v38, %v3323_v16  ;;  %v3325_v14 = vpop.f32.mrb[43].mxu1 }
 0x2ed   : > { %3722 = vst [vmem:[%s8404_s8 + $0xa8] sm:$0xff] %v3658_v27 }
 0x2ee   : > { %v3689_v9 = vmax.f32 %v3625_v61, 0.0  ;;  %v3626_v15 = vadd.f32 %v8395_v20, %v3555_v2 }
 0x2f0   : > { %3753 = vst [vmem:[%s8404_s8 + $0x1a0] sm:$0xff] %v3689_v9  ;;  %v3690_v30 = vmax.f32 %v3626_v15, 0.0 }
 0x2f2   : > { %3754 = vst [vmem:[%s8404_s8 + $0x1a8] sm:$0xff] %v3690_v30 }
 0x2f4   : > { %v3328_v10 = vpop.f32.mrb[44].mxu1 }
 0x2f5   : > { %v3200_v47 = vpop.f32.mrb[44].mxu0  ;;  %v3556_v54 = vmul.f32 %v8390_v38, %v3328_v10  ;;  %v3330_v29 = vpop.f32.mrb[45].mxu1 }
 0x2f6   : > { %v3524_v43 = vmul.f32 %v8390_v38, %v3200_v47  ;;  %v3202_v24 = vpop.f32.mrb[45].mxu0  ;;  %v3331_v58 = vpop.f32.mrb[46].mxu1 }
 0x2f7   : > { %v3627_v32 = vadd.f32 %v8395_v20, %v3556_v54  ;;  %v3203_v63 = vpop.f32.mrb[46].mxu0  ;;  %v3557_v33 = vmul.f32 %v8390_v38, %v3331_v58  ;;  %v3333_v34 = vpop.f32.mrb[47].mxu1 }
 0x2f8   : > { %v3595_v35 = vadd.f32 %v8395_v20, %v3524_v43  ;;  %v3525_v36 = vmul.f32 %v8390_v38, %v3203_v63  ;;  %v3205_v40 = vpop.f32.mrb[47].mxu0 }
 0x2f9   : > { %v3691_v53 = vmax.f32 %v3627_v32, 0.0  ;;  %v3628_v44 = vadd.f32 %v8395_v20, %v3557_v33 }
 0x2fa   : > { %v3659_v0 = vmax.f32 %v3595_v35, 0.0  ;;  %v3596_v26 = vadd.f32 %v8395_v20, %v3525_v36 }
 0x2fb   : > { %3755 = vst [vmem:[%s8404_s8 + $0x1b0] sm:$0xff] %v3691_v53  ;;  %v3692_v56 = vmax.f32 %v3628_v44, 0.0 }
 0x2fc   : > { %3723 = vst [vmem:[%s8404_s8 + $0xb0] sm:$0xff] %v3659_v0  ;;  %v3660_v60 = vmax.f32 %v3596_v26, 0.0 }
 0x2fd   : > { %3756 = vst [vmem:[%s8404_s8 + $0x1b8] sm:$0xff] %v3692_v56 }
 0x2fe   : > { %3724 = vst [vmem:[%s8404_s8 + $0xb8] sm:$0xff] %v3660_v60 }
 0x300   : > { %v3208_v49 = vpop.f32.mrb[48].mxu0 }
 0x301   : > { %v3526_v42 = vmul.f32 %v8390_v38, %v3208_v49  ;;  %v3210_v1 = vpop.f32.mrb[49].mxu0 }
 0x302   : > { %v3211_v37 = vpop.f32.mrb[50].mxu0 }
 0x303   : > { %v3597_v22 = vadd.f32 %v8395_v20, %v3526_v42  ;;  %v3527_v55 = vmul.f32 %v8390_v38, %v3211_v37  ;;  %v3213_v13 = vpop.f32.mrb[51].mxu0 }
 0x305   : > { %v3661_v46 = vmax.f32 %v3597_v22, 0.0  ;;  %v3598_v51 = vadd.f32 %v8395_v20, %v3527_v55  ;;  %v3336_v3 = vpop.f32.mrb[48].mxu1 }
 0x306   : > { %v3558_v41 = vmul.f32 %v8390_v38, %v3336_v3  ;;  %v3338_v25 = vpop.f32.mrb[49].mxu1 }
 0x307   : > { %3725 = vst [vmem:[%s8404_s8 + $0xc0] sm:$0xff] %v3661_v46  ;;  %v3662_v12 = vmax.f32 %v3598_v51, 0.0  ;;  %v3339_v62 = vpop.f32.mrb[50].mxu1 }
 0x308   : > { %v3629_v8 = vadd.f32 %v8395_v20, %v3558_v41  ;;  %v3559_v50 = vmul.f32 %v8390_v38, %v3339_v62  ;;  %v3341_v48 = vpop.f32.mrb[51].mxu1 }
 0x309   : > { %3726 = vst [vmem:[%s8404_s8 + $0xc8] sm:$0xff] %v3662_v12 }
 0x30a   : > { %v3693_v57 = vmax.f32 %v3629_v8, 0.0  ;;  %v3630_v28 = vadd.f32 %v8395_v20, %v3559_v50 }
 0x30c   : > { %3757 = vst [vmem:[%s8404_s8 + $0x1c0] sm:$0xff] %v3693_v57  ;;  %v3694_v17 = vmax.f32 %v3630_v28, 0.0 }
 0x30e   : > { %3758 = vst [vmem:[%s8404_s8 + $0x1c8] sm:$0xff] %v3694_v17 }
 0x310   : > { %v3344_v7 = vpop.f32.mrb[52].mxu1 }
 0x311   : > { %v3216_v45 = vpop.f32.mrb[52].mxu0  ;;  %v3560_v19 = vmul.f32 %v8390_v38, %v3344_v7  ;;  %v3346_v23 = vpop.f32.mrb[53].mxu1 }
 0x312   : > { %v3528_v21 = vmul.f32 %v8390_v38, %v3216_v45  ;;  %v3218_v11 = vpop.f32.mrb[53].mxu0  ;;  %v3347_v59 = vpop.f32.mrb[54].mxu1 }
 0x313   : > { %v3631_v5 = vadd.f32 %v8395_v20, %v3560_v19  ;;  %v3219_v52 = vpop.f32.mrb[54].mxu0  ;;  %v3561_v6 = vmul.f32 %v8390_v38, %v3347_v59  ;;  %v3349_v18 = vpop.f32.mrb[55].mxu1 }
 0x314   : > { %v3599_v4 = vadd.f32 %v8395_v20, %v3528_v21  ;;  %v3529_v39 = vmul.f32 %v8390_v38, %v3219_v52  ;;  %v3221_v31 = vpop.f32.mrb[55].mxu0 }
 0x315   : > { %v3695_v27 = vmax.f32 %v3631_v5, 0.0  ;;  %v3632_v16 = vadd.f32 %v8395_v20, %v3561_v6 }
 0x316   : > { %v3663_v61 = vmax.f32 %v3599_v4, 0.0  ;;  %v3600_v2 = vadd.f32 %v8395_v20, %v3529_v39 }
 0x317   : > { %3759 = vst [vmem:[%s8404_s8 + $0x1d0] sm:$0xff] %v3695_v27  ;;  %v3696_v14 = vmax.f32 %v3632_v16, 0.0 }
 0x318   : > { %3727 = vst [vmem:[%s8404_s8 + $0xd0] sm:$0xff] %v3663_v61  ;;  %v3664_v9 = vmax.f32 %v3600_v2, 0.0 }
 0x319   : > { %3760 = vst [vmem:[%s8404_s8 + $0x1d8] sm:$0xff] %v3696_v14 }
 0x31a   : > { %3728 = vst [vmem:[%s8404_s8 + $0xd8] sm:$0xff] %v3664_v9 }
 0x31c   : > { %v3224_v15 = vpop.f32.mrb[56].mxu0 }
 0x31d   : > { %v3530_v30 = vmul.f32 %v8390_v38, %v3224_v15  ;;  %v3226_v10 = vpop.f32.mrb[57].mxu0 }
 0x31e   : > { %v3227_v47 = vpop.f32.mrb[58].mxu0 }
 0x31f   : > { %v3601_v54 = vadd.f32 %v8395_v20, %v3530_v30  ;;  %v3531_v29 = vmul.f32 %v8390_v38, %v3227_v47  ;;  %v3229_v43 = vpop.f32.mrb[59].mxu0 }
 0x321   : > { %v3665_v24 = vmax.f32 %v3601_v54, 0.0  ;;  %v3602_v58 = vadd.f32 %v8395_v20, %v3531_v29  ;;  %v3352_v32 = vpop.f32.mrb[56].mxu1 }
 0x322   : > { %v3562_v63 = vmul.f32 %v8390_v38, %v3352_v32  ;;  %v3354_v33 = vpop.f32.mrb[57].mxu1 }
 0x323   : > { %3729 = vst [vmem:[%s8404_s8 + $0xe0] sm:$0xff] %v3665_v24  ;;  %v3666_v34 = vmax.f32 %v3602_v58, 0.0  ;;  %v3355_v35 = vpop.f32.mrb[58].mxu1 }
 0x324   : > { %v3633_v36 = vadd.f32 %v8395_v20, %v3562_v63  ;;  %v3563_v40 = vmul.f32 %v8390_v38, %v3355_v35  ;;  %v3357_v53 = vpop.f32.mrb[59].mxu1 }
 0x325   : > { %3730 = vst [vmem:[%s8404_s8 + $0xe8] sm:$0xff] %v3666_v34 }
 0x326   : > { %v3697_v44 = vmax.f32 %v3633_v36, 0.0  ;;  %v3634_v0 = vadd.f32 %v8395_v20, %v3563_v40 }
 0x328   : > { %3761 = vst [vmem:[%s8404_s8 + $0x1e0] sm:$0xff] %v3697_v44  ;;  %v3698_v26 = vmax.f32 %v3634_v0, 0.0 }
 0x32a   : > { %3762 = vst [vmem:[%s8404_s8 + $0x1e8] sm:$0xff] %v3698_v26 }
 0x32c   : > { %v3360_v56 = vpop.f32.mrb[60].mxu1 }
 0x32d   : > { %v3232_v60 = vpop.f32.mrb[60].mxu0  ;;  %v3564_v49 = vmul.f32 %v8390_v38, %v3360_v56  ;;  %v3362_v42 = vpop.f32.mrb[61].mxu1 }
 0x32e   : > { %v3532_v1 = vmul.f32 %v8390_v38, %v3232_v60  ;;  %v3234_v37 = vpop.f32.mrb[61].mxu0  ;;  %v3363_v22 = vpop.f32.mrb[62].mxu1 }
 0x32f   : > { %v3635_v55 = vadd.f32 %v8395_v20, %v3564_v49  ;;  %v3235_v13 = vpop.f32.mrb[62].mxu0  ;;  %v3565_v46 = vmul.f32 %v8390_v38, %v3363_v22  ;;  %v3365_v51 = vpop.f32.mrb[63].mxu1 }
 0x330   : > { %v3603_v3 = vadd.f32 %v8395_v20, %v3532_v1  ;;  %v3533_v41 = vmul.f32 %v8390_v38, %v3235_v13  ;;  %v3237_v25 = vpop.f32.mrb[63].mxu0 }
 0x331   : > { %v3699_v12 = vmax.f32 %v3635_v55, 0.0  ;;  %v3636_v62 = vadd.f32 %v8395_v20, %v3565_v46 }
 0x332   : > { %v3667_v8 = vmax.f32 %v3603_v3, 0.0  ;;  %v3604_v50 = vadd.f32 %v8395_v20, %v3533_v41 }
 0x333   : > { %3763 = vst [vmem:[%s8404_s8 + $0x1f0] sm:$0xff] %v3699_v12  ;;  %v3700_v48 = vmax.f32 %v3636_v62, 0.0 }
 0x334   : > { %3731 = vst [vmem:[%s8404_s8 + $0xf0] sm:$0xff] %v3667_v8  ;;  %v3668_v38 = vmax.f32 %v3604_v50, 0.0 }
 0x335   : > { %3764 = vst [vmem:[%s8404_s8 + $0x1f8] sm:$0xff] %v3700_v48 }
 0x336   : > { %3732 = vst [vmem:[%s8404_s8 + $0xf8] sm:$0xff] %v3668_v38 }
 0x337   : > { %5365 = shalt.err (!%p5362_p5)
}
 0x338   : > { %s5366_s7 = scalar_lea.hbm %s8595_s14, 8192  ;;  %s5370_s30 = scalar_lea.hbm %s8654_s4, 16384 }
 0x339   : > { %p5367_p6 = scmp.ne.s32.totalorder %s8595_s14, %s5366_s7  ;;  %p5371_p10 = scmp.lt.u32.totalorder %s8595_s14, %s8654_s4 }
 0x33a   : > { %p5372_p11 = scmp.lt.u32.totalorder %s5370_s30, %s5366_s7  ;;  %p5374_p13 = scmp.lt.u32.totalorder %s5366_s7, %s8595_s14 }
 0x33b   : > { %p5368_p7 = pnand %p5367_p6, %p5508_p4 }
 0x33c   : > { %p5373_p12 = por %p5372_p11, %p5371_p10 }
 0x33d   : > { %p5369_p9 = pneg %p5368_p7 }
 0x33e   : > { %p5375_p0 = por %p5374_p13, %p5373_p12 }
 0x340   : > { %p5376_p1 = pnand %p5375_p0, %p5369_p9 }
 0x342   : > { %5379 = shalt.err (!%p5376_p1)
}
 0x343   : > { %s5441_s8 = smov 128   ;;  %s5442_s9 = smov 8  }
 0x344   : > { %4158 = dma.vmem_to_hbm [thread:$0]  (%p5508_p4), %s8597_s10, 8192, %s8595_s14, %s8604_s18, %s5441_s8, %s5441_s8, %s5442_s9  }
 0x345 PF: > { %p4164_p2 = scmp.ge.s32.totalorder %s5430_s20, 2  ;;  %s3798_s12 = sand.u32 1, %s5410_s15  }
 0x346   : > { %s3799_s13 = scalar_lea.sflag [#allocation5], %s3798_s12 }
 0x347   : > { %p4161_p3 = pnand %p4164_p2, %p5515_p8 }
 0x349   : > { %5405 = dma.done.wait (!%p4161_p3), %s3799_s13, 8192  }
 0x34a   : > { %5407 = vsyncadd (!%p4161_p3), %s3799_s13, 4294959104  ;;  %s17_s20 = sadd.s32 1, %s5430_s20   ;;  %s9558_s15 = smov %s5414_s16 }
 0x34b   : > { %p14_p5 = scmp.ge.s32.totalorder %s17_s20, 4   ;;  %s9559_s16 = smov %s5418_s17 }
 0x34c   : > { %s9560_s17 = smov %s5521_s28  ;;  %s9561_s18 = smov %s5426_s19 }
 0x34d   : > { %s9562_s19 = smov %s9564_s23  ;;  %16 = sbr.rel (!%p14_p5) target bundleno = 4 (0x4), region = 85 }
 0x354   :  { %3804 = vsyncpa [#allocation5], 1 }
 0x355   :  { %3806 = vsyncpa [#allocation5 + $0x1], 1 }

</bundles_post_ra>
